<compile_context>
chip_gen: v5e
topology: v5e:2x2
jax: 0.10.0
libtpu: 0.0.40
codegen_flags: <defaults>
</compile_context>

<pallas_src>
import functools

import jax
import jax.numpy as jnp
from jax.experimental import pallas as pl
from jax.experimental.pallas import tpu as pltpu

N_FEATS = 1000       # backbone output width (ImageNet-classifier style)
N_FEATS_PAD = 1024   # padded to a multiple of 128 lanes
HID = 256            # fc hidden width
N_OUT = 2            # logits
N_OUT_PAD = 128      # lane-dense padded output width


def _round_up(x, m):
    return (x + m - 1) // m * m


def _model_kernel(x_ref, wp_ref, bp_ref, w1_ref, b1_ref, w2_ref, b2_ref,
                  o_ref, acc_ref):
    """grid = (m, k): m tiles the (padded) batch, k tiles the backbone reduction."""
    k = pl.program_id(1)

    @pl.when(k == 0)
    def _():
        acc_ref[...] = jnp.zeros_like(acc_ref)

    # Backbone stand-in: accumulate x @ wp over K tiles (bf16 in, f32 accumulate).
    acc_ref[...] += jnp.dot(x_ref[...], wp_ref[...],
                            preferred_element_type=jnp.float32)

    @pl.when(k == pl.num_programs(1) - 1)
    def _():
        feats = acc_ref[...] + bp_ref[...]                       # (tm, 1024) f32
        h = jnp.dot(feats.astype(jnp.bfloat16), w1_ref[...],
                    preferred_element_type=jnp.float32) + b1_ref[...]
        h = jnp.maximum(h, 0.0)                                  # ReLU
        # Dropout(0.2): inference-mode identity.
        # TODO(synk): train-mode dropout via pltpu.prng_seed / prng_random_bits.
        out = jnp.dot(h.astype(jnp.bfloat16), w2_ref[...],
                      preferred_element_type=jnp.float32) + b2_ref[...]
        o_ref[...] = out.astype(o_ref.dtype)


@functools.partial(jax.jit, static_argnames=("tk",))
def model_forward(x_nchw, params, tk=512):
    """x_nchw: (B, C, H, W) float32.  Returns (B, 2) float32 logits."""
    wp, bp, w1, b1, w2, b2 = params
    B = x_nchw.shape[0]
    x_flat = x_nchw.reshape(B, -1)               # Flatten (row-major, like torch)
    K = x_flat.shape[1]

    # ---- TPU-friendly padding / tiling --------------------------------------
    tm = min(128, _round_up(B, 8))               # sublane-aligned batch tile
    m_pad = _round_up(B, tm)
    tk_eff = min(tk, _round_up(K, 128))          # lane-aligned K tile
    k_pad = _round_up(K, tk_eff)

    bf16 = jnp.bfloat16
    x_p = jnp.zeros((m_pad, k_pad), bf16).at[:B, :K].set(x_flat.astype(bf16))
    wp_p = jnp.zeros((k_pad, N_FEATS_PAD), bf16).at[:K, :N_FEATS].set(wp.astype(bf16))
    bp_p = jnp.zeros((1, N_FEATS_PAD), jnp.float32).at[:, :N_FEATS].set(bp)
    w1_p = jnp.zeros((N_FEATS_PAD, HID), bf16).at[:N_FEATS, :].set(w1.astype(bf16))
    b1_p = b1.astype(jnp.float32)                                   # (1, 256)
    w2_p = jnp.zeros((HID, N_OUT_PAD), bf16).at[:, :N_OUT].set(w2.astype(bf16))
    b2_p = jnp.zeros((1, N_OUT_PAD), jnp.float32).at[:, :N_OUT].set(b2)

    nm = m_pad // tm
    nk = k_pad // tk_eff

    grid_spec = pltpu.PrefetchScalarGridSpec(
        num_scalar_prefetch=0,
        grid=(nm, nk),
        in_specs=[
            pl.BlockSpec((tm, tk_eff), lambda m, k: (m, k)),          # x tile
            pl.BlockSpec((tk_eff, N_FEATS_PAD), lambda m, k: (k, 0)),  # wp tile
            pl.BlockSpec((1, N_FEATS_PAD), lambda m, k: (0, 0)),       # bp
            pl.BlockSpec((N_FEATS_PAD, HID), lambda m, k: (0, 0)),     # w1
            pl.BlockSpec((1, HID), lambda m, k: (0, 0)),               # b1
            pl.BlockSpec((HID, N_OUT_PAD), lambda m, k: (0, 0)),       # w2
            pl.BlockSpec((1, N_OUT_PAD), lambda m, k: (0, 0)),         # b2
        ],
        out_specs=pl.BlockSpec((tm, N_OUT_PAD), lambda m, k: (m, 0)),
        scratch_shapes=[pltpu.VMEM((tm, N_FEATS_PAD), jnp.float32)],
    )

    out_padded = pl.pallas_call(
        _model_kernel,
        out_shape=jax.ShapeDtypeStruct((m_pad, N_OUT_PAD), jnp.float32),
        grid_spec=grid_spec,
        compiler_params=pltpu.CompilerParams(
            dimension_semantics=("parallel", "arbitrary"),
            vmem_limit_bytes=64 * 1024 * 1024,
        ),
    )(x_p, wp_p, bp_p, w1_p, b1_p, w2_p, b2_p)

    return out_padded[:B, :N_OUT]


def init_params(key, in_features):
    """Init mimicking PyTorch's default U(-1/sqrt(fan_in), +1/sqrt(fan_in))."""
    ks = jax.random.split(key, 6)

    def lin(kw, kb, fan_in, fan_out):
        bound = 1.0 / (fan_in ** 0.5)
        w = jax.random.uniform(kw, (fan_in, fan_out), jnp.float32, -bound, bound)
        b = jax.random.uniform(kb, (1, fan_out), jnp.float32, -bound, bound)
        return w, b

    wp, bp = lin(ks[0], ks[1], in_features, N_FEATS)   # stand-in pretrained head
    w1, b1 = lin(ks[2], ks[3], N_FEATS, HID)           # fc Linear(1000, 256)
    w2, b2 = lin(ks[4], ks[5], HID, N_OUT)             # fc Linear(256, 2)
    return (wp, bp, w1, b1, w2, b2)


def _reference(x_nchw, params):
    """Pure-JAX reference mirroring the kernel's bf16-in / f32-accumulate math."""
    wp, bp, w1, b1, w2, b2 = params
    bf = lambda a: a.astype(jnp.bfloat16).astype(jnp.float32)
    x = bf(x_nchw.reshape(x_nchw.shape[0], -1))
    feats = x @ bf(wp) + bp
    h = jnp.maximum(bf(feats) @ bf(w1) + b1, 0.0)
    return bf(h) @ bf(w2) + b2


if __name__ == "__main__":
    key = jax.random.PRNGKey(0)
    k_x, k_p = jax.random.split(key)

    # Small image-like input, NCHW like PyTorch.
    B, C, H, W = 2, 4, 16, 16
    x = jax.random.normal(k_x, (B, C, H, W), jnp.float32)

    params = init_params(k_p, C * H * W)

    out = model_forward(x, params)
    out = jax.block_until_ready(out)

    ref = _reference(x, params)
    assert out.shape == (B, N_OUT), out.shape
    assert jnp.allclose(out, ref, atol=5e-3, rtol=5e-3), (out, ref)

    print("KERNEL_OK")
</pallas_src>

<mosaic_0001>
module attributes {stable_mosaic.version = 11 : i64} {
  func.func @_model_kernel(%arg0: i32, %arg1: i32, %arg2: memref<8x512xbf16, #tpu.memory_space<vmem>>, %arg3: memref<512x1024xbf16, #tpu.memory_space<vmem>>, %arg4: memref<1x1024xf32, #tpu.memory_space<vmem>>, %arg5: memref<1024x256xbf16, #tpu.memory_space<vmem>>, %arg6: memref<1x256xf32, #tpu.memory_space<vmem>>, %arg7: memref<256x128xbf16, #tpu.memory_space<vmem>>, %arg8: memref<1x128xf32, #tpu.memory_space<vmem>>, %arg9: memref<8x128xf32, #tpu.memory_space<vmem>>, %arg10: memref<8x1024xf32, #tpu.memory_space<vmem>>) attributes {dimension_semantics = [#tpu.dimension_semantics<parallel>, #tpu.dimension_semantics<arbitrary>], iteration_bounds = array<i64: 1, 2>, scalar_prefetch = 0 : i64, scratch_operands = 1 : i64, tpu.core_type = #tpu.core_type<tc>, window_params = [{transform_indices = @transform_0, window_bounds = array<i64: 8, 512>}, {transform_indices = @transform_1, window_bounds = array<i64: 512, 1024>}, {pipeline_mode = #tpu.pipeline_mode<synchronous>, transform_indices = @transform_2, window_bounds = array<i64: 1, 1024>}, {pipeline_mode = #tpu.pipeline_mode<synchronous>, transform_indices = @transform_3, window_bounds = array<i64: 1024, 256>}, {pipeline_mode = #tpu.pipeline_mode<synchronous>, transform_indices = @transform_4, window_bounds = array<i64: 1, 256>}, {pipeline_mode = #tpu.pipeline_mode<synchronous>, transform_indices = @transform_5, window_bounds = array<i64: 256, 128>}, {pipeline_mode = #tpu.pipeline_mode<synchronous>, transform_indices = @transform_6, window_bounds = array<i64: 1, 128>}, {transform_indices = @transform_7, window_bounds = array<i64: 8, 128>}]} {
    %c0_i32 = arith.constant 0 : i32
    %0 = arith.cmpi eq, %arg1, %c0_i32 : i32
    %1 = arith.extui %0 : i1 to i32
    %c0_i32_0 = arith.constant 0 : i32
    %2 = arith.cmpi ne, %1, %c0_i32_0 : i32
    scf.if %2 {
      %cst_9 = arith.constant 0.000000e+00 : f32
      %12 = vector.broadcast %cst_9 : f32 to vector<8x1024xf32>
      %c0_10 = arith.constant 0 : index
      %c0_11 = arith.constant 0 : index
      %13 = vector.load %arg10[%c0_10, %c0_11] : memref<8x1024xf32, #tpu.memory_space<vmem>>, vector<8x1024xf32>
      tpu.vector_store %arg10[%c0_10, %c0_11], %12 {strides = array<i32>} : memref<8x1024xf32, #tpu.memory_space<vmem>>, vector<8x1024xf32>,
    } else {
    }
    %c0 = arith.constant 0 : index
    %c0_1 = arith.constant 0 : index
    %3 = vector.load %arg10[%c0, %c0_1] : memref<8x1024xf32, #tpu.memory_space<vmem>>, vector<8x1024xf32>
    %c0_2 = arith.constant 0 : index
    %c0_3 = arith.constant 0 : index
    %4 = vector.load %arg2[%c0_2, %c0_3] : memref<8x512xbf16, #tpu.memory_space<vmem>>, vector<8x512xbf16>
    %c0_4 = arith.constant 0 : index
    %c0_5 = arith.constant 0 : index
    %5 = vector.load %arg3[%c0_4, %c0_5] : memref<512x1024xbf16, #tpu.memory_space<vmem>>, vector<512x1024xbf16>
    %cst = arith.constant dense<0.000000e+00> : vector<8x1024xf32>
    %6 = tpu.matmul %4, %5, %cst {dimension_numbers = #tpu.dot_dimension_numbers<[1], [0], [0], [1], [0, 0, 1, 1], [], []>} : vector<8x512xbf16>, vector<512x1024xbf16>, vector<8x1024xf32> -> vector<8x1024xf32>
    %7 = arith.addf %3, %6 : vector<8x1024xf32>
    %c0_6 = arith.constant 0 : index
    %c0_7 = arith.constant 0 : index
    %8 = vector.load %arg10[%c0_6, %c0_7] : memref<8x1024xf32, #tpu.memory_space<vmem>>, vector<8x1024xf32>
    tpu.vector_store %arg10[%c0_6, %c0_7], %7 {strides = array<i32>} : memref<8x1024xf32, #tpu.memory_space<vmem>>, vector<8x1024xf32>,
    %c1_i32 = arith.constant 1 : i32
    %9 = arith.cmpi eq, %arg1, %c1_i32 : i32
    %10 = arith.extui %9 : i1 to i32
    %c0_i32_8 = arith.constant 0 : i32
    %11 = arith.cmpi ne, %10, %c0_i32_8 : i32
    scf.if %11 {
      %c0_9 = arith.constant 0 : index
      %c0_10 = arith.constant 0 : index
      %12 = vector.load %arg10[%c0_9, %c0_10] : memref<8x1024xf32, #tpu.memory_space<vmem>>, vector<8x1024xf32>
      %c0_11 = arith.constant 0 : index
      %c0_12 = arith.constant 0 : index
      %13 = vector.load %arg4[%c0_11, %c0_12] : memref<1x1024xf32, #tpu.memory_space<vmem>>, vector<1x1024xf32>
      %14 = vector.broadcast %13 : vector<1x1024xf32> to vector<8x1024xf32>
      %15 = arith.addf %12, %14 : vector<8x1024xf32>
      %16 = arith.truncf %15 : vector<8x1024xf32> to vector<8x1024xbf16>
      %c0_13 = arith.constant 0 : index
      %c0_14 = arith.constant 0 : index
      %17 = vector.load %arg5[%c0_13, %c0_14] : memref<1024x256xbf16, #tpu.memory_space<vmem>>, vector<1024x256xbf16>
      %cst_15 = arith.constant dense<0.000000e+00> : vector<8x256xf32>
      %18 = tpu.matmul %16, %17, %cst_15 {dimension_numbers = #tpu.dot_dimension_numbers<[1], [0], [0], [1], [0, 0, 1, 1], [], []>} : vector<8x1024xbf16>, vector<1024x256xbf16>, vector<8x256xf32> -> vector<8x256xf32>
      %c0_16 = arith.constant 0 : index
      %c0_17 = arith.constant 0 : index
      %19 = vector.load %arg6[%c0_16, %c0_17] : memref<1x256xf32, #tpu.memory_space<vmem>>, vector<1x256xf32>
      %20 = vector.broadcast %19 : vector<1x256xf32> to vector<8x256xf32>
      %21 = arith.addf %18, %20 : vector<8x256xf32>
      %cst_18 = arith.constant 0.000000e+00 : f32
      %22 = vector.broadcast %cst_18 : f32 to vector<8x256xf32>
      %23 = arith.maximumf %21, %22 : vector<8x256xf32>
      %24 = arith.truncf %23 : vector<8x256xf32> to vector<8x256xbf16>
      %c0_19 = arith.constant 0 : index
      %c0_20 = arith.constant 0 : index
      %25 = vector.load %arg7[%c0_19, %c0_20] : memref<256x128xbf16, #tpu.memory_space<vmem>>, vector<256x128xbf16>
      %cst_21 = arith.constant dense<0.000000e+00> : vector<8x128xf32>
      %26 = tpu.matmul %24, %25, %cst_21 {dimension_numbers = #tpu.dot_dimension_numbers<[1], [0], [0], [1], [0, 0, 1, 1], [], []>} : vector<8x256xbf16>, vector<256x128xbf16>, vector<8x128xf32> -> vector<8x128xf32>
      %c0_22 = arith.constant 0 : index
      %c0_23 = arith.constant 0 : index
      %27 = vector.load %arg8[%c0_22, %c0_23] : memref<1x128xf32, #tpu.memory_space<vmem>>, vector<1x128xf32>
      %28 = vector.broadcast %27 : vector<1x128xf32> to vector<8x128xf32>
      %29 = arith.addf %26, %28 : vector<8x128xf32>
      %c0_24 = arith.constant 0 : index
      %c0_25 = arith.constant 0 : index
      %30 = vector.load %arg9[%c0_24, %c0_25] : memref<8x128xf32, #tpu.memory_space<vmem>>, vector<8x128xf32>
      tpu.vector_store %arg9[%c0_24, %c0_25], %29 {strides = array<i32>} : memref<8x128xf32, #tpu.memory_space<vmem>>, vector<8x128xf32>,
    } else {
    }
    return
  }
  func.func @transform_0(%arg0: i32, %arg1: i32) -> (i32, i32) {
    %c0_i32 = arith.constant 0 : i32
    return %arg0, %arg1 : i32, i32
  }
  func.func @transform_1(%arg0: i32, %arg1: i32) -> (i32, i32) {
    %c0_i32 = arith.constant 0 : i32
    %c0_i32_0 = arith.constant 0 : i32
    return %arg1, %c0_i32 : i32, i32
  }
  func.func @transform_2(%arg0: i32, %arg1: i32) -> (i32, i32) {
    %c0_i32 = arith.constant 0 : i32
    %c0_i32_0 = arith.constant 0 : i32
    %c0_i32_1 = arith.constant 0 : i32
    return %c0_i32, %c0_i32_0 : i32, i32
  }
  func.func @transform_3(%arg0: i32, %arg1: i32) -> (i32, i32) {
    %c0_i32 = arith.constant 0 : i32
    %c0_i32_0 = arith.constant 0 : i32
    %c0_i32_1 = arith.constant 0 : i32
    return %c0_i32, %c0_i32_0 : i32, i32
  }
  func.func @transform_4(%arg0: i32, %arg1: i32) -> (i32, i32) {
    %c0_i32 = arith.constant 0 : i32
    %c0_i32_0 = arith.constant 0 : i32
    %c0_i32_1 = arith.constant 0 : i32
    return %c0_i32, %c0_i32_0 : i32, i32
  }
  func.func @transform_5(%arg0: i32, %arg1: i32) -> (i32, i32) {
    %c0_i32 = arith.constant 0 : i32
    %c0_i32_0 = arith.constant 0 : i32
    %c0_i32_1 = arith.constant 0 : i32
    return %c0_i32, %c0_i32_0 : i32, i32
  }
  func.func @transform_6(%arg0: i32, %arg1: i32) -> (i32, i32) {
    %c0_i32 = arith.constant 0 : i32
    %c0_i32_0 = arith.constant 0 : i32
    %c0_i32_1 = arith.constant 0 : i32
    return %c0_i32, %c0_i32_0 : i32, i32
  }
  func.func @transform_7(%arg0: i32, %arg1: i32) -> (i32, i32) {
    %c0_i32 = arith.constant 0 : i32
    %c0_i32_0 = arith.constant 0 : i32
    return %arg0, %c0_i32 : i32, i32
  }
}

</mosaic_0001>

<bundles_post_ra>
// kernel: model_forward.1
= control target key start
LH: loop header
LB: loop body
LE: loop exit
PB: predicated region body
PF: predicated region fallthrough
CT: control target
= control target key end

     0   :  { %s5708_s24 = smov 0   ;;  %s5710_s25 = smov 0   ;;  %s7175_s0 = inlined_call_operand.vmem [shape: bf16[8,1024], index: 0, kind: input, shape index: {}]   ;;  %s7176_s1 = inlined_call_operand.vmem [shape: bf16[1024,1024], index: 1, kind: input, shape index: {}]   ;;  %s7177_s2 = inlined_call_operand.vmem [shape: f32[1,1024], index: 2, kind: input, shape index: {}]   ;;  %s7178_s3 = inlined_call_operand.vmem [shape: bf16[1024,256], index: 3, kind: input, shape index: {}]   ;;  %s7179_s4 = inlined_call_operand.vmem [shape: f32[1,256], index: 4, kind: input, shape index: {}]   ;;  %s7180_s5 = inlined_call_operand.vmem [shape: bf16[256,128], index: 5, kind: input, shape index: {}]   ;;  %s7181_s6 = inlined_call_operand.vmem [shape: f32[1,128], index: 6, kind: input, shape index: {}]   ;;  %s7182_s7 = inlined_call_operand.vmem [shape: f32[8,128], index: 7, kind: output, shape index: {}]  }
   0x1   :  { %s5712_s26 = smov 0  }
   0x2 LB: > { %s26_s27 = sadd.s32 1, %s5661_s25  ;;  %p3605_p0 = scmp.ge.s32.totalorder %s5665_s26, 1  ;;  %s5665_s26 = sphi %s5712_s26, %s17_s26   ;;  %s5661_s25 = sphi %s5710_s25, %s7184_s25   ;;  %s5657_s24 = sphi %s5708_s24, %s7183_s24  }
   0x3   : > { %p27_p1 = scmp.ge.s32.totalorder %s26_s27, 2  ;;  %p268_p2 = scmp.lt.s32.totalorder %s5665_s26, 3 }
   0x5   : > { %s7186_s27 = smov (%p27_p1, %s26_s27), 0  ;;  %p269_p3 = pnand %p3605_p0, %p268_p2 }
   0x6   : > { %s3606_s28 = sshll.u32 (!%p269_p3), %s5657_s24, 2  ;;  %s3608_s29 = sshll.u32 (!%p269_p3), %s5657_s24, 6 }
   0x7   : > { %272 = sbr.rel (%p269_p3) target bundleno = 868 (0x364), region = 48  ;;  %p312_p4 = scmp.lt.s32.totalorder (!%p269_p3), %s3606_s28, 7 }
   0x8   : > { %p320_p5 = scmp.lt.s32.totalorder (!%p269_p3), %s3608_s29, 127  ;;  %p3611_p6 = scmp.ne.s32.totalorder (!%p269_p3), %s5657_s24, 0 }
   0xc   : > { %s7188_s28 = smov (!%p312_p4, %s3606_s28), 7  ;;  %s7190_s29 = smov (!%p320_p5, %s3608_s29), 127 }
   0xd   : > { %s3607_s30 = sshll.u32 %s7188_s28, 2  ;;  %s5216_s11 = sshll.u32 %s7190_s29, 5 }
   0xe   : > { %s5733_s10 = scalar_lea.vmem %s7175_s0, %s3607_s30  ;;  %s5738_s14 = scalar_lea.vmem %s7176_s1, %s5216_s11 }
   0xf   : > { %333 = sbr.rel (%p3611_p6) target bundleno = 29 (0x1d), region = 52 }
  0x14   : > { %v5667_v0 = vmov 0.0  }
  0x15   : > { %334 = vst [vmem:[#allocation2 + $0x30] sm:$0xff] %v5667_v0 }
  0x16   : > { %335 = vst [vmem:[#allocation2] sm:$0xff] %v5667_v0 }
  0x17   : > { %336 = vst [vmem:[#allocation2 + $0x18] sm:$0xff] %v5667_v0 }
  0x18   : > { %337 = vst [vmem:[#allocation2 + $0x10] sm:$0xff] %v5667_v0 }
  0x19   : > { %338 = vst [vmem:[#allocation2 + $0x8] sm:$0xff] %v5667_v0 }
  0x1a   : > { %339 = vst [vmem:[#allocation2 + $0x20] sm:$0xff] %v5667_v0 }
  0x1b   : > { %340 = vst [vmem:[#allocation2 + $0x28] sm:$0xff] %v5667_v0 }
  0x1c   : > { %341 = vst [vmem:[#allocation2 + $0x38] sm:$0xff] %v5667_v0 }
  0x1d PF: > { %v3838_v1 = vld [vmem:[%s5738_s14 + $0x1c0] sm:$0xf]  ;;  %p4636_p7 = scmp.ne.s32.totalorder %s5657_s24, 1 }
  0x1e   : > { %v5277_v2 = vld [vmem:[%s5738_s14 + $0x1dc] sm:$0xf0] }
  0x1f   : > { %v4094_v3 = vld [vmem:[%s5738_s14 + $0x3c0] sm:$0xf]  ;;  %v3839_v4 = vor.u32 %v5277_v2, %v3838_v1 }
  0x20   : > { %v5341_v5 = vld [vmem:[%s5738_s14 + $0x3dc] sm:$0xf0] }
  0x21   : > { %v4350_v6 = vld [vmem:[%s5738_s14 + $0x5c0] sm:$0xf]  ;;  %v4095_v8 = vor.u32 %v5341_v5, %v4094_v3  ;;  %1902 = vmatpush.bf16.msra.mxu0 %v3839_v4 }
  0x22   : > { %v5405_v7 = vld [vmem:[%s5738_s14 + $0x5dc] sm:$0xf0] }
  0x23   : > { %v4351_v9 = vor.u32 %v5405_v7, %v4350_v6  ;;  %v4606_v10 = vld [vmem:[%s5738_s14 + $0x7c0] sm:$0xf]  ;;  %1915 = vmatpush.bf16.msra.mxu1 %v4095_v8 }
  0x24   : > { %v5469_v11 = vld [vmem:[%s5738_s14 + $0x7dc] sm:$0xf0] }
  0x25   : > { %v3806_v12 = vld [vmem:[%s5738_s14 + $0x180] sm:$0xf]  ;;  %v4607_v13 = vor.u32 %v5469_v11, %v4606_v10  ;;  %1928 = vmatpush.bf16.msra.mxu2 %v4351_v9 }
  0x26   : > { %v5269_v14 = vld [vmem:[%s5738_s14 + $0x19c] sm:$0xf0] }
  0x27   : > { %v4062_v15 = vld [vmem:[%s5738_s14 + $0x380] sm:$0xf]  ;;  %v3807_v17 = vor.u32 %v5269_v14, %v3806_v12  ;;  %1941 = vmatpush.bf16.msra.mxu3 %v4607_v13 }
  0x28   : > { %v5333_v16 = vld [vmem:[%s5738_s14 + $0x39c] sm:$0xf0] }
  0x29   : > { %v4063_v18 = vor.u32 %v5333_v16, %v4062_v15  ;;  %v4318_v19 = vld [vmem:[%s5738_s14 + $0x580] sm:$0xf]  ;;  %1903 = vmatpush.bf16.msra.mxu0 %v3807_v17 }
  0x2a   : > { %v5397_v20 = vld [vmem:[%s5738_s14 + $0x59c] sm:$0xf0] }
  0x2b   : > { %v4574_v21 = vld [vmem:[%s5738_s14 + $0x780] sm:$0xf]  ;;  %v4319_v22 = vor.u32 %v5397_v20, %v4318_v19  ;;  %1916 = vmatpush.bf16.msra.mxu1 %v4063_v18 }
  0x2c   : > { %v5461_v23 = vld [vmem:[%s5738_s14 + $0x79c] sm:$0xf0] }
  0x2d   : > { %v3774_v24 = vld [vmem:[%s5738_s14 + $0x140] sm:$0xf]  ;;  %v4575_v26 = vor.u32 %v5461_v23, %v4574_v21  ;;  %1929 = vmatpush.bf16.msra.mxu2 %v4319_v22 }
  0x2e   : > { %v5261_v25 = vld [vmem:[%s5738_s14 + $0x15c] sm:$0xf0] }
  0x2f   : > { %v4030_v27 = vld [vmem:[%s5738_s14 + $0x340] sm:$0xf]  ;;  %v3775_v30 = vor.u32 %v5261_v25, %v3774_v24  ;;  %1942 = vmatpush.bf16.msra.mxu3 %v4575_v26 }
  0x30   : > { %v5325_v28 = vld [vmem:[%s5738_s14 + $0x35c] sm:$0xf0] }
  0x31   : > { %v4286_v29 = vld [vmem:[%s5738_s14 + $0x540] sm:$0xf]  ;;  %v4031_v34 = vor.u32 %v5325_v28, %v4030_v27  ;;  %1904 = vmatpush.bf16.msra.mxu0 %v3775_v30  ;;  %v3840_v30 = vld [vmem:[%s5738_s14 + $0x1e0] sm:$0xf0] }
  0x32   : > { %v5389_v31 = vld [vmem:[%s5738_s14 + $0x55c] sm:$0xf0] }
  0x33   : > { %v4542_v32 = vld [vmem:[%s5738_s14 + $0x740] sm:$0xf]  ;;  %v4287_v35 = vor.u32 %v5389_v31, %v4286_v29  ;;  %1917 = vmatpush.bf16.msra.mxu1 %v4031_v34  ;;  %v5273_v29 = vld [vmem:[%s5738_s14 + $0x1c4] sm:$0xf] }
  0x34   : > { %v5453_v33 = vld [vmem:[%s5738_s14 + $0x75c] sm:$0xf0]  ;;  %v5337_v31 = vld [vmem:[%s5738_s14 + $0x3c4] sm:$0xf] }
  0x35   : > { %v3742_v36 = vld [vmem:[%s5738_s14 + $0x100] sm:$0xf]  ;;  %v4543_v39 = vor.u32 %v5453_v33, %v4542_v32  ;;  %1930 = vmatpush.bf16.msra.mxu2 %v4287_v35  ;;  %v4096_v33 = vld [vmem:[%s5738_s14 + $0x3e0] sm:$0xf0] }
  0x36   : > { %v5253_v37 = vld [vmem:[%s5738_s14 + $0x11c] sm:$0xf0]  ;;  %v5401_v34 = vld [vmem:[%s5738_s14 + $0x5c4] sm:$0xf] }
  0x37   : > { %v3998_v38 = vld [vmem:[%s5738_s14 + $0x300] sm:$0xf]  ;;  %v3743_v45 = vor.u32 %v5253_v37, %v3742_v36  ;;  %1943 = vmatpush.bf16.msra.mxu3 %v4543_v39  ;;  %v4352_v35 = vld [vmem:[%s5738_s14 + $0x5e0] sm:$0xf0] }
  0x38   : > { %v5317_v40 = vld [vmem:[%s5738_s14 + $0x31c] sm:$0xf0]  ;;  %v4608_v39 = vld [vmem:[%s5738_s14 + $0x7e0] sm:$0xf0] }
  0x39   : > { %v4254_v41 = vld [vmem:[%s5738_s14 + $0x500] sm:$0xf]  ;;  %v3999_v46 = vor.u32 %v5317_v40, %v3998_v38  ;;  %1905 = vmatpush.bf16.msra.mxu0 %v3743_v45  ;;  %v5465_v38 = vld [vmem:[%s5738_s14 + $0x7c4] sm:$0xf] }
  0x3a   : > { %v5381_v42 = vld [vmem:[%s5738_s14 + $0x51c] sm:$0xf0]  ;;  %v3808_v45 = vld [vmem:[%s5738_s14 + $0x1a0] sm:$0xf0] }
  0x3b   : > { %v4510_v43 = vld [vmem:[%s5738_s14 + $0x700] sm:$0xf]  ;;  %v4255_v47 = vor.u32 %v5381_v42, %v4254_v41  ;;  %1918 = vmatpush.bf16.msra.mxu1 %v3999_v46  ;;  %v3843_v41 = vor.u32 %v5273_v29, %v3840_v30  ;;  %v4099_v42 = vor.u32 %v5337_v31, %v4096_v33  ;;  %v5329_v46 = vld [vmem:[%s5738_s14 + $0x384] sm:$0xf] }
  0x3c   : > { %v5445_v44 = vld [vmem:[%s5738_s14 + $0x71c] sm:$0xf0]  ;;  %v5369_v29 = vld [vmem:[%s5738_s14 + $0x4c4] sm:$0xf] }
  0x3d   : > { %v3710_v48 = vld [vmem:[%s5738_s14 + $0xc0] sm:$0xf]  ;;  %v4511_v51 = vor.u32 %v5445_v44, %v4510_v43  ;;  %1931 = vmatpush.bf16.msra.mxu2 %v4255_v47  ;;  %v4355_v43 = vor.u32 %v5401_v34, %v4352_v35  ;;  %v5265_v44 = vld [vmem:[%s5738_s14 + $0x184] sm:$0xf]  ;;  %v4611_v47 = vor.u32 %v5465_v38, %v4608_v39 }
  0x3e   : > { %v5245_v49 = vld [vmem:[%s5738_s14 + $0xdc] sm:$0xf0]  ;;  %v4224_v30 = vld [vmem:[%s5738_s14 + $0x4e0] sm:$0xf0] }
  0x3f   : > { %v3966_v50 = vld [vmem:[%s5738_s14 + $0x2c0] sm:$0xf]  ;;  %v3711_v57 = vor.u32 %v5245_v49, %v3710_v48  ;;  %1944 = vmatpush.bf16.msra.mxu3 %v4511_v51  ;;  %v4064_v48 = vld [vmem:[%s5738_s14 + $0x3a0] sm:$0xf0] }
  0x40   : > { %v5309_v52 = vld [vmem:[%s5738_s14 + $0x2dc] sm:$0xf0]  ;;  %v5393_v49 = vld [vmem:[%s5738_s14 + $0x584] sm:$0xf] }
  0x41   : > { %v4222_v53 = vld [vmem:[%s5738_s14 + $0x4c0] sm:$0xf]  ;;  %v3967_v58 = vor.u32 %v5309_v52, %v3966_v50  ;;  %1906 = vmatpush.bf16.msra.mxu0 %v3711_v57  ;;  %v4320_v50 = vld [vmem:[%s5738_s14 + $0x5a0] sm:$0xf0] }
  0x42   : > { %v5373_v54 = vld [vmem:[%s5738_s14 + $0x4dc] sm:$0xf0]  ;;  %v5457_v51 = vld [vmem:[%s5738_s14 + $0x784] sm:$0xf] }
  0x43   : > { %v4478_v55 = vld [vmem:[%s5738_s14 + $0x6c0] sm:$0xf]  ;;  %v4223_v59 = vor.u32 %v5373_v54, %v4222_v53  ;;  %1919 = vmatpush.bf16.msra.mxu1 %v3967_v58  ;;  %v4576_v52 = vld [vmem:[%s5738_s14 + $0x7a0] sm:$0xf0]  ;;  %v3811_v53 = vor.u32 %v5265_v44, %v3808_v45  ;;  %v4067_v54 = vor.u32 %v5329_v46, %v4064_v48 }
  0x44   : > { %v5437_v56 = vld [vmem:[%s5738_s14 + $0x6dc] sm:$0xf0]  ;;  %v3776_v57 = vld [vmem:[%s5738_s14 + $0x160] sm:$0xf0] }
  0x45   : > { %v3678_v60 = vld [vmem:[%s5738_s14 + $0x80] sm:$0xf]  ;;  %v4479_v63 = vor.u32 %v5437_v56, %v4478_v55  ;;  %1932 = vmatpush.bf16.msra.mxu2 %v4223_v59  ;;  %v4323_v55 = vor.u32 %v5393_v49, %v4320_v50  ;;  %v5257_v56 = vld [vmem:[%s5738_s14 + $0x144] sm:$0xf]  ;;  %v4579_v59 = vor.u32 %v5457_v51, %v4576_v52 }
  0x46   : > { %v5237_v61 = vld [vmem:[%s5738_s14 + $0x9c] sm:$0xf0]  ;;  %v5321_v58 = vld [vmem:[%s5738_s14 + $0x344] sm:$0xf] }
  0x47   : > { %v3934_v62 = vld [vmem:[%s5738_s14 + $0x280] sm:$0xf]  ;;  %v3679_v5 = vor.u32 %v5237_v61, %v3678_v60  ;;  %1945 = vmatpush.bf16.msra.mxu3 %v4479_v63  ;;  %v4032_v60 = vld [vmem:[%s5738_s14 + $0x360] sm:$0xf0] }
  0x48   : > { %v5301_v0 = vld [vmem:[%s5738_s14 + $0x29c] sm:$0xf0]  ;;  %v5385_v61 = vld [vmem:[%s5738_s14 + $0x544] sm:$0xf] }
  0x49   : > { %v4190_v1 = vld [vmem:[%s5738_s14 + $0x480] sm:$0xf]  ;;  %v3935_v6 = vor.u32 %v5301_v0, %v3934_v62  ;;  %1907 = vmatpush.bf16.msra.mxu0 %v3679_v5  ;;  %v4288_v62 = vld [vmem:[%s5738_s14 + $0x560] sm:$0xf0] }
  0x4a   : > { %v5365_v2 = vld [vmem:[%s5738_s14 + $0x49c] sm:$0xf0]  ;;  %v5449_v63 = vld [vmem:[%s5738_s14 + $0x744] sm:$0xf] }
  0x4b   : > { %v4446_v3 = vld [vmem:[%s5738_s14 + $0x680] sm:$0xf]  ;;  %v4191_v7 = vor.u32 %v5365_v2, %v4190_v1  ;;  %1920 = vmatpush.bf16.msra.mxu1 %v3935_v6  ;;  %v4544_v0 = vld [vmem:[%s5738_s14 + $0x760] sm:$0xf0]  ;;  %v3779_v1 = vor.u32 %v5257_v56, %v3776_v57  ;;  %v351_v2 = vld [vmem:[%s5733_s10 + $0x8] sm:$0xff] }
  0x4c   : > { %v5429_v4 = vld [vmem:[%s5738_s14 + $0x69c] sm:$0xf0]  ;;  %v5249_v5 = vld [vmem:[%s5738_s14 + $0x104] sm:$0xf] }
  0x4d   : > { %v3646_v8 = vld [vmem:[%s5738_s14 + $0x40] sm:$0xf]  ;;  %v4447_v11 = vor.u32 %v5429_v4, %v4446_v3  ;;  %1933 = vmatpush.bf16.msra.mxu2 %v4191_v7  ;;  %v4035_v3 = vor.u32 %v5321_v58, %v4032_v60  ;;  %v4291_v4 = vor.u32 %v5385_v61, %v4288_v62  ;;  %v3744_v6 = vld [vmem:[%s5738_s14 + $0x120] sm:$0xf0] }
  0x4e   : > { %v5229_v9 = vld [vmem:[%s5738_s14 + $0x5c] sm:$0xf0]  ;;  %v5313_v7 = vld [vmem:[%s5738_s14 + $0x304] sm:$0xf] }
  0x4f   : > { %v3902_v10 = vld [vmem:[%s5738_s14 + $0x240] sm:$0xf]  ;;  %v3647_v17 = vor.u32 %v5229_v9, %v3646_v8  ;;  %1946 = vmatpush.bf16.msra.mxu3 %v4447_v11  ;;  %v612_v8 = vunpack.c.l.b16 %v351_v2  ;;  %v613_v9 = vunpack.c.h.b16 %v351_v2  ;;  %v4000_v11 = vld [vmem:[%s5738_s14 + $0x320] sm:$0xf0] }
  0x50   : > { %v5293_v12 = vld [vmem:[%s5738_s14 + $0x25c] sm:$0xf0]  ;;  %v5433_v33 = vld [vmem:[%s5738_s14 + $0x6c4] sm:$0xf] }
  0x51   : > { %v4158_v13 = vld [vmem:[%s5738_s14 + $0x440] sm:$0xf]  ;;  %v3903_v20 = vor.u32 %v5293_v12, %v3902_v10  ;;  %1908 = vmatpush.bf16.msra.mxu0 %v3647_v17  ;;  %v4547_v10 = vor.u32 %v5449_v63, %v4544_v0  ;;  %v5377_v12 = vld [vmem:[%s5738_s14 + $0x504] sm:$0xf]  ;;  %v5840_v17 = vpack.c.b16 %v613_v9, %v613_v9  ;;  %v4102_v9 = vld [vmem:[%s5738_s14 + $0x3c8] sm:$0xf] }
  0x52   : > { %v5357_v14 = vld [vmem:[%s5738_s14 + $0x45c] sm:$0xf0]  ;;  %v4480_v34 = vld [vmem:[%s5738_s14 + $0x6e0] sm:$0xf0] }
  0x53   : > { %v4414_v15 = vld [vmem:[%s5738_s14 + $0x640] sm:$0xf]  ;;  %v4159_v21 = vor.u32 %v5357_v14, %v4158_v13  ;;  %1921 = vmatpush.bf16.msra.mxu1 %v3903_v20  ;;  %v4256_v13 = vld [vmem:[%s5738_s14 + $0x520] sm:$0xf0] }
  0x54   : > { %v5421_v16 = vld [vmem:[%s5738_s14 + $0x65c] sm:$0xf0]  ;;  %v5441_v14 = vld [vmem:[%s5738_s14 + $0x704] sm:$0xf] }
  0x55   : > { %v3614_v18 = vld [vmem:[%s5738_s14] sm:$0xf]  ;;  %v4415_v25 = vor.u32 %v5421_v16, %v4414_v15  ;;  %1934 = vmatpush.bf16.msra.mxu2 %v4159_v21  ;;  %v4512_v15 = vld [vmem:[%s5738_s14 + $0x720] sm:$0xf0]  ;;  %v5838_v16 = vpack.c.b16 %v612_v8, %v612_v8  ;;  %v5278_v8 = vld [vmem:[%s5738_s14 + $0x1e4] sm:$0xf0] }
  0x56   : > { %v5221_v19 = vld [vmem:[%s5738_s14 + $0x1c] sm:$0xf0]  ;;  %v5233_v38 = vld [vmem:[%s5738_s14 + $0x84] sm:$0xf] }
  0x57   : > { %v3870_v22 = vld [vmem:[%s5738_s14 + $0x200] sm:$0xf]  ;;  %v3615_v32 = vor.u32 %v5221_v19, %v3614_v18  ;;  %1947 = vmatpush.bf16.msra.mxu3 %v4415_v25  ;;  %v3747_v19 = vor.u32 %v5249_v5, %v3744_v6  ;;  %v3712_v25 = vld [vmem:[%s5738_s14 + $0xe0] sm:$0xf0] }
  0x58   : > { %v5285_v23 = vld [vmem:[%s5738_s14 + $0x21c] sm:$0xf0]  ;;  %v3680_v39 = vld [vmem:[%s5738_s14 + $0xa0] sm:$0xf0] }
  0x59   : > { %v4126_v24 = vld [vmem:[%s5738_s14 + $0x400] sm:$0xf]  ;;  %v3871_v36 = vor.u32 %v5285_v23, %v3870_v22  ;;  %1909 = vmatpush.bf16.msra.mxu0 %v3615_v32  ;;  %v4003_v22 = vor.u32 %v5313_v7, %v4000_v11  ;;  %v4259_v23 = vor.u32 %v5377_v12, %v4256_v13  ;;  %v4192_v44 = vld [vmem:[%s5738_s14 + $0x4a0] sm:$0xf0]  ;;  %v3846_v7 = vld [vmem:[%s5738_s14 + $0x1c8] sm:$0xf] }
  0x5a   : > { %v5349_v26 = vld [vmem:[%s5738_s14 + $0x41c] sm:$0xf0]  ;;  %v5425_v45 = vld [vmem:[%s5738_s14 + $0x684] sm:$0xf]  ;;  %v5342_v11 = vld [vmem:[%s5738_s14 + $0x3e4] sm:$0xf0] }
  0x5b   : > { %v4382_v27 = vld [vmem:[%s5738_s14 + $0x600] sm:$0xf]  ;;  %v4127_v37 = vor.u32 %v5349_v26, %v4126_v24  ;;  %1922 = vmatpush.bf16.msra.mxu1 %v3871_v36  ;;  %v5241_v24 = vld [vmem:[%s5738_s14 + $0xc4] sm:$0xf]  ;;  %v4358_v12 = vld [vmem:[%s5738_s14 + $0x5c8] sm:$0xf] }
  0x5c   : > { %v5413_v28 = vld [vmem:[%s5738_s14 + $0x61c] sm:$0xf0]  ;;  %v5305_v26 = vld [vmem:[%s5738_s14 + $0x2c4] sm:$0xf]  ;;  %v3715_v35 = vor.u32 %v5241_v24, %v3712_v25  ;;  %v5406_v13 = vld [vmem:[%s5738_s14 + $0x5e4] sm:$0xf0] }
  0x5d   : > { %v4383_v40 = vor.u32 %v5413_v28, %v4382_v27  ;;  %1935 = vmatpush.bf16.msra.mxu2 %v4127_v37  ;;  %1954 = vmatpush.bf16.msrb.mxu0 %v3843_v41  ;;  %v350_v18 = vld [vmem:[%s5733_s10] sm:$0xff]  ;;  %v4515_v27 = vor.u32 %v5441_v14, %v4512_v15  ;;  %v4227_v37 = vor.u32 %v5369_v29, %v4224_v30  ;;  %v3814_v24 = vld [vmem:[%s5738_s14 + $0x188] sm:$0xf] }
  0x5e   : > { %v610_v20 = vunpack.c.l.b16 %v350_v18  ;;  %v611_v21 = vunpack.c.h.b16 %v350_v18  ;;  %v3968_v28 = vld [vmem:[%s5738_s14 + $0x2e0] sm:$0xf0]  ;;  %v4483_v41 = vor.u32 %v5433_v33, %v4480_v34  ;;  %v4614_v18 = vld [vmem:[%s5738_s14 + $0x7c8] sm:$0xf] }
  0x5f   : > { %1948 = vmatpush.bf16.msra.mxu3 %v4383_v40  ;;  %1967 = vmatpush.bf16.msrb.mxu1 %v4099_v42  ;;  %v3971_v36 = vor.u32 %v5305_v26, %v3968_v28  ;;  %v5297_v40 = vld [vmem:[%s5738_s14 + $0x284] sm:$0xf]  ;;  %v5270_v25 = vld [vmem:[%s5738_s14 + $0x1a4] sm:$0xf0] }
  0x60   : > { %1936 = vmatmul.bf16.vlgmr.msra.gmra.mxu2 %v5838_v16  ;;  %v5850_v31 = vpack.c.b16 %v610_v20, %v610_v20  ;;  %v5852_v32 = vpack.c.b16 %v611_v21, %v611_v21  ;;  %v3936_v42 = vld [vmem:[%s5738_s14 + $0x2a0] sm:$0xf0]  ;;  %v3847_v21 = vor.u32 %v5278_v8, %v3846_v7  ;;  %v4070_v26 = vld [vmem:[%s5738_s14 + $0x388] sm:$0xf] }
  0x61   : > { %1980 = vmatpush.bf16.msrb.mxu2 %v4355_v43  ;;  %1955 = vmatpush.bf16.msrb.mxu0 %v3811_v53  ;;  %v5361_v43 = vld [vmem:[%s5738_s14 + $0x484] sm:$0xf]  ;;  %v3939_v48 = vor.u32 %v5297_v40, %v3936_v42  ;;  %v5334_v28 = vld [vmem:[%s5738_s14 + $0x3a4] sm:$0xf0] }
  0x62   : > { %1949 = vmatmul.bf16.vlgmr.msra.gmra.mxu3 %v5840_v17  ;;  %1923 = vmatmul.bf16.vlgmr.msra.gmra.mxu1 %v5852_v32  ;;  %v4448_v46 = vld [vmem:[%s5738_s14 + $0x6a0] sm:$0xf0]  ;;  %v4195_v49 = vor.u32 %v5361_v43, %v4192_v44  ;;  %v4326_v29 = vld [vmem:[%s5738_s14 + $0x588] sm:$0xf] }
  0x63   : > { %1993 = vmatpush.bf16.msrb.mxu3 %v4611_v47  ;;  %1968 = vmatpush.bf16.msrb.mxu1 %v4067_v54  ;;  %v3683_v47 = vor.u32 %v5233_v38, %v3680_v39  ;;  %v5225_v50 = vld [vmem:[%s5738_s14 + $0x44] sm:$0xf]  ;;  %v4451_v53 = vor.u32 %v5425_v45, %v4448_v46  ;;  %v5398_v30 = vld [vmem:[%s5738_s14 + $0x5a4] sm:$0xf0] }
  0x64   : > { %1910 = vmatmul.bf16.vlgmr.msra.gmra.mxu0 %v5850_v31  ;;  %v3648_v51 = vld [vmem:[%s5738_s14 + $0x60] sm:$0xf0]  ;;  %v4582_v33 = vld [vmem:[%s5738_s14 + $0x788] sm:$0xf] }
  0x65   : > { %1981 = vmatpush.bf16.msrb.mxu2 %v4323_v55  ;;  %1956 = vmatpush.bf16.msrb.mxu0 %v3779_v1  ;;  %v5289_v52 = vld [vmem:[%s5738_s14 + $0x244] sm:$0xf]  ;;  %v5462_v34 = vld [vmem:[%s5738_s14 + $0x7a4] sm:$0xf0] }
  0x66   : > { %v3904_v54 = vld [vmem:[%s5738_s14 + $0x260] sm:$0xf0]  ;;  %v3782_v38 = vld [vmem:[%s5738_s14 + $0x148] sm:$0xf] }
  0x67   : > { %1994 = vmatpush.bf16.msrb.mxu3 %v4579_v59  ;;  %1969 = vmatpush.bf16.msrb.mxu1 %v4035_v3  ;;  %v5353_v55 = vld [vmem:[%s5738_s14 + $0x444] sm:$0xf]  ;;  %v3651_v59 = vor.u32 %v5225_v50, %v3648_v51  ;;  %v3907_v62 = vor.u32 %v5289_v52, %v3904_v54  ;;  %v5262_v39 = vld [vmem:[%s5738_s14 + $0x164] sm:$0xf0] }
  0x68   : > { %v4160_v56 = vld [vmem:[%s5738_s14 + $0x460] sm:$0xf0]  ;;  %v4038_v40 = vld [vmem:[%s5738_s14 + $0x348] sm:$0xf] }
  0x69   : > { %1982 = vmatpush.bf16.msrb.mxu2 %v4291_v4  ;;  %1957 = vmatpush.bf16.msrb.mxu0 %v3747_v19  ;;  %v5417_v57 = vld [vmem:[%s5738_s14 + $0x644] sm:$0xf]  ;;  %v4163_v63 = vor.u32 %v5353_v55, %v4160_v56  ;;  %v5470_v19 = vld [vmem:[%s5738_s14 + $0x7e4] sm:$0xf0] }
  0x6a   : > { %v4416_v58 = vld [vmem:[%s5738_s14 + $0x660] sm:$0xf0]  ;;  %v5326_v42 = vld [vmem:[%s5738_s14 + $0x364] sm:$0xf0] }
  0x6b   : > { %1995 = vmatpush.bf16.msrb.mxu3 %v4547_v10  ;;  %1970 = vmatpush.bf16.msrb.mxu1 %v4003_v22  ;;  %v5217_v60 = vld [vmem:[%s5738_s14 + $0x4] sm:$0xf]  ;;  %v4419_v3 = vor.u32 %v5417_v57, %v4416_v58  ;;  %v4103_v22 = vor.u32 %v5342_v11, %v4102_v9  ;;  %v4294_v43 = vld [vmem:[%s5738_s14 + $0x548] sm:$0xf] }
  0x6c   : > { %v3616_v61 = vld [vmem:[%s5738_s14 + $0x20] sm:$0xf0]  ;;  %v5390_v44 = vld [vmem:[%s5738_s14 + $0x564] sm:$0xf0] }
  0x6d   : > { %1983 = vmatpush.bf16.msrb.mxu2 %v4259_v23  ;;  %1958 = vmatpush.bf16.msrb.mxu0 %v3715_v35  ;;  %v5281_v0 = vld [vmem:[%s5738_s14 + $0x204] sm:$0xf]  ;;  %v3619_v10 = vor.u32 %v5217_v60, %v3616_v61  ;;  %v4359_v23 = vor.u32 %v5406_v13, %v4358_v12  ;;  %v3815_v35 = vor.u32 %v5270_v25, %v3814_v24  ;;  %v4550_v45 = vld [vmem:[%s5738_s14 + $0x748] sm:$0xf] }
  0x6e   : > { %v3872_v1 = vld [vmem:[%s5738_s14 + $0x220] sm:$0xf0]  ;;  %v5454_v46 = vld [vmem:[%s5738_s14 + $0x764] sm:$0xf0] }
  0x6f   : > { %1996 = vmatpush.bf16.msrb.mxu3 %v4515_v27  ;;  %1971 = vmatpush.bf16.msrb.mxu1 %v3971_v36  ;;  %v5345_v2 = vld [vmem:[%s5738_s14 + $0x404] sm:$0xf]  ;;  %v3875_v14 = vor.u32 %v5281_v0, %v3872_v1  ;;  %v4615_v27 = vor.u32 %v5470_v19, %v4614_v18  ;;  %v4071_v36 = vor.u32 %v5334_v28, %v4070_v26  ;;  %v3750_v50 = vld [vmem:[%s5738_s14 + $0x108] sm:$0xf] }
  0x70   : > { %v4128_v4 = vld [vmem:[%s5738_s14 + $0x420] sm:$0xf0]  ;;  %v5254_v51 = vld [vmem:[%s5738_s14 + $0x124] sm:$0xf0] }
  0x71   : > { %1984 = vmatpush.bf16.msrb.mxu2 %v4227_v37  ;;  %1959 = vmatpush.bf16.msrb.mxu0 %v3683_v47  ;;  %v5409_v5 = vld [vmem:[%s5738_s14 + $0x604] sm:$0xf]  ;;  %v4131_v15 = vor.u32 %v5345_v2, %v4128_v4  ;;  %v4327_v37 = vor.u32 %v5398_v30, %v4326_v29  ;;  %v3783_v47 = vor.u32 %v5262_v39, %v3782_v38  ;;  %v4006_v52 = vld [vmem:[%s5738_s14 + $0x308] sm:$0xf] }
  0x72   : > { %v4384_v6 = vld [vmem:[%s5738_s14 + $0x620] sm:$0xf0]  ;;  %v5318_v54 = vld [vmem:[%s5738_s14 + $0x324] sm:$0xf0] }
  0x73   : > { %1997 = vmatpush.bf16.msrb.mxu3 %v4483_v41  ;;  %1972 = vmatpush.bf16.msrb.mxu1 %v3939_v48  ;;  %v4387_v20 = vor.u32 %v5409_v5, %v4384_v6  ;;  %v4583_v41 = vor.u32 %v5462_v34, %v4582_v33  ;;  %v4039_v48 = vor.u32 %v5326_v42, %v4038_v40  ;;  %v4262_v55 = vld [vmem:[%s5738_s14 + $0x508] sm:$0xf] }
  0x74   : > { %v5382_v56 = vld [vmem:[%s5738_s14 + $0x524] sm:$0xf0]  ;;  %v4007_v60 = vor.u32 %v5318_v54, %v4006_v52  ;;  %v5402_v52 = vld [vmem:[%s5738_s14 + $0x5cc] sm:$0xf] }
  0x75   : > { %1985 = vmatpush.bf16.msrb.mxu2 %v4195_v49  ;;  %1960 = vmatpush.bf16.msrb.mxu0 %v3651_v59  ;;  %v4295_v49 = vor.u32 %v5390_v44, %v4294_v43  ;;  %v4518_v57 = vld [vmem:[%s5738_s14 + $0x708] sm:$0xf]  ;;  %v3751_v59 = vor.u32 %v5254_v51, %v3750_v50  ;;  %v4263_v61 = vor.u32 %v5382_v56, %v4262_v55  ;;  %v4104_v51 = vld [vmem:[%s5738_s14 + $0x3e8] sm:$0xf0] }
  0x76   : > { %v5446_v58 = vld [vmem:[%s5738_s14 + $0x724] sm:$0xf0]  ;;  %v5466_v56 = vld [vmem:[%s5738_s14 + $0x7cc] sm:$0xf] }
  0x77   : > { %1998 = vmatpush.bf16.msrb.mxu3 %v4451_v53  ;;  %1973 = vmatpush.bf16.msrb.mxu1 %v3907_v62  ;;  %v4551_v53 = vor.u32 %v5454_v46, %v4550_v45  ;;  %v3718_v62 = vld [vmem:[%s5738_s14 + $0xc8] sm:$0xf]  ;;  %v4519_v1 = vor.u32 %v5446_v58, %v4518_v57  ;;  %v4616_v57 = vld [vmem:[%s5738_s14 + $0x7e8] sm:$0xf0] }
  0x78   : > { %v3974_v0 = vld [vmem:[%s5738_s14 + $0x2c8] sm:$0xf] }
  0x79   : > { %1986 = vmatpush.bf16.msrb.mxu2 %v4163_v63  ;;  %1961 = vmatpush.bf16.msrb.mxu0 %v3619_v10  ;;  %v5246_v63 = vld [vmem:[%s5738_s14 + $0xe4] sm:$0xf0] }
  0x7a   : > { %v5310_v2 = vld [vmem:[%s5738_s14 + $0x2e4] sm:$0xf0]  ;;  %v3719_v7 = vor.u32 %v5246_v63, %v3718_v62  ;;  %v5266_v62 = vld [vmem:[%s5738_s14 + $0x18c] sm:$0xf] }
  0x7b   : > { %1999 = vmatpush.bf16.msrb.mxu3 %v4419_v3  ;;  %1974 = vmatpush.bf16.msrb.mxu1 %v3875_v14  ;;  %v4230_v3 = vld [vmem:[%s5738_s14 + $0x4c8] sm:$0xf]  ;;  %v3975_v8 = vor.u32 %v5310_v2, %v3974_v0  ;;  %v3816_v63 = vld [vmem:[%s5738_s14 + $0x1a8] sm:$0xf0] }
  0x7c   : > { %1962 = vmatmul.bf16.vlgmr.msrb.gmra.mxu0 %v5850_v31  ;;  %v5374_v4 = vld [vmem:[%s5738_s14 + $0x4e4] sm:$0xf0]  ;;  %v5330_v0 = vld [vmem:[%s5738_s14 + $0x38c] sm:$0xf] }
  0x7d   : > { %1987 = vmatpush.bf16.msrb.mxu2 %v4131_v15  ;;  %2006 = vmatpush.bf16.msra.mxu0 %v3847_v21  ;;  %v4486_v5 = vld [vmem:[%s5738_s14 + $0x6c8] sm:$0xf]  ;;  %v4231_v9 = vor.u32 %v5374_v4, %v4230_v3  ;;  %v4072_v2 = vld [vmem:[%s5738_s14 + $0x3a8] sm:$0xf0] }
  0x7e   : > { %1975 = vmatmul.bf16.vlgmr.msrb.gmra.mxu1 %v5852_v32  ;;  %v5438_v6 = vld [vmem:[%s5738_s14 + $0x6e4] sm:$0xf0]  ;;  %v5394_v3 = vld [vmem:[%s5738_s14 + $0x58c] sm:$0xf] }
  0x7f   : > { %2000 = vmatpush.bf16.msrb.mxu3 %v4387_v20  ;;  %2019 = vmatpush.bf16.msra.mxu1 %v4103_v22  ;;  %v3686_v10 = vld [vmem:[%s5738_s14 + $0x88] sm:$0xf]  ;;  %v4487_v13 = vor.u32 %v5438_v6, %v4486_v5  ;;  %v4328_v4 = vld [vmem:[%s5738_s14 + $0x5a8] sm:$0xf0] }
  0x80   : > { %1988 = vmatmul.bf16.vlgmr.msrb.gmra.mxu2 %v5838_v16  ;;  %v5238_v11 = vld [vmem:[%s5738_s14 + $0xa4] sm:$0xf0]  ;;  %v5458_v5 = vld [vmem:[%s5738_s14 + $0x78c] sm:$0xf] }
  0x81   : > { %2032 = vmatpush.bf16.msra.mxu2 %v4359_v23  ;;  %2007 = vmatpush.bf16.msra.mxu0 %v3815_v35  ;;  %v3942_v12 = vld [vmem:[%s5738_s14 + $0x288] sm:$0xf]  ;;  %v3687_v21 = vor.u32 %v5238_v11, %v3686_v10  ;;  %v4584_v6 = vld [vmem:[%s5738_s14 + $0x7a8] sm:$0xf0] }
  0x82   : > { %2001 = vmatmul.bf16.vlgmr.msrb.gmra.mxu3 %v5840_v17  ;;  %v5302_v14 = vld [vmem:[%s5738_s14 + $0x2a4] sm:$0xf0]  ;;  %v5258_v10 = vld [vmem:[%s5738_s14 + $0x14c] sm:$0xf] }
  0x83   : > { %2045 = vmatpush.bf16.msra.mxu3 %v4615_v27  ;;  %2020 = vmatpush.bf16.msra.mxu1 %v4071_v36  ;;  %v4198_v15 = vld [vmem:[%s5738_s14 + $0x488] sm:$0xf]  ;;  %v3943_v22 = vor.u32 %v5302_v14, %v3942_v12  ;;  %v3784_v11 = vld [vmem:[%s5738_s14 + $0x168] sm:$0xf0] }
  0x84   : > { %v5366_v18 = vld [vmem:[%s5738_s14 + $0x4a4] sm:$0xf0]  ;;  %v5322_v12 = vld [vmem:[%s5738_s14 + $0x34c] sm:$0xf] }
  0x85   : > { %2033 = vmatpush.bf16.msra.mxu2 %v4327_v37  ;;  %2008 = vmatpush.bf16.msra.mxu0 %v3783_v47  ;;  %v4454_v19 = vld [vmem:[%s5738_s14 + $0x688] sm:$0xf]  ;;  %v4199_v23 = vor.u32 %v5366_v18, %v4198_v15  ;;  %v5274_v47 = vld [vmem:[%s5738_s14 + $0x1cc] sm:$0xf] }
  0x86   : > { %v5430_v20 = vld [vmem:[%s5738_s14 + $0x6a4] sm:$0xf0]  ;;  %v4040_v14 = vld [vmem:[%s5738_s14 + $0x368] sm:$0xf0] }
  0x87   : > { %2046 = vmatpush.bf16.msra.mxu3 %v4583_v41  ;;  %2021 = vmatpush.bf16.msra.mxu1 %v4039_v48  ;;  %v3654_v24 = vld [vmem:[%s5738_s14 + $0x48] sm:$0xf]  ;;  %v4455_v27 = vor.u32 %v5430_v20, %v4454_v19  ;;  %v3848_v48 = vld [vmem:[%s5738_s14 + $0x1e8] sm:$0xf0] }
  0x88   : > { %v5230_v25 = vld [vmem:[%s5738_s14 + $0x64] sm:$0xf0]  ;;  %v5386_v15 = vld [vmem:[%s5738_s14 + $0x54c] sm:$0xf] }
  0x89   : > { %2034 = vmatpush.bf16.msra.mxu2 %v4295_v49  ;;  %2009 = vmatpush.bf16.msra.mxu0 %v3751_v59  ;;  %v3910_v26 = vld [vmem:[%s5738_s14 + $0x248] sm:$0xf]  ;;  %v3655_v35 = vor.u32 %v5230_v25, %v3654_v24  ;;  %v5338_v49 = vld [vmem:[%s5738_s14 + $0x3cc] sm:$0xf]  ;;  %v3851_v59 = vor.u32 %v5274_v47, %v3848_v48 }
  0x8a   : > { %v5294_v28 = vld [vmem:[%s5738_s14 + $0x264] sm:$0xf0]  ;;  %v4296_v18 = vld [vmem:[%s5738_s14 + $0x568] sm:$0xf0] }
  0x8b   : > { %2047 = vmatpush.bf16.msra.mxu3 %v4551_v53  ;;  %2022 = vmatpush.bf16.msra.mxu1 %v4007_v60  ;;  %v4166_v29 = vld [vmem:[%s5738_s14 + $0x448] sm:$0xf]  ;;  %v3911_v38 = vor.u32 %v5294_v28, %v3910_v26  ;;  %v4360_v53 = vld [vmem:[%s5738_s14 + $0x5e8] sm:$0xf0]  ;;  %v4107_v60 = vor.u32 %v5338_v49, %v4104_v51 }
  0x8c   : > { %v5358_v30 = vld [vmem:[%s5738_s14 + $0x464] sm:$0xf0]  ;;  %v5450_v19 = vld [vmem:[%s5738_s14 + $0x74c] sm:$0xf] }
  0x8d   : > { %2035 = vmatpush.bf16.msra.mxu2 %v4263_v61  ;;  %2010 = vmatpush.bf16.msra.mxu0 %v3719_v7  ;;  %v4422_v33 = vld [vmem:[%s5738_s14 + $0x648] sm:$0xf]  ;;  %v4167_v39 = vor.u32 %v5358_v30, %v4166_v29  ;;  %v4363_v61 = vor.u32 %v5402_v52, %v4360_v53  ;;  %v3819_v7 = vor.u32 %v5266_v62, %v3816_v63  ;;  %v4552_v20 = vld [vmem:[%s5738_s14 + $0x768] sm:$0xf0] }
  0x8e   : > { %v5422_v34 = vld [vmem:[%s5738_s14 + $0x664] sm:$0xf0]  ;;  %v5250_v24 = vld [vmem:[%s5738_s14 + $0x10c] sm:$0xf] }
  0x8f   : > { %2048 = vmatpush.bf16.msra.mxu3 %v4519_v1  ;;  %2023 = vmatpush.bf16.msra.mxu1 %v3975_v8  ;;  %v3622_v36 = vld [vmem:[%s5738_s14 + $0x8] sm:$0xf]  ;;  %v4423_v43 = vor.u32 %v5422_v34, %v4422_v33  ;;  %v4619_v1 = vor.u32 %v5466_v56, %v4616_v57  ;;  %v4075_v8 = vor.u32 %v5330_v0, %v4072_v2  ;;  %v3752_v25 = vld [vmem:[%s5738_s14 + $0x128] sm:$0xf0] }
  0x90   : > { %v5222_v37 = vld [vmem:[%s5738_s14 + $0x24] sm:$0xf0]  ;;  %v5314_v26 = vld [vmem:[%s5738_s14 + $0x30c] sm:$0xf] }
  0x91   : > { %2036 = vmatpush.bf16.msra.mxu2 %v4231_v9  ;;  %2011 = vmatpush.bf16.msra.mxu0 %v3687_v21  ;;  %v3878_v40 = vld [vmem:[%s5738_s14 + $0x208] sm:$0xf]  ;;  %v3623_v50 = vor.u32 %v5222_v37, %v3622_v36  ;;  %v4331_v9 = vor.u32 %v5394_v3, %v4328_v4  ;;  %v3787_v21 = vor.u32 %v5258_v10, %v3784_v11  ;;  %v4008_v28 = vld [vmem:[%s5738_s14 + $0x328] sm:$0xf0] }
  0x92   : > { %v5286_v41 = vld [vmem:[%s5738_s14 + $0x224] sm:$0xf0]  ;;  %v5378_v29 = vld [vmem:[%s5738_s14 + $0x50c] sm:$0xf]  ;;  %v4011_v36 = vor.u32 %v5314_v26, %v4008_v28  ;;  %v4366_v26 = vld [vmem:[%s5738_s14 + $0x5d0] sm:$0xf] }
  0x93   : > { %2049 = vmatpush.bf16.msra.mxu3 %v4487_v13  ;;  %2024 = vmatpush.bf16.msra.mxu1 %v3943_v22  ;;  %v4134_v42 = vld [vmem:[%s5738_s14 + $0x408] sm:$0xf]  ;;  %v3879_v54 = vor.u32 %v5286_v41, %v3878_v40  ;;  %v4587_v13 = vor.u32 %v5458_v5, %v4584_v6  ;;  %v4043_v22 = vor.u32 %v5322_v12, %v4040_v14  ;;  %v4264_v30 = vld [vmem:[%s5738_s14 + $0x528] sm:$0xf0] }
  0x94   : > { %v5350_v44 = vld [vmem:[%s5738_s14 + $0x424] sm:$0xf0]  ;;  %v5442_v33 = vld [vmem:[%s5738_s14 + $0x70c] sm:$0xf]  ;;  %v4267_v37 = vor.u32 %v5378_v29, %v4264_v30  ;;  %v4622_v30 = vld [vmem:[%s5738_s14 + $0x7d0] sm:$0xf] }
  0x95   : > { %2037 = vmatpush.bf16.msra.mxu2 %v4199_v23  ;;  %v4390_v45 = vld [vmem:[%s5738_s14 + $0x608] sm:$0xf]  ;;  %2012 = vmatpush.bf16.msra.mxu0 %v3655_v35  ;;  %v4135_v55 = vor.u32 %v5350_v44, %v4134_v42  ;;  %v4299_v23 = vor.u32 %v5386_v15, %v4296_v18  ;;  %v4520_v34 = vld [vmem:[%s5738_s14 + $0x728] sm:$0xf0]  ;;  %v3755_v35 = vor.u32 %v5250_v24, %v3752_v25  ;;  %v5343_v25 = vld [vmem:[%s5738_s14 + $0x3ec] sm:$0xf0] }
  0x96   : > { %v5414_v46 = vld [vmem:[%s5738_s14 + $0x624] sm:$0xf0]  ;;  %v5306_v40 = vld [vmem:[%s5738_s14 + $0x2cc] sm:$0xf]  ;;  %v4523_v41 = vor.u32 %v5442_v33, %v4520_v34  ;;  %v5471_v33 = vld [vmem:[%s5738_s14 + $0x7ec] sm:$0xf0] }
  0x97   : > { %2050 = vmatpush.bf16.msra.mxu3 %v4455_v27  ;;  %2025 = vmatpush.bf16.msra.mxu1 %v3911_v38  ;;  %v4391_v58 = vor.u32 %v5414_v46, %v4390_v45  ;;  %v4555_v27 = vor.u32 %v5450_v19, %v4552_v20  ;;  %v5242_v38 = vld [vmem:[%s5738_s14 + $0xcc] sm:$0xf] }
  0x98   : > { %v3976_v42 = vld [vmem:[%s5738_s14 + $0x2e8] sm:$0xf0] }
  0x99   : > { %2038 = vmatpush.bf16.msra.mxu2 %v4167_v39  ;;  %2013 = vmatpush.bf16.msra.mxu0 %v3623_v50  ;;  %v3720_v39 = vld [vmem:[%s5738_s14 + $0xe8] sm:$0xf0]  ;;  %v3979_v48 = vor.u32 %v5306_v40, %v3976_v42  ;;  %v4078_v40 = vld [vmem:[%s5738_s14 + $0x390] sm:$0xf] }
  0x9a   : > { %v4232_v44 = vld [vmem:[%s5738_s14 + $0x4e8] sm:$0xf0]  ;;  %v3723_v47 = vor.u32 %v5242_v38, %v3720_v39  ;;  %v3822_v38 = vld [vmem:[%s5738_s14 + $0x190] sm:$0xf] }
  0x9b   : > { %2051 = vmatpush.bf16.msra.mxu3 %v4423_v43  ;;  %2026 = vmatpush.bf16.msra.mxu1 %v3879_v54  ;;  %v5370_v43 = vld [vmem:[%s5738_s14 + $0x4cc] sm:$0xf]  ;;  %v5271_v39 = vld [vmem:[%s5738_s14 + $0x1ac] sm:$0xf0] }
  0x9c   : > { %2014 = vmatmul.bf16.vlgmr.msra.gmra.mxu0 %v5850_v31  ;;  %v5434_v45 = vld [vmem:[%s5738_s14 + $0x6cc] sm:$0xf]  ;;  %v4235_v49 = vor.u32 %v5370_v43, %v4232_v44  ;;  %v5335_v42 = vld [vmem:[%s5738_s14 + $0x3ac] sm:$0xf0] }
  0x9d   : > { %2039 = vmatpush.bf16.msra.mxu2 %v4135_v55  ;;  %2058 = vmatpush.bf16.msrb.mxu0 %v3851_v59  ;;  %v4488_v46 = vld [vmem:[%s5738_s14 + $0x6e8] sm:$0xf0]  ;;  %v4334_v43 = vld [vmem:[%s5738_s14 + $0x590] sm:$0xf] }
  0x9e   : > { %2027 = vmatmul.bf16.vlgmr.msra.gmra.mxu1 %v5852_v32  ;;  %v5234_v50 = vld [vmem:[%s5738_s14 + $0x8c] sm:$0xf]  ;;  %v4491_v53 = vor.u32 %v5434_v45, %v4488_v46  ;;  %v5399_v44 = vld [vmem:[%s5738_s14 + $0x5ac] sm:$0xf0] }
  0x9f   : > { %2052 = vmatpush.bf16.msra.mxu3 %v4391_v58  ;;  %2071 = vmatpush.bf16.msrb.mxu1 %v4107_v60  ;;  %v3688_v51 = vld [vmem:[%s5738_s14 + $0xa8] sm:$0xf0]  ;;  %v4590_v45 = vld [vmem:[%s5738_s14 + $0x790] sm:$0xf] }
  0xa0   : > { %2040 = vmatmul.bf16.vlgmr.msra.gmra.mxu2 %v5838_v16  ;;  %v5298_v52 = vld [vmem:[%s5738_s14 + $0x28c] sm:$0xf]  ;;  %v3691_v59 = vor.u32 %v5234_v50, %v3688_v51  ;;  %v5463_v46 = vld [vmem:[%s5738_s14 + $0x7ac] sm:$0xf0] }
  0xa1   : > { %2084 = vmatpush.bf16.msrb.mxu2 %v4363_v61  ;;  %2059 = vmatpush.bf16.msrb.mxu0 %v3819_v7  ;;  %v3944_v54 = vld [vmem:[%s5738_s14 + $0x2a8] sm:$0xf0]  ;;  %v3790_v50 = vld [vmem:[%s5738_s14 + $0x150] sm:$0xf] }
  0xa2   : > { %2053 = vmatmul.bf16.vlgmr.msra.gmra.mxu3 %v5840_v17  ;;  %v5362_v55 = vld [vmem:[%s5738_s14 + $0x48c] sm:$0xf]  ;;  %v3947_v60 = vor.u32 %v5298_v52, %v3944_v54  ;;  %v5263_v51 = vld [vmem:[%s5738_s14 + $0x16c] sm:$0xf0] }
  0xa3   : > { %2097 = vmatpush.bf16.msrb.mxu3 %v4619_v1  ;;  %2072 = vmatpush.bf16.msrb.mxu1 %v4075_v8  ;;  %v4200_v56 = vld [vmem:[%s5738_s14 + $0x4a8] sm:$0xf0]  ;;  %v4046_v52 = vld [vmem:[%s5738_s14 + $0x350] sm:$0xf] }
  0xa4   : > { %v5426_v57 = vld [vmem:[%s5738_s14 + $0x68c] sm:$0xf]  ;;  %v4203_v61 = vor.u32 %v5362_v55, %v4200_v56  ;;  %v5327_v54 = vld [vmem:[%s5738_s14 + $0x36c] sm:$0xf0] }
  0xa5   : > { %2085 = vmatpush.bf16.msrb.mxu2 %v4331_v9  ;;  %2060 = vmatpush.bf16.msrb.mxu0 %v3787_v21  ;;  %v4456_v58 = vld [vmem:[%s5738_s14 + $0x6a8] sm:$0xf0]  ;;  %v3854_v21 = vld [vmem:[%s5738_s14 + $0x1d0] sm:$0xf] }
  0xa6   : > { %v5226_v62 = vld [vmem:[%s5738_s14 + $0x4c] sm:$0xf]  ;;  %v4459_v1 = vor.u32 %v5426_v57, %v4456_v58  ;;  %v4302_v55 = vld [vmem:[%s5738_s14 + $0x550] sm:$0xf] }
  0xa7   : > { %2098 = vmatpush.bf16.msrb.mxu3 %v4587_v13  ;;  %2073 = vmatpush.bf16.msrb.mxu1 %v4043_v22  ;;  %v3656_v63 = vld [vmem:[%s5738_s14 + $0x68] sm:$0xf0]  ;;  %v5279_v22 = vld [vmem:[%s5738_s14 + $0x1ec] sm:$0xf0] }
  0xa8   : > { %v5290_v0 = vld [vmem:[%s5738_s14 + $0x24c] sm:$0xf]  ;;  %v3659_v7 = vor.u32 %v5226_v62, %v3656_v63  ;;  %v5391_v56 = vld [vmem:[%s5738_s14 + $0x56c] sm:$0xf0] }
  0xa9   : > { %2086 = vmatpush.bf16.msrb.mxu2 %v4299_v23  ;;  %2061 = vmatpush.bf16.msrb.mxu0 %v3755_v35  ;;  %v3912_v2 = vld [vmem:[%s5738_s14 + $0x268] sm:$0xf0]  ;;  %v4110_v23 = vld [vmem:[%s5738_s14 + $0x3d0] sm:$0xf]  ;;  %v3855_v35 = vor.u32 %v5279_v22, %v3854_v21 }
  0xaa   : > { %v5354_v3 = vld [vmem:[%s5738_s14 + $0x44c] sm:$0xf]  ;;  %v3915_v10 = vor.u32 %v5290_v0, %v3912_v2  ;;  %v4558_v57 = vld [vmem:[%s5738_s14 + $0x750] sm:$0xf] }
  0xab   : > { %2099 = vmatpush.bf16.msrb.mxu3 %v4555_v27  ;;  %2074 = vmatpush.bf16.msrb.mxu1 %v4011_v36  ;;  %v4168_v4 = vld [vmem:[%s5738_s14 + $0x468] sm:$0xf0]  ;;  %v5407_v27 = vld [vmem:[%s5738_s14 + $0x5ec] sm:$0xf0]  ;;  %v4111_v36 = vor.u32 %v5343_v25, %v4110_v23 }
  0xac   : > { %v5418_v5 = vld [vmem:[%s5738_s14 + $0x64c] sm:$0xf]  ;;  %v4171_v11 = vor.u32 %v5354_v3, %v4168_v4  ;;  %v5455_v58 = vld [vmem:[%s5738_s14 + $0x76c] sm:$0xf0] }
  0xad   : > { %2087 = vmatpush.bf16.msrb.mxu2 %v4267_v37  ;;  %2062 = vmatpush.bf16.msrb.mxu0 %v3723_v47  ;;  %v4424_v6 = vld [vmem:[%s5738_s14 + $0x668] sm:$0xf0]  ;;  %v4367_v37 = vor.u32 %v5407_v27, %v4366_v26  ;;  %v3823_v47 = vor.u32 %v5271_v39, %v3822_v38  ;;  %v3758_v62 = vld [vmem:[%s5738_s14 + $0x110] sm:$0xf] }
  0xae   : > { %v5218_v8 = vld [vmem:[%s5738_s14 + $0xc] sm:$0xf]  ;;  %v4427_v15 = vor.u32 %v5418_v5, %v4424_v6  ;;  %v5255_v63 = vld [vmem:[%s5738_s14 + $0x12c] sm:$0xf0] }
  0xaf   : > { %2100 = vmatpush.bf16.msrb.mxu3 %v4523_v41  ;;  %2075 = vmatpush.bf16.msrb.mxu1 %v3979_v48  ;;  %v3624_v9 = vld [vmem:[%s5738_s14 + $0x28] sm:$0xf0]  ;;  %v4623_v41 = vor.u32 %v5471_v33, %v4622_v30  ;;  %v4079_v48 = vor.u32 %v5335_v42, %v4078_v40  ;;  %v4014_v0 = vld [vmem:[%s5738_s14 + $0x310] sm:$0xf] }
  0xb0   : > { %v5282_v12 = vld [vmem:[%s5738_s14 + $0x20c] sm:$0xf]  ;;  %v3627_v24 = vor.u32 %v5218_v8, %v3624_v9  ;;  %v5319_v2 = vld [vmem:[%s5738_s14 + $0x32c] sm:$0xf0] }
  0xb1   : > { %2088 = vmatpush.bf16.msrb.mxu2 %v4235_v49  ;;  %2063 = vmatpush.bf16.msrb.mxu0 %v3691_v59  ;;  %v3880_v13 = vld [vmem:[%s5738_s14 + $0x228] sm:$0xf0]  ;;  %v4335_v49 = vor.u32 %v5399_v44, %v4334_v43  ;;  %v3791_v59 = vor.u32 %v5263_v51, %v3790_v50  ;;  %v4270_v3 = vld [vmem:[%s5738_s14 + $0x510] sm:$0xf]  ;;  %v4015_v8 = vor.u32 %v5319_v2, %v4014_v0  ;;  %v5403_v0 = vld [vmem:[%s5738_s14 + $0x5d4] sm:$0xf] }
  0xb2   : > { %v5346_v14 = vld [vmem:[%s5738_s14 + $0x40c] sm:$0xf]  ;;  %v3883_v28 = vor.u32 %v5282_v12, %v3880_v13  ;;  %v5383_v4 = vld [vmem:[%s5738_s14 + $0x52c] sm:$0xf0] }
  0xb3   : > { %2101 = vmatpush.bf16.msrb.mxu3 %v4491_v53  ;;  %2076 = vmatpush.bf16.msrb.mxu1 %v3947_v60  ;;  %v4136_v18 = vld [vmem:[%s5738_s14 + $0x428] sm:$0xf0]  ;;  %v4591_v53 = vor.u32 %v5463_v46, %v4590_v45  ;;  %v4047_v60 = vor.u32 %v5327_v54, %v4046_v52  ;;  %v4526_v5 = vld [vmem:[%s5738_s14 + $0x710] sm:$0xf]  ;;  %v4271_v9 = vor.u32 %v5383_v4, %v4270_v3  ;;  %v5467_v4 = vld [vmem:[%s5738_s14 + $0x7d4] sm:$0xf] }
  0xb4   : > { %v5410_v19 = vld [vmem:[%s5738_s14 + $0x60c] sm:$0xf]  ;;  %v4139_v29 = vor.u32 %v5346_v14, %v4136_v18  ;;  %v5447_v6 = vld [vmem:[%s5738_s14 + $0x72c] sm:$0xf0] }
  0xb5   : > { %2089 = vmatpush.bf16.msrb.mxu2 %v4203_v61  ;;  %v4392_v20 = vld [vmem:[%s5738_s14 + $0x628] sm:$0xf0]  ;;  %2064 = vmatpush.bf16.msrb.mxu0 %v3659_v7  ;;  %v4303_v61 = vor.u32 %v5391_v56, %v4302_v55  ;;  %v3759_v7 = vor.u32 %v5255_v63, %v3758_v62  ;;  %v3982_v12 = vld [vmem:[%s5738_s14 + $0x2d0] sm:$0xf]  ;;  %v4527_v13 = vor.u32 %v5447_v6, %v4526_v5  ;;  %v4112_v63 = vld [vmem:[%s5738_s14 + $0x3f0] sm:$0xf0] }
  0xb6   : > { %v4395_v34 = vor.u32 %v5410_v19, %v4392_v20  ;;  %v5311_v14 = vld [vmem:[%s5738_s14 + $0x2ec] sm:$0xf0]  ;;  %v4624_v5 = vld [vmem:[%s5738_s14 + $0x7f0] sm:$0xf0] }
  0xb7   : > { %2102 = vmatpush.bf16.msrb.mxu3 %v4459_v1  ;;  %2077 = vmatpush.bf16.msrb.mxu1 %v3915_v10  ;;  %v4559_v1 = vor.u32 %v5455_v58, %v4558_v57  ;;  %v3726_v10 = vld [vmem:[%s5738_s14 + $0xd0] sm:$0xf]  ;;  %v3983_v22 = vor.u32 %v5311_v14, %v3982_v12  ;;  %v5331_v12 = vld [vmem:[%s5738_s14 + $0x394] sm:$0xf] }
  0xb8   : > { %v5375_v18 = vld [vmem:[%s5738_s14 + $0x4ec] sm:$0xf0]  ;;  %v4080_v14 = vld [vmem:[%s5738_s14 + $0x3b0] sm:$0xf0] }
  0xb9   : > { %2090 = vmatpush.bf16.msrb.mxu2 %v4171_v11  ;;  %2065 = vmatpush.bf16.msrb.mxu0 %v3627_v24  ;;  %v5247_v11 = vld [vmem:[%s5738_s14 + $0xec] sm:$0xf0] }
  0xba   : > { %v4494_v19 = vld [vmem:[%s5738_s14 + $0x6d0] sm:$0xf]  ;;  %v3727_v21 = vor.u32 %v5247_v11, %v3726_v10  ;;  %v5267_v10 = vld [vmem:[%s5738_s14 + $0x194] sm:$0xf] }
  0xbb   : > { %2103 = vmatpush.bf16.msrb.mxu3 %v4427_v15  ;;  %2078 = vmatpush.bf16.msrb.mxu1 %v3883_v28  ;;  %v4238_v15 = vld [vmem:[%s5738_s14 + $0x4d0] sm:$0xf]  ;;  %v3824_v11 = vld [vmem:[%s5738_s14 + $0x1b0] sm:$0xf0] }
  0xbc   : > { %2066 = vmatmul.bf16.vlgmr.msrb.gmra.mxu0 %v5850_v31  ;;  %v5439_v20 = vld [vmem:[%s5738_s14 + $0x6ec] sm:$0xf0]  ;;  %v4239_v23 = vor.u32 %v5375_v18, %v4238_v15  ;;  %v5395_v15 = vld [vmem:[%s5738_s14 + $0x594] sm:$0xf] }
  0xbd   : > { %2091 = vmatpush.bf16.msrb.mxu2 %v4139_v29  ;;  %2110 = vmatpush.bf16.msra.mxu0 %v3855_v35  ;;  %v3694_v24 = vld [vmem:[%s5738_s14 + $0x90] sm:$0xf]  ;;  %v4495_v27 = vor.u32 %v5439_v20, %v4494_v19  ;;  %v4336_v18 = vld [vmem:[%s5738_s14 + $0x5b0] sm:$0xf0] }
  0xbe   : > { %2079 = vmatmul.bf16.vlgmr.msrb.gmra.mxu1 %v5852_v32  ;;  %v5239_v25 = vld [vmem:[%s5738_s14 + $0xac] sm:$0xf0]  ;;  %v5459_v19 = vld [vmem:[%s5738_s14 + $0x794] sm:$0xf] }
  0xbf   : > { %2104 = vmatpush.bf16.msrb.mxu3 %v4395_v34  ;;  %2123 = vmatpush.bf16.msra.mxu1 %v4111_v36  ;;  %v3950_v26 = vld [vmem:[%s5738_s14 + $0x290] sm:$0xf]  ;;  %v3695_v35 = vor.u32 %v5239_v25, %v3694_v24  ;;  %v4592_v20 = vld [vmem:[%s5738_s14 + $0x7b0] sm:$0xf0] }
  0xc0   : > { %2092 = vmatmul.bf16.vlgmr.msrb.gmra.mxu2 %v5838_v16  ;;  %v5303_v28 = vld [vmem:[%s5738_s14 + $0x2ac] sm:$0xf0]  ;;  %v5259_v24 = vld [vmem:[%s5738_s14 + $0x154] sm:$0xf] }
  0xc1   : > { %2136 = vmatpush.bf16.msra.mxu2 %v4367_v37  ;;  %2111 = vmatpush.bf16.msra.mxu0 %v3823_v47  ;;  %v4206_v29 = vld [vmem:[%s5738_s14 + $0x490] sm:$0xf]  ;;  %v3951_v36 = vor.u32 %v5303_v28, %v3950_v26  ;;  %v3792_v25 = vld [vmem:[%s5738_s14 + $0x170] sm:$0xf0] }
  0xc2   : > { %2105 = vmatmul.bf16.vlgmr.msrb.gmra.mxu3 %v5840_v17  ;;  %v5367_v30 = vld [vmem:[%s5738_s14 + $0x4ac] sm:$0xf0]  ;;  %v5323_v26 = vld [vmem:[%s5738_s14 + $0x354] sm:$0xf] }
  0xc3   : > { %2149 = vmatpush.bf16.msra.mxu3 %v4623_v41  ;;  %2124 = vmatpush.bf16.msra.mxu1 %v4079_v48  ;;  %v4462_v33 = vld [vmem:[%s5738_s14 + $0x690] sm:$0xf]  ;;  %v4207_v37 = vor.u32 %v5367_v30, %v4206_v29  ;;  %v4048_v28 = vld [vmem:[%s5738_s14 + $0x370] sm:$0xf0] }
  0xc4   : > { %v5431_v34 = vld [vmem:[%s5738_s14 + $0x6ac] sm:$0xf0]  ;;  %v5387_v29 = vld [vmem:[%s5738_s14 + $0x554] sm:$0xf] }
  0xc5   : > { %2137 = vmatpush.bf16.msra.mxu2 %v4335_v49  ;;  %2112 = vmatpush.bf16.msra.mxu0 %v3791_v59  ;;  %v3662_v38 = vld [vmem:[%s5738_s14 + $0x50] sm:$0xf]  ;;  %v4463_v41 = vor.u32 %v5431_v34, %v4462_v33  ;;  %v5275_v59 = vld [vmem:[%s5738_s14 + $0x1d4] sm:$0xf] }
  0xc6   : > { %v5231_v39 = vld [vmem:[%s5738_s14 + $0x6c] sm:$0xf0]  ;;  %v4304_v30 = vld [vmem:[%s5738_s14 + $0x570] sm:$0xf0] }
  0xc7   : > { %2150 = vmatpush.bf16.msra.mxu3 %v4591_v53  ;;  %2125 = vmatpush.bf16.msra.mxu1 %v4047_v60  ;;  %v3918_v40 = vld [vmem:[%s5738_s14 + $0x250] sm:$0xf]  ;;  %v3663_v47 = vor.u32 %v5231_v39, %v3662_v38  ;;  %v3856_v60 = vld [vmem:[%s5738_s14 + $0x1f0] sm:$0xf0] }
  0xc8   : > { %v5295_v42 = vld [vmem:[%s5738_s14 + $0x26c] sm:$0xf0]  ;;  %v5451_v33 = vld [vmem:[%s5738_s14 + $0x754] sm:$0xf] }
  0xc9   : > { %2138 = vmatpush.bf16.msra.mxu2 %v4303_v61  ;;  %2113 = vmatpush.bf16.msra.mxu0 %v3759_v7  ;;  %v4174_v43 = vld [vmem:[%s5738_s14 + $0x450] sm:$0xf]  ;;  %v3919_v50 = vor.u32 %v5295_v42, %v3918_v40  ;;  %v5339_v61 = vld [vmem:[%s5738_s14 + $0x3d4] sm:$0xf]  ;;  %v3859_v7 = vor.u32 %v5275_v59, %v3856_v60 }
  0xca   : > { %v5359_v44 = vld [vmem:[%s5738_s14 + $0x46c] sm:$0xf0]  ;;  %v4560_v34 = vld [vmem:[%s5738_s14 + $0x770] sm:$0xf0] }
  0xcb   : > { %2151 = vmatpush.bf16.msra.mxu3 %v4559_v1  ;;  %2126 = vmatpush.bf16.msra.mxu1 %v4015_v8  ;;  %v4430_v45 = vld [vmem:[%s5738_s14 + $0x650] sm:$0xf]  ;;  %v4175_v51 = vor.u32 %v5359_v44, %v4174_v43  ;;  %v4368_v1 = vld [vmem:[%s5738_s14 + $0x5f0] sm:$0xf0]  ;;  %v4115_v8 = vor.u32 %v5339_v61, %v4112_v63 }
  0xcc   : > { %v5423_v46 = vld [vmem:[%s5738_s14 + $0x66c] sm:$0xf0]  ;;  %v5251_v38 = vld [vmem:[%s5738_s14 + $0x114] sm:$0xf] }
  0xcd   : > { %2139 = vmatpush.bf16.msra.mxu2 %v4271_v9  ;;  %2114 = vmatpush.bf16.msra.mxu0 %v3727_v21  ;;  %v3630_v48 = vld [vmem:[%s5738_s14 + $0x10] sm:$0xf]  ;;  %v4431_v55 = vor.u32 %v5423_v46, %v4430_v45  ;;  %v4371_v9 = vor.u32 %v5403_v0, %v4368_v1  ;;  %v3827_v21 = vor.u32 %v5267_v10, %v3824_v11  ;;  %v3760_v39 = vld [vmem:[%s5738_s14 + $0x130] sm:$0xf0] }
  0xce   : > { %v5223_v49 = vld [vmem:[%s5738_s14 + $0x2c] sm:$0xf0]  ;;  %v5315_v40 = vld [vmem:[%s5738_s14 + $0x314] sm:$0xf] }
  0xcf   : > { %2152 = vmatpush.bf16.msra.mxu3 %v4527_v13  ;;  %2127 = vmatpush.bf16.msra.mxu1 %v3983_v22  ;;  %v3886_v52 = vld [vmem:[%s5738_s14 + $0x210] sm:$0xf]  ;;  %v3631_v62 = vor.u32 %v5223_v49, %v3630_v48  ;;  %v4627_v13 = vor.u32 %v5467_v4, %v4624_v5  ;;  %v4083_v22 = vor.u32 %v5331_v12, %v4080_v14  ;;  %v4016_v42 = vld [vmem:[%s5738_s14 + $0x330] sm:$0xf0] }
  0xd0   : > { %v5287_v53 = vld [vmem:[%s5738_s14 + $0x22c] sm:$0xf0]  ;;  %v5379_v43 = vld [vmem:[%s5738_s14 + $0x514] sm:$0xf]  ;;  %v4019_v48 = vor.u32 %v5315_v40, %v4016_v42  ;;  %v5280_v42 = vld [vmem:[%s5738_s14 + $0x1f4] sm:$0xf0] }
  0xd1   : > { %2140 = vmatpush.bf16.msra.mxu2 %v4239_v23  ;;  %2115 = vmatpush.bf16.msra.mxu0 %v3695_v35  ;;  %v4142_v54 = vld [vmem:[%s5738_s14 + $0x410] sm:$0xf]  ;;  %v3887_v2 = vor.u32 %v5287_v53, %v3886_v52  ;;  %v4339_v23 = vor.u32 %v5395_v15, %v4336_v18  ;;  %v3795_v35 = vor.u32 %v5259_v24, %v3792_v25  ;;  %v4272_v44 = vld [vmem:[%s5738_s14 + $0x530] sm:$0xf0] }
  0xd2   : > { %v5351_v56 = vld [vmem:[%s5738_s14 + $0x42c] sm:$0xf0]  ;;  %v5443_v45 = vld [vmem:[%s5738_s14 + $0x714] sm:$0xf]  ;;  %v4275_v49 = vor.u32 %v5379_v43, %v4272_v44  ;;  %v4118_v43 = vld [vmem:[%s5738_s14 + $0x3d8] sm:$0xf] }
  0xd3   : > { %2153 = vmatpush.bf16.msra.mxu3 %v4495_v27  ;;  %2128 = vmatpush.bf16.msra.mxu1 %v3951_v36  ;;  %v4398_v57 = vld [vmem:[%s5738_s14 + $0x610] sm:$0xf]  ;;  %v4143_v3 = vor.u32 %v5351_v56, %v4142_v54  ;;  %v4595_v27 = vor.u32 %v5459_v19, %v4592_v20  ;;  %v4051_v36 = vor.u32 %v5323_v26, %v4048_v28  ;;  %v4528_v46 = vld [vmem:[%s5738_s14 + $0x730] sm:$0xf0] }
  0xd4   : > { %v5415_v58 = vld [vmem:[%s5738_s14 + $0x62c] sm:$0xf0]  ;;  %v5307_v52 = vld [vmem:[%s5738_s14 + $0x2d4] sm:$0xf]  ;;  %v4531_v53 = vor.u32 %v5443_v45, %v4528_v46  ;;  %v5344_v46 = vld [vmem:[%s5738_s14 + $0x3f4] sm:$0xf0] }
  0xd5   : > { %2141 = vmatpush.bf16.msra.mxu2 %v4207_v37  ;;  %2116 = vmatpush.bf16.msra.mxu0 %v3663_v47  ;;  %v4399_v6 = vor.u32 %v5415_v58, %v4398_v57  ;;  %v4307_v37 = vor.u32 %v5387_v29, %v4304_v30  ;;  %v3763_v47 = vor.u32 %v5251_v38, %v3760_v39  ;;  %v3984_v54 = vld [vmem:[%s5738_s14 + $0x2f0] sm:$0xf0]  ;;  %v3862_v39 = vld [vmem:[%s5738_s14 + $0x1d8] sm:$0xf] }
  0xd6   : > { %v4240_v56 = vld [vmem:[%s5738_s14 + $0x4f0] sm:$0xf0]  ;;  %v3987_v60 = vor.u32 %v5307_v52, %v3984_v54  ;;  %v4630_v52 = vld [vmem:[%s5738_s14 + $0x7d8] sm:$0xf] }
  0xd7   : > { %2154 = vmatpush.bf16.msra.mxu3 %v4463_v41  ;;  %2129 = vmatpush.bf16.msra.mxu1 %v3919_v50  ;;  %v4563_v41 = vor.u32 %v5451_v33, %v4560_v34  ;;  %v5243_v50 = vld [vmem:[%s5738_s14 + $0xd4] sm:$0xf] }
  0xd8   : > { %v5435_v57 = vld [vmem:[%s5738_s14 + $0x6d4] sm:$0xf] }
  0xd9   : > { %2142 = vmatpush.bf16.msra.mxu2 %v4175_v51  ;;  %2117 = vmatpush.bf16.msra.mxu0 %v3631_v62  ;;  %v3728_v51 = vld [vmem:[%s5738_s14 + $0xf0] sm:$0xf0] }
  0xda   : > { %v4496_v58 = vld [vmem:[%s5738_s14 + $0x6f0] sm:$0xf0]  ;;  %v3731_v59 = vor.u32 %v5243_v50, %v3728_v51 }
  0xdb   : > { %2155 = vmatpush.bf16.msra.mxu3 %v4431_v55  ;;  %2130 = vmatpush.bf16.msra.mxu1 %v3887_v2  ;;  %v5371_v55 = vld [vmem:[%s5738_s14 + $0x4d4] sm:$0xf]  ;;  %v4499_v1 = vor.u32 %v5435_v57, %v4496_v58  ;;  %v3830_v57 = vld [vmem:[%s5738_s14 + $0x198] sm:$0xf] }
  0xdc   : > { %2118 = vmatmul.bf16.vlgmr.msra.gmra.mxu0 %v5850_v31  ;;  %v4243_v61 = vor.u32 %v5371_v55, %v4240_v56  ;;  %v5235_v62 = vld [vmem:[%s5738_s14 + $0x94] sm:$0xf]  ;;  %v3863_v56 = vor.u32 %v5280_v42, %v3862_v39  ;;  %v3990_v42 = vld [vmem:[%s5738_s14 + $0x2d8] sm:$0xf] }
  0xdd   : > { %2143 = vmatpush.bf16.msra.mxu2 %v4143_v3  ;;  %2162 = vmatpush.bf16.msrb.mxu0 %v3859_v7  ;;  %v3696_v63 = vld [vmem:[%s5738_s14 + $0xb0] sm:$0xf0] }
  0xde   : > { %2131 = vmatmul.bf16.vlgmr.msra.gmra.mxu1 %v5852_v32  ;;  %v5299_v0 = vld [vmem:[%s5738_s14 + $0x294] sm:$0xf]  ;;  %v3699_v7 = vor.u32 %v5235_v62, %v3696_v63  ;;  %v4086_v62 = vld [vmem:[%s5738_s14 + $0x398] sm:$0xf] }
  0xdf   : > { %2156 = vmatpush.bf16.msra.mxu3 %v4399_v6  ;;  %2175 = vmatpush.bf16.msrb.mxu1 %v4115_v8  ;;  %v3952_v2 = vld [vmem:[%s5738_s14 + $0x2b0] sm:$0xf0]  ;;  %v5336_v63 = vld [vmem:[%s5738_s14 + $0x3b4] sm:$0xf0] }
  0xe0   : > { %2144 = vmatmul.bf16.vlgmr.msra.gmra.mxu2 %v5838_v16  ;;  %v5363_v3 = vld [vmem:[%s5738_s14 + $0x494] sm:$0xf]  ;;  %v3955_v8 = vor.u32 %v5299_v0, %v3952_v2  ;;  %v4342_v2 = vld [vmem:[%s5738_s14 + $0x598] sm:$0xf] }
  0xe1   : > { %2188 = vmatpush.bf16.msrb.mxu2 %v4371_v9  ;;  %2163 = vmatpush.bf16.msrb.mxu0 %v3827_v21  ;;  %v4208_v4 = vld [vmem:[%s5738_s14 + $0x4b0] sm:$0xf0] }
  0xe2   : > { %2157 = vmatmul.bf16.vlgmr.msra.gmra.mxu3 %v5840_v17  ;;  %v5427_v5 = vld [vmem:[%s5738_s14 + $0x694] sm:$0xf]  ;;  %v4211_v9 = vor.u32 %v5363_v3, %v4208_v4  ;;  %v5400_v3 = vld [vmem:[%s5738_s14 + $0x5b4] sm:$0xf0] }
  0xe3   : > { %2201 = vmatpush.bf16.msrb.mxu3 %v4627_v13  ;;  %2176 = vmatpush.bf16.msrb.mxu1 %v4083_v22  ;;  %v4464_v6 = vld [vmem:[%s5738_s14 + $0x6b0] sm:$0xf0]  ;;  %v1924_v13 = vpop.f32.mrf.mxu1  ;;  %v1911_v22 = vpop.f32.mrf.mxu0  ;;  %v4598_v4 = vld [vmem:[%s5738_s14 + $0x798] sm:$0xf] }
  0xe4   : > { %v5227_v10 = vld [vmem:[%s5738_s14 + $0x54] sm:$0xf]  ;;  %v4467_v14 = vor.u32 %v5427_v5, %v4464_v6  ;;  %v5464_v5 = vld [vmem:[%s5738_s14 + $0x7b4] sm:$0xf0] }
  0xe5   : > { %2189 = vmatpush.bf16.msrb.mxu2 %v4339_v23  ;;  %2164 = vmatpush.bf16.msrb.mxu0 %v3795_v35  ;;  %v3664_v11 = vld [vmem:[%s5738_s14 + $0x70] sm:$0xf0]  ;;  %v1937_v35 = vpop.f32.mrf.mxu2 }
  0xe6   : > { %v5291_v12 = vld [vmem:[%s5738_s14 + $0x254] sm:$0xf]  ;;  %v3667_v23 = vor.u32 %v5227_v10, %v3664_v11  ;;  %v4343_v10 = vor.u32 %v5400_v3, %v4342_v2  ;;  %v3798_v11 = vld [vmem:[%s5738_s14 + $0x158] sm:$0xf]  ;;  %v343_v2 = vld [vmem:[#allocation2] sm:$0xff] }
  0xe7   : > { %2202 = vmatpush.bf16.msrb.mxu3 %v4595_v27  ;;  %2177 = vmatpush.bf16.msrb.mxu1 %v4051_v36  ;;  %v3920_v15 = vld [vmem:[%s5738_s14 + $0x270] sm:$0xf0]  ;;  %v1925_v27 = vadd.f32 %v1924_v13, %v1911_v22  ;;  %v4054_v13 = vld [vmem:[%s5738_s14 + $0x358] sm:$0xf] }
  0xe8   : > { %v5355_v18 = vld [vmem:[%s5738_s14 + $0x454] sm:$0xf]  ;;  %v3923_v28 = vor.u32 %v5291_v12, %v3920_v15  ;;  %v5264_v12 = vld [vmem:[%s5738_s14 + $0x174] sm:$0xf0] }
  0xe9   : > { %2190 = vmatpush.bf16.msrb.mxu2 %v4307_v37  ;;  %2165 = vmatpush.bf16.msrb.mxu0 %v3763_v47  ;;  %v4176_v19 = vld [vmem:[%s5738_s14 + $0x470] sm:$0xf0]  ;;  %v1938_v40 = vadd.f32 %v1937_v35, %v1925_v27  ;;  %v4374_v47 = vld [vmem:[%s5738_s14 + $0x5d8] sm:$0xf]  ;;  %v3799_v22 = vor.u32 %v5264_v12, %v3798_v11 }
  0xea   : > { %v5419_v20 = vld [vmem:[%s5738_s14 + $0x654] sm:$0xf]  ;;  %v4179_v29 = vor.u32 %v5355_v18, %v4176_v19  ;;  %v5328_v15 = vld [vmem:[%s5738_s14 + $0x374] sm:$0xf0] }
  0xeb   : > { %2203 = vmatpush.bf16.msrb.mxu3 %v4563_v41  ;;  %2178 = vmatpush.bf16.msrb.mxu1 %v4019_v48  ;;  %v4432_v21 = vld [vmem:[%s5738_s14 + $0x670] sm:$0xf0]  ;;  %v1950_v41 = vpop.f32.mrf.mxu3  ;;  %v5408_v48 = vld [vmem:[%s5738_s14 + $0x5f4] sm:$0xf0]  ;;  %v1926_v54 = vpop.f32.mrf.mxu1 }
  0xec   : > { %v5219_v24 = vld [vmem:[%s5738_s14 + $0x14] sm:$0xf]  ;;  %v4435_v36 = vor.u32 %v5419_v20, %v4432_v21  ;;  %v1913_v0 = vpop.f32.mrf.mxu0  ;;  %v4310_v18 = vld [vmem:[%s5738_s14 + $0x558] sm:$0xf] }
  0xed   : > { %2191 = vmatpush.bf16.msrb.mxu2 %v4275_v49  ;;  %2166 = vmatpush.bf16.msrb.mxu0 %v3731_v59  ;;  %v3632_v25 = vld [vmem:[%s5738_s14 + $0x30] sm:$0xf0]  ;;  %v1951_v49 = vadd.f32 %v1950_v41, %v1938_v40  ;;  %v4119_v59 = vor.u32 %v5344_v46, %v4118_v43  ;;  %v1939_v6 = vpop.f32.mrf.mxu2  ;;  %v5392_v19 = vld [vmem:[%s5738_s14 + $0x574] sm:$0xf0] }
  0xee   : > { %v5283_v26 = vld [vmem:[%s5738_s14 + $0x214] sm:$0xf]  ;;  %v3635_v45 = vor.u32 %v5219_v24, %v3632_v25  ;;  %v4566_v20 = vld [vmem:[%s5738_s14 + $0x758] sm:$0xf]  ;;  %v4311_v24 = vor.u32 %v5392_v19, %v4310_v18 }
  0xef   : > { %2204 = vmatpush.bf16.msrb.mxu3 %v4531_v53  ;;  %2179 = vmatpush.bf16.msrb.mxu1 %v3987_v60  ;;  %v3888_v30 = vld [vmem:[%s5738_s14 + $0x230] sm:$0xf0]  ;;  %v5472_v53 = vld [vmem:[%s5738_s14 + $0x7f4] sm:$0xf0]  ;;  %v4375_v60 = vor.u32 %v5408_v48, %v4374_v47 }
  0xf0   : > { %v5347_v33 = vld [vmem:[%s5738_s14 + $0x414] sm:$0xf]  ;;  %v3891_v50 = vor.u32 %v5283_v26, %v3888_v30  ;;  %v5456_v21 = vld [vmem:[%s5738_s14 + $0x774] sm:$0xf0] }
  0xf1   : > { %2192 = vmatpush.bf16.msrb.mxu2 %v4243_v61  ;;  %2167 = vmatpush.bf16.msrb.mxu0 %v3699_v7  ;;  %v4144_v34 = vld [vmem:[%s5738_s14 + $0x430] sm:$0xf0]  ;;  %v5272_v61 = vld [vmem:[%s5738_s14 + $0x1b4] sm:$0xf0] }
  0xf2   : > { %v5411_v37 = vld [vmem:[%s5738_s14 + $0x614] sm:$0xf]  ;;  %v4147_v51 = vor.u32 %v5347_v33, %v4144_v34  ;;  %v3831_v7 = vor.u32 %v5272_v61, %v3830_v57  ;;  %v3766_v25 = vld [vmem:[%s5738_s14 + $0x118] sm:$0xf] }
  0xf3   : > { %2205 = vmatpush.bf16.msrb.mxu3 %v4499_v1  ;;  %2180 = vmatpush.bf16.msrb.mxu1 %v3955_v8  ;;  %v4400_v38 = vld [vmem:[%s5738_s14 + $0x630] sm:$0xf0]  ;;  %v4631_v1 = vor.u32 %v5472_v53, %v4630_v52  ;;  %v1952_v8 = vpop.f32.mrf.mxu3  ;;  %v5256_v26 = vld [vmem:[%s5738_s14 + $0x134] sm:$0xf0] }
  0xf4   : > { %v342_v44 = vld [vmem:[#allocation2 + $0x30] sm:$0xff]  ;;  %v4403_v55 = vor.u32 %v5411_v37, %v4400_v38  ;;  %v4022_v27 = vld [vmem:[%s5738_s14 + $0x318] sm:$0xf] }
  0xf5   : > { %2193 = vmatpush.bf16.msrb.mxu2 %v4211_v9  ;;  %2168 = vmatpush.bf16.msrb.mxu0 %v3667_v23  ;;  %v2318_v58 = vadd.f32 %v1951_v49, %v342_v44  ;;  %v4087_v9 = vor.u32 %v5336_v63, %v4086_v62  ;;  %v4055_v23 = vor.u32 %v5328_v15, %v4054_v13  ;;  %v4278_v30 = vld [vmem:[%s5738_s14 + $0x518] sm:$0xf] }
  0xf6   : > { %v5384_v33 = vld [vmem:[%s5738_s14 + $0x534] sm:$0xf0] }
  0xf7   : > { %2206 = vmatpush.bf16.msrb.mxu3 %v4467_v14  ;;  %2181 = vmatpush.bf16.msrb.mxu1 %v3923_v28  ;;  %2326 = vst [vmem:[#allocation2 + $0x30] sm:$0xff] %v2318_v58  ;;  %v4599_v14 = vor.u32 %v5464_v5, %v4598_v4  ;;  %v4567_v28 = vor.u32 %v5456_v21, %v4566_v20  ;;  %v4534_v34 = vld [vmem:[%s5738_s14 + $0x718] sm:$0xf] }
  0xf8   : > { %v5448_v35 = vld [vmem:[%s5738_s14 + $0x734] sm:$0xf0]  ;;  %v4279_v39 = vor.u32 %v5384_v33, %v4278_v30 }
  0xf9   : > { %2194 = vmatpush.bf16.msrb.mxu2 %v4179_v29  ;;  %2169 = vmatpush.bf16.msrb.mxu0 %v3635_v45  ;;  %v5320_v29 = vld [vmem:[%s5738_s14 + $0x334] sm:$0xf0]  ;;  %v1963_v37 = vpop.f32.mrf.mxu0  ;;  %v4535_v44 = vor.u32 %v5448_v35, %v4534_v34 }
  0xfa   : > { %v4023_v38 = vor.u32 %v5320_v29, %v4022_v27  ;;  %v3734_v40 = vld [vmem:[%s5738_s14 + $0xd8] sm:$0xf] }
  0xfb   : > { %2207 = vmatpush.bf16.msrb.mxu3 %v4435_v36  ;;  %2182 = vmatpush.bf16.msrb.mxu1 %v3891_v50  ;;  %v3767_v36 = vor.u32 %v5256_v26, %v3766_v25  ;;  %v5248_v41 = vld [vmem:[%s5738_s14 + $0xf4] sm:$0xf0]  ;;  %v1976_v43 = vpop.f32.mrf.mxu1 }
  0xfc   : > { %2170 = vmatmul.bf16.vlgmr.msrb.gmra.mxu0 %v5850_v31  ;;  %v5312_v45 = vld [vmem:[%s5738_s14 + $0x2f4] sm:$0xf0]  ;;  %v1977_v48 = vadd.f32 %v1976_v43, %v1963_v37  ;;  %v5276_v37 = vld [vmem:[%s5738_s14 + $0x1dc] sm:$0xf] }
  0xfd   : > { %2195 = vmatpush.bf16.msrb.mxu2 %v4147_v51  ;;  %2214 = vmatpush.bf16.msra.mxu0 %v3863_v56  ;;  %v4246_v46 = vld [vmem:[%s5738_s14 + $0x4d8] sm:$0xf]  ;;  %v3735_v51 = vor.u32 %v5248_v41, %v3734_v40  ;;  %v3991_v52 = vor.u32 %v5312_v45, %v3990_v42  ;;  %v4120_v41 = vld [vmem:[%s5738_s14 + $0x3f8] sm:$0xf0] }
  0xfe   : > { %2183 = vmatmul.bf16.vlgmr.msrb.gmra.mxu1 %v5852_v32  ;;  %v5376_v47 = vld [vmem:[%s5738_s14 + $0x4f4] sm:$0xf0]  ;;  %v5404_v42 = vld [vmem:[%s5738_s14 + $0x5dc] sm:$0xf] }
  0xff   : > { %2208 = vmatpush.bf16.msrb.mxu3 %v4403_v55  ;;  %2227 = vmatpush.bf16.msra.mxu1 %v4119_v59  ;;  %v4502_v49 = vld [vmem:[%s5738_s14 + $0x6d8] sm:$0xf]  ;;  %v4247_v53 = vor.u32 %v5376_v47, %v4246_v46  ;;  %v4376_v43 = vld [vmem:[%s5738_s14 + $0x5f8] sm:$0xf0] }
 0x100   : > { %2196 = vmatmul.bf16.vlgmr.msrb.gmra.mxu2 %v5838_v16  ;;  %v5440_v50 = vld [vmem:[%s5738_s14 + $0x6f4] sm:$0xf0]  ;;  %v5468_v46 = vld [vmem:[%s5738_s14 + $0x7dc] sm:$0xf] }
 0x101   : > { %2240 = vmatpush.bf16.msra.mxu2 %v4375_v60  ;;  %2215 = vmatpush.bf16.msra.mxu0 %v3831_v7  ;;  %v3702_v54 = vld [vmem:[%s5738_s14 + $0x98] sm:$0xf]  ;;  %v4503_v58 = vor.u32 %v5440_v50, %v4502_v49  ;;  %v1965_v5 = vpop.f32.mrf.mxu0  ;;  %v4632_v47 = vld [vmem:[%s5738_s14 + $0x7f8] sm:$0xf0] }
 0x102   : > { %2209 = vmatmul.bf16.vlgmr.msrb.gmra.mxu3 %v5840_v17  ;;  %v5240_v55 = vld [vmem:[%s5738_s14 + $0xb4] sm:$0xf0]  ;;  %v5388_v5 = vld [vmem:[%s5738_s14 + $0x55c] sm:$0xf] }
 0x103   : > { %2253 = vmatpush.bf16.msra.mxu3 %v4631_v1  ;;  %2228 = vmatpush.bf16.msra.mxu1 %v4087_v9  ;;  %v3958_v56 = vld [vmem:[%s5738_s14 + $0x298] sm:$0xf]  ;;  %v1989_v57 = vpop.f32.mrf.mxu2  ;;  %v3703_v3 = vor.u32 %v5240_v55, %v3702_v54  ;;  %v1978_v11 = vpop.f32.mrf.mxu1  ;;  %v5332_v54 = vld [vmem:[%s5738_s14 + $0x39c] sm:$0xf]  ;;  %v4635_v55 = vor.u32 %v5468_v46, %v4632_v47 }
 0x104   : > { %v5304_v59 = vld [vmem:[%s5738_s14 + $0x2b4] sm:$0xf0]  ;;  %v1990_v62 = vadd.f32 %v1989_v57, %v1977_v48  ;;  %v5396_v57 = vld [vmem:[%s5738_s14 + $0x59c] sm:$0xf] }
 0x105   : > { %2241 = vmatpush.bf16.msra.mxu2 %v4343_v10  ;;  %2216 = vmatpush.bf16.msra.mxu0 %v3799_v22  ;;  %v4214_v60 = vld [vmem:[%s5738_s14 + $0x498] sm:$0xf]  ;;  %v2002_v63 = vpop.f32.mrf.mxu3  ;;  %v3959_v6 = vor.u32 %v5304_v59, %v3958_v56  ;;  %v4088_v56 = vld [vmem:[%s5738_s14 + $0x3b8] sm:$0xf0] }
 0x106   : > { %v5368_v61 = vld [vmem:[%s5738_s14 + $0x4b4] sm:$0xf0]  ;;  %v2003_v4 = vadd.f32 %v2002_v63, %v1990_v62  ;;  %v5460_v59 = vld [vmem:[%s5738_s14 + $0x79c] sm:$0xf]  ;;  %v4091_v62 = vor.u32 %v5332_v54, %v4088_v56 }
 0x107   : > { %2254 = vmatpush.bf16.msra.mxu3 %v4599_v14  ;;  %2229 = vmatpush.bf16.msra.mxu1 %v4055_v23  ;;  %v4470_v0 = vld [vmem:[%s5738_s14 + $0x698] sm:$0xf]  ;;  %v4215_v7 = vor.u32 %v5368_v61, %v4214_v60  ;;  %v4600_v60 = vld [vmem:[%s5738_s14 + $0x7b8] sm:$0xf0] }
 0x108   : > { %v5432_v1 = vld [vmem:[%s5738_s14 + $0x6b4] sm:$0xf0]  ;;  %v2319_v18 = vadd.f32 %v2003_v4, %v343_v2  ;;  %v5324_v2 = vld [vmem:[%s5738_s14 + $0x35c] sm:$0xf] }
 0x109   : > { %2242 = vmatpush.bf16.msra.mxu2 %v4311_v24  ;;  %2217 = vmatpush.bf16.msra.mxu0 %v3767_v36  ;;  %v3670_v8 = vld [vmem:[%s5738_s14 + $0x58] sm:$0xf]  ;;  %v4471_v12 = vor.u32 %v5432_v1, %v4470_v0  ;;  %v5260_v0 = vld [vmem:[%s5738_s14 + $0x15c] sm:$0xf] }
 0x10a   : > { %v5232_v9 = vld [vmem:[%s5738_s14 + $0x74] sm:$0xf0]  ;;  %2327 = vst [vmem:[#allocation2] sm:$0xff] %v2319_v18  ;;  %v3800_v1 = vld [vmem:[%s5738_s14 + $0x178] sm:$0xf0] }
 0x10b   : > { %2255 = vmatpush.bf16.msra.mxu3 %v4567_v28  ;;  %2230 = vmatpush.bf16.msra.mxu1 %v4023_v38  ;;  %v3926_v10 = vld [vmem:[%s5738_s14 + $0x258] sm:$0xf]  ;;  %v3671_v21 = vor.u32 %v5232_v9, %v3670_v8  ;;  %v1991_v29 = vpop.f32.mrf.mxu2  ;;  %v3864_v38 = vld [vmem:[%s5738_s14 + $0x1f8] sm:$0xf0]  ;;  %v3803_v9 = vor.u32 %v5260_v0, %v3800_v1 }
 0x10c   : > { %v5296_v13 = vld [vmem:[%s5738_s14 + $0x274] sm:$0xf0]  ;;  %v3867_v49 = vor.u32 %v5276_v37, %v3864_v38  ;;  %v4056_v4 = vld [vmem:[%s5738_s14 + $0x378] sm:$0xf0] }
 0x10d   : > { %2243 = vmatpush.bf16.msra.mxu2 %v4279_v39  ;;  %2218 = vmatpush.bf16.msra.mxu0 %v3735_v51  ;;  %v4182_v14 = vld [vmem:[%s5738_s14 + $0x458] sm:$0xf]  ;;  %v3927_v24 = vor.u32 %v5296_v13, %v3926_v10  ;;  %v2004_v36 = vpop.f32.mrf.mxu3  ;;  %v5340_v39 = vld [vmem:[%s5738_s14 + $0x3dc] sm:$0xf]  ;;  %v4379_v51 = vor.u32 %v5404_v42, %v4376_v43  ;;  %v4059_v10 = vor.u32 %v5324_v2, %v4056_v4 }
 0x10e   : > { %v5360_v15 = vld [vmem:[%s5738_s14 + $0x474] sm:$0xf0]  ;;  %v4123_v50 = vor.u32 %v5340_v39, %v4120_v41  ;;  %v4568_v8 = vld [vmem:[%s5738_s14 + $0x778] sm:$0xf0] }
 0x10f   : > { %2256 = vmatpush.bf16.msra.mxu3 %v4535_v44  ;;  %2231 = vmatpush.bf16.msra.mxu1 %v3991_v52  ;;  %v4438_v19 = vld [vmem:[%s5738_s14 + $0x658] sm:$0xf]  ;;  %v4183_v25 = vor.u32 %v5360_v15, %v4182_v14  ;;  %v5268_v52 = vld [vmem:[%s5738_s14 + $0x19c] sm:$0xf] }
 0x110   : > { %v5424_v20 = vld [vmem:[%s5738_s14 + $0x674] sm:$0xf0]  ;;  %v3768_v13 = vld [vmem:[%s5738_s14 + $0x138] sm:$0xf0] }
 0x111   : > { %2244 = vmatpush.bf16.msra.mxu2 %v4247_v53  ;;  %2219 = vmatpush.bf16.msra.mxu0 %v3703_v3  ;;  %v3638_v22 = vld [vmem:[%s5738_s14 + $0x18] sm:$0xf]  ;;  %v4439_v30 = vor.u32 %v5424_v20, %v4438_v19  ;;  %v3832_v53 = vld [vmem:[%s5738_s14 + $0x1b8] sm:$0xf0]  ;;  %v4603_v3 = vor.u32 %v5460_v59, %v4600_v60 }
 0x112   : > { %v5224_v23 = vld [vmem:[%s5738_s14 + $0x34] sm:$0xf0]  ;;  %v3835_v61 = vor.u32 %v5268_v52, %v3832_v53  ;;  %v5316_v14 = vld [vmem:[%s5738_s14 + $0x31c] sm:$0xf] }
 0x113   : > { %2257 = vmatpush.bf16.msra.mxu3 %v4503_v58  ;;  %2232 = vmatpush.bf16.msra.mxu1 %v3959_v6  ;;  %v3894_v26 = vld [vmem:[%s5738_s14 + $0x218] sm:$0xf]  ;;  %v3639_v40 = vor.u32 %v5224_v23, %v3638_v22  ;;  %v4344_v58 = vld [vmem:[%s5738_s14 + $0x5b8] sm:$0xf0] }
 0x114   : > { %v5288_v27 = vld [vmem:[%s5738_s14 + $0x234] sm:$0xf0]  ;;  %v4347_v63 = vor.u32 %v5396_v57, %v4344_v58  ;;  %v4312_v6 = vld [vmem:[%s5738_s14 + $0x578] sm:$0xf0] }
 0x115   : > { %2245 = vmatpush.bf16.msra.mxu2 %v4215_v7  ;;  %v4150_v28 = vld [vmem:[%s5738_s14 + $0x418] sm:$0xf]  ;;  %2220 = vmatpush.bf16.msra.mxu0 %v3671_v21  ;;  %v3895_v44 = vor.u32 %v5288_v27, %v3894_v26  ;;  %v5452_v7 = vld [vmem:[%s5738_s14 + $0x75c] sm:$0xf]  ;;  %v4315_v11 = vor.u32 %v5388_v5, %v4312_v6 }
 0x116   : > { %v5352_v33 = vld [vmem:[%s5738_s14 + $0x434] sm:$0xf0]  ;;  %v4571_v15 = vor.u32 %v5452_v7, %v4568_v8  ;;  %v4024_v18 = vld [vmem:[%s5738_s14 + $0x338] sm:$0xf0] }
 0x117   : > { %2258 = vmatpush.bf16.msra.mxu3 %v4471_v12  ;;  %v4406_v34 = vld [vmem:[%s5738_s14 + $0x618] sm:$0xf]  ;;  %2233 = vmatpush.bf16.msra.mxu1 %v3927_v24  ;;  %v4151_v45 = vor.u32 %v5352_v33, %v4150_v28  ;;  %v5252_v12 = vld [vmem:[%s5738_s14 + $0x11c] sm:$0xf] }
 0x118   : > { %v5416_v35 = vld [vmem:[%s5738_s14 + $0x634] sm:$0xf0]  ;;  %v5380_v19 = vld [vmem:[%s5738_s14 + $0x51c] sm:$0xf]  ;;  %v3771_v23 = vor.u32 %v5252_v12, %v3768_v13 }
 0x119   : > { %2246 = vmatpush.bf16.msra.mxu2 %v4183_v25  ;;  %v4407_v48 = vor.u32 %v5416_v35, %v4406_v34  ;;  %2221 = vmatpush.bf16.msra.mxu0 %v3639_v40  ;;  %v4280_v20 = vld [vmem:[%s5738_s14 + $0x538] sm:$0xf0]  ;;  %v2015_v24 = vpop.f32.mrf.mxu0  ;;  %v4027_v25 = vor.u32 %v5316_v14, %v4024_v18 }
 0x11a   : > { %v5444_v21 = vld [vmem:[%s5738_s14 + $0x71c] sm:$0xf]  ;;  %v4283_v26 = vor.u32 %v5380_v19, %v4280_v20 }
 0x11b   : > { %2259 = vmatpush.bf16.msra.mxu3 %v4439_v30  ;;  %2234 = vmatpush.bf16.msra.mxu1 %v3895_v44  ;;  %v4536_v22 = vld [vmem:[%s5738_s14 + $0x738] sm:$0xf0]  ;;  %v2028_v30 = vpop.f32.mrf.mxu1 }
 0x11c   : > { %2222 = vmatmul.bf16.vlgmr.msra.gmra.mxu0 %v5850_v31  ;;  %v5244_v27 = vld [vmem:[%s5738_s14 + $0xdc] sm:$0xf]  ;;  %v4539_v33 = vor.u32 %v5444_v21, %v4536_v22  ;;  %v2029_v37 = vadd.f32 %v2028_v30, %v2015_v24 }
 0x11d   : > { %2247 = vmatpush.bf16.msra.mxu2 %v4151_v45  ;;  %2266 = vmatpush.bf16.msrb.mxu0 %v3867_v49  ;;  %v3736_v28 = vld [vmem:[%s5738_s14 + $0xf8] sm:$0xf0] }
 0x11e   : > { %2235 = vmatmul.bf16.vlgmr.msra.gmra.mxu1 %v5852_v32  ;;  %v5308_v29 = vld [vmem:[%s5738_s14 + $0x2dc] sm:$0xf]  ;;  %v3739_v40 = vor.u32 %v5244_v27, %v3736_v28 }
 0x11f   : > { %2260 = vmatpush.bf16.msra.mxu3 %v4407_v48  ;;  %2279 = vmatpush.bf16.msrb.mxu1 %v4123_v50  ;;  %v3992_v34 = vld [vmem:[%s5738_s14 + $0x2f8] sm:$0xf0] }
 0x120   : > { %2248 = vmatmul.bf16.vlgmr.msra.gmra.mxu2 %v5838_v16  ;;  %v5372_v35 = vld [vmem:[%s5738_s14 + $0x4dc] sm:$0xf]  ;;  %v3995_v41 = vor.u32 %v5308_v29, %v3992_v34 }
 0x121   : > { %2292 = vmatpush.bf16.msrb.mxu2 %v4379_v51  ;;  %2267 = vmatpush.bf16.msrb.mxu0 %v3835_v61  ;;  %v4248_v36 = vld [vmem:[%s5738_s14 + $0x4f8] sm:$0xf0]  ;;  %v2017_v58 = vpop.f32.mrf.mxu0 }
 0x122   : > { %2261 = vmatmul.bf16.vlgmr.msra.gmra.mxu3 %v5840_v17  ;;  %v5436_v38 = vld [vmem:[%s5738_s14 + $0x6dc] sm:$0xf]  ;;  %v4251_v42 = vor.u32 %v5372_v35, %v4248_v36  ;;  %v345_v36 = vld [vmem:[#allocation2 + $0x10] sm:$0xff]  ;;  %v347_v58 = vld [vmem:[#allocation2 + $0x20] sm:$0xff] }
 0x123   : > { %2305 = vmatpush.bf16.msrb.mxu3 %v4635_v55  ;;  %2280 = vmatpush.bf16.msrb.mxu1 %v4091_v62  ;;  %v4504_v39 = vld [vmem:[%s5738_s14 + $0x6f8] sm:$0xf0]  ;;  %v2041_v46 = vpop.f32.mrf.mxu2  ;;  %v2030_v0 = vpop.f32.mrf.mxu1 }
 0x124   : > { %v5236_v43 = vld [vmem:[%s5738_s14 + $0x9c] sm:$0xf]  ;;  %v4507_v47 = vor.u32 %v5436_v38, %v4504_v39  ;;  %v2042_v51 = vadd.f32 %v2041_v46, %v2029_v37 }
 0x125   : > { %2293 = vmatpush.bf16.msrb.mxu2 %v4347_v63  ;;  %2268 = vmatpush.bf16.msrb.mxu0 %v3803_v9  ;;  %v3704_v44 = vld [vmem:[%s5738_s14 + $0xb8] sm:$0xf0]  ;;  %v2054_v52 = vpop.f32.mrf.mxu3 }
 0x126   : > { %v5300_v45 = vld [vmem:[%s5738_s14 + $0x29c] sm:$0xf]  ;;  %v3707_v56 = vor.u32 %v5236_v43, %v3704_v44  ;;  %v2055_v57 = vadd.f32 %v2054_v52, %v2042_v51 }
 0x127   : > { %2306 = vmatpush.bf16.msrb.mxu3 %v4603_v3  ;;  %2281 = vmatpush.bf16.msrb.mxu1 %v4059_v10  ;;  %v3960_v48 = vld [vmem:[%s5738_s14 + $0x2b8] sm:$0xf0] }
 0x128   : > { %v5364_v49 = vld [vmem:[%s5738_s14 + $0x49c] sm:$0xf]  ;;  %v3963_v59 = vor.u32 %v5300_v45, %v3960_v48  ;;  %v346_v45 = vld [vmem:[#allocation2 + $0x8] sm:$0xff] }
 0x129   : > { %2294 = vmatpush.bf16.msrb.mxu2 %v4315_v11  ;;  %2269 = vmatpush.bf16.msrb.mxu0 %v3771_v23  ;;  %v4216_v50 = vld [vmem:[%s5738_s14 + $0x4b8] sm:$0xf0] }
 0x12a   : > { %v5428_v53 = vld [vmem:[%s5738_s14 + $0x69c] sm:$0xf]  ;;  %v4219_v60 = vor.u32 %v5364_v49, %v4216_v50 }
 0x12b   : > { %2307 = vmatpush.bf16.msrb.mxu3 %v4571_v15  ;;  %2282 = vmatpush.bf16.msrb.mxu1 %v4027_v25  ;;  %v4472_v54 = vld [vmem:[%s5738_s14 + $0x6b8] sm:$0xf0]  ;;  %v2043_v14 = vpop.f32.mrf.mxu2 }
 0x12c   : > { %v344_v55 = vld [vmem:[#allocation2 + $0x18] sm:$0xff]  ;;  %v4475_v1 = vor.u32 %v5428_v53, %v4472_v54 }
 0x12d   : > { %2295 = vmatpush.bf16.msrb.mxu2 %v4283_v26  ;;  %2270 = vmatpush.bf16.msrb.mxu0 %v3739_v40  ;;  %v5228_v61 = vld [vmem:[%s5738_s14 + $0x5c] sm:$0xf]  ;;  %v2320_v5 = vadd.f32 %v2055_v57, %v344_v55  ;;  %v2056_v21 = vpop.f32.mrf.mxu3 }
 0x12e   : > { %v3672_v62 = vld [vmem:[%s5738_s14 + $0x78] sm:$0xf0] }
 0x12f   : > { %2308 = vmatpush.bf16.msrb.mxu3 %v4539_v33  ;;  %2283 = vmatpush.bf16.msrb.mxu1 %v3995_v41  ;;  %v5292_v63 = vld [vmem:[%s5738_s14 + $0x25c] sm:$0xf]  ;;  %v3675_v8 = vor.u32 %v5228_v61, %v3672_v62  ;;  %2328 = vst [vmem:[#allocation2 + $0x18] sm:$0xff] %v2320_v5 }
 0x130   : > { %v3928_v2 = vld [vmem:[%s5738_s14 + $0x278] sm:$0xf0] }
 0x131   : > { %2296 = vmatpush.bf16.msrb.mxu2 %v4251_v42  ;;  %v5356_v3 = vld [vmem:[%s5738_s14 + $0x45c] sm:$0xf]  ;;  %2271 = vmatpush.bf16.msrb.mxu0 %v3707_v56  ;;  %v3931_v9 = vor.u32 %v5292_v63, %v3928_v2 }
 0x132   : > { %v4184_v4 = vld [vmem:[%s5738_s14 + $0x478] sm:$0xf0] }
 0x133   : > { %2309 = vmatpush.bf16.msrb.mxu3 %v4507_v47  ;;  %v5420_v6 = vld [vmem:[%s5738_s14 + $0x65c] sm:$0xf]  ;;  %2284 = vmatpush.bf16.msrb.mxu1 %v3963_v59  ;;  %v4187_v10 = vor.u32 %v5356_v3, %v4184_v4 }
 0x134   : > { %v4440_v7 = vld [vmem:[%s5738_s14 + $0x678] sm:$0xf0] }
 0x135   : > { %2297 = vmatpush.bf16.msrb.mxu2 %v4219_v60  ;;  %v5220_v11 = vld [vmem:[%s5738_s14 + $0x1c] sm:$0xf]  ;;  %v4443_v15 = vor.u32 %v5420_v6, %v4440_v7  ;;  %2272 = vmatpush.bf16.msrb.mxu0 %v3675_v8  ;;  %v348_v7 = vld [vmem:[#allocation2 + $0x28] sm:$0xff] }
 0x136   : > { %v3640_v12 = vld [vmem:[%s5738_s14 + $0x38] sm:$0xf0] }
 0x137   : > { %v5284_v13 = vld [vmem:[%s5738_s14 + $0x21c] sm:$0xf]  ;;  %2310 = vmatpush.bf16.msrb.mxu3 %v4475_v1  ;;  %v3643_v24 = vor.u32 %v5220_v11, %v3640_v12  ;;  %2285 = vmatpush.bf16.msrb.mxu1 %v3931_v9 }
 0x138   : > { %v3896_v18 = vld [vmem:[%s5738_s14 + $0x238] sm:$0xf0] }
 0x139   : > { %v5348_v19 = vld [vmem:[%s5738_s14 + $0x41c] sm:$0xf]  ;;  %2298 = vmatpush.bf16.msrb.mxu2 %v4187_v10  ;;  %v3899_v25 = vor.u32 %v5284_v13, %v3896_v18  ;;  %2273 = vmatpush.bf16.msrb.mxu0 %v3643_v24  ;;  %v2067_v28 = vpop.f32.mrf.mxu0 }
 0x13a   : > { %v4152_v20 = vld [vmem:[%s5738_s14 + $0x438] sm:$0xf0] }
 0x13b   : > { %v5412_v22 = vld [vmem:[%s5738_s14 + $0x61c] sm:$0xf]  ;;  %v4155_v26 = vor.u32 %v5348_v19, %v4152_v20  ;;  %2311 = vmatpush.bf16.msrb.mxu3 %v4443_v15  ;;  %2286 = vmatpush.bf16.msrb.mxu1 %v3899_v25  ;;  %v2080_v29 = vpop.f32.mrf.mxu1 }
 0x13c   : > { %v4408_v23 = vld [vmem:[%s5738_s14 + $0x638] sm:$0xf0]  ;;  %2274 = vmatmul.bf16.vlgmr.msrb.gmra.mxu0 %v5850_v31  ;;  %v2081_v30 = vadd.f32 %v2080_v29, %v2067_v28 }
 0x13d   : > { %v4411_v27 = vor.u32 %v5412_v22, %v4408_v23  ;;  %2299 = vmatpush.bf16.msrb.mxu2 %v4155_v26  ;;  %v349_v23 = vld [vmem:[#allocation2 + $0x38] sm:$0xff] }
 0x13e   : > { %2287 = vmatmul.bf16.vlgmr.msrb.gmra.mxu1 %v5852_v32 }
 0x13f   : > { %2312 = vmatpush.bf16.msrb.mxu3 %v4411_v27 }
 0x140   : > { %2300 = vmatmul.bf16.vlgmr.msrb.gmra.mxu2 %v5838_v16 }
 0x141   : > { %v2069_v38 = vpop.f32.mrf.mxu0 }
 0x142   : > { %2313 = vmatmul.bf16.vlgmr.msrb.gmra.mxu3 %v5840_v17 }
 0x143   : > { %v2093_v33 = vpop.f32.mrf.mxu2  ;;  %v2082_v39 = vpop.f32.mrf.mxu1 }
 0x144   : > { %v2094_v34 = vadd.f32 %v2093_v33, %v2081_v30 }
 0x145   : > { %v2106_v35 = vpop.f32.mrf.mxu3 }
 0x146   : > { %v2107_v37 = vadd.f32 %v2106_v35, %v2094_v34 }
 0x148   : > { %v2321_v40 = vadd.f32 %v2107_v37, %v345_v36 }
 0x14a   : > { %2329 = vst [vmem:[#allocation2 + $0x10] sm:$0xff] %v2321_v40 }
 0x14b   : > { %v2095_v41 = vpop.f32.mrf.mxu2 }
 0x14d   : > { %v2108_v31 = vpop.f32.mrf.mxu3 }
 0x159   : > { %v2119_v42 = vpop.f32.mrf.mxu0 }
 0x15b   : > { %v2132_v32 = vpop.f32.mrf.mxu1 }
 0x15c   : > { %v2133_v43 = vadd.f32 %v2132_v32, %v2119_v42 }
 0x161   : > { %v2121_v47 = vpop.f32.mrf.mxu0 }
 0x163   : > { %v2145_v16 = vpop.f32.mrf.mxu2  ;;  %v2134_v48 = vpop.f32.mrf.mxu1 }
 0x164   : > { %v2146_v44 = vadd.f32 %v2145_v16, %v2133_v43 }
 0x165   : > { %v2158_v17 = vpop.f32.mrf.mxu3 }
 0x166   : > { %v2159_v46 = vadd.f32 %v2158_v17, %v2146_v44 }
 0x168   : > { %v2322_v49 = vadd.f32 %v2159_v46, %v346_v45 }
 0x16a   : > { %2330 = vst [vmem:[#allocation2 + $0x8] sm:$0xff] %v2322_v49 }
 0x16b   : > { %v2147_v50 = vpop.f32.mrf.mxu2 }
 0x16d   : > { %v2160_v51 = vpop.f32.mrf.mxu3 }
 0x179   : > { %v2171_v52 = vpop.f32.mrf.mxu0 }
 0x17b   : > { %v2184_v53 = vpop.f32.mrf.mxu1 }
 0x17c   : > { %v2185_v54 = vadd.f32 %v2184_v53, %v2171_v52 }
 0x181   : > { %v2173_v60 = vpop.f32.mrf.mxu0 }
 0x183   : > { %v2197_v55 = vpop.f32.mrf.mxu2  ;;  %v2186_v61 = vpop.f32.mrf.mxu1 }
 0x184   : > { %v2198_v56 = vadd.f32 %v2197_v55, %v2185_v54 }
 0x185   : > { %v2210_v57 = vpop.f32.mrf.mxu3 }
 0x186   : > { %v2211_v59 = vadd.f32 %v2210_v57, %v2198_v56 }
 0x188   : > { %v2323_v62 = vadd.f32 %v2211_v59, %v347_v58 }
 0x18a   : > { %2331 = vst [vmem:[#allocation2 + $0x20] sm:$0xff] %v2323_v62 }
 0x18b   : > { %v2199_v63 = vpop.f32.mrf.mxu2 }
 0x18d   : > { %v2212_v0 = vpop.f32.mrf.mxu3 }
 0x199   : > { %v2223_v1 = vpop.f32.mrf.mxu0 }
 0x19b   : > { %v2236_v2 = vpop.f32.mrf.mxu1 }
 0x19c   : > { %v2237_v3 = vadd.f32 %v2236_v2, %v2223_v1 }
 0x1a1   : > { %v2225_v9 = vpop.f32.mrf.mxu0 }
 0x1a3   : > { %v2249_v4 = vpop.f32.mrf.mxu2  ;;  %v2238_v10 = vpop.f32.mrf.mxu1 }
 0x1a4   : > { %v2250_v5 = vadd.f32 %v2249_v4, %v2237_v3 }
 0x1a5   : > { %v2262_v6 = vpop.f32.mrf.mxu3 }
 0x1a6   : > { %v2263_v8 = vadd.f32 %v2262_v6, %v2250_v5 }
 0x1a8   : > { %v2324_v11 = vadd.f32 %v2263_v8, %v348_v7 }
 0x1aa   : > { %2332 = vst [vmem:[#allocation2 + $0x28] sm:$0xff] %v2324_v11 }
 0x1ab   : > { %v2251_v12 = vpop.f32.mrf.mxu2 }
 0x1ad   : > { %v2264_v13 = vpop.f32.mrf.mxu3 }
 0x1b9   : > { %v2275_v14 = vpop.f32.mrf.mxu0 }
 0x1bb   : > { %v2288_v15 = vpop.f32.mrf.mxu1 }
 0x1bc   : > { %v2289_v18 = vadd.f32 %v2288_v15, %v2275_v14 }
 0x1c1   : > { %v2277_v22 = vpop.f32.mrf.mxu0 }
 0x1c3   : > { %v2301_v19 = vpop.f32.mrf.mxu2  ;;  %v2290_v24 = vpop.f32.mrf.mxu1 }
 0x1c4   : > { %v2302_v20 = vadd.f32 %v2301_v19, %v2289_v18 }
 0x1c5   : > { %v2314_v21 = vpop.f32.mrf.mxu3 }
 0x1c6   : > { %v2315_v25 = vadd.f32 %v2314_v21, %v2302_v20 }
 0x1c8   : > { %v2325_v26 = vadd.f32 %v2315_v25, %v349_v23 }
 0x1c9   : > { %2337 = sbr.rel (%p4636_p7) target bundleno = 868 (0x364), region = 56 }
 0x1ca   : > { %2333 = vst [vmem:[#allocation2 + $0x38] sm:$0xff] %v2325_v26 }
 0x1cb   : > { %v2303_v27 = vpop.f32.mrf.mxu2 }
 0x1cd   : > { %v2316_v28 = vpop.f32.mrf.mxu3 }
 0x1ce   : > { %v4695_v29 = vld [vmem:[%s7178_s3 + $0x70] sm:$0xf]  ;;  %v5488_v30 = vld [vmem:[%s7178_s3 + $0x74] sm:$0xf0]  ;;  %v4687_v31 = vld [vmem:[%s7178_s3 + $0x60] sm:$0xf] }
 0x1cf   : > { %v4759_v33 = vld [vmem:[%s7178_s3 + $0xf0] sm:$0xf]  ;;  %v4696_v34 = vor.u32 %v5488_v30, %v4695_v29  ;;  %v5504_v35 = vld [vmem:[%s7178_s3 + $0xf4] sm:$0xf0]  ;;  %v5486_v32 = vld [vmem:[%s7178_s3 + $0x64] sm:$0xf0] }
 0x1d0   : > { %v4823_v36 = vld [vmem:[%s7178_s3 + $0x170] sm:$0xf]  ;;  %v5520_v37 = vld [vmem:[%s7178_s3 + $0x174] sm:$0xf0]  ;;  %v4760_v38 = vor.u32 %v5504_v35, %v4759_v33  ;;  %v4751_v43 = vld [vmem:[%s7178_s3 + $0xe0] sm:$0xf]  ;;  %v4688_v44 = vor.u32 %v5486_v32, %v4687_v31 }
 0x1d1   : > { %v4824_v39 = vor.u32 %v5520_v37, %v4823_v36  ;;  %v4887_v40 = vld [vmem:[%s7178_s3 + $0x1f0] sm:$0xf]  ;;  %v5536_v41 = vld [vmem:[%s7178_s3 + $0x1f4] sm:$0xf0]  ;;  %3154 = vmatpush.bf16.msra.mxu0 %v4696_v34  ;;  %v5502_v16 = vld [vmem:[%s7178_s3 + $0xe4] sm:$0xf0] }
 0x1d2   : > { %v4888_v42 = vor.u32 %v5536_v41, %v4887_v40  ;;  %3167 = vmatpush.bf16.msra.mxu1 %v4760_v38  ;;  %v4752_v17 = vor.u32 %v5502_v16, %v4751_v43  ;;  %v4815_v45 = vld [vmem:[%s7178_s3 + $0x160] sm:$0xf]  ;;  %v5518_v46 = vld [vmem:[%s7178_s3 + $0x164] sm:$0xf0]  ;;  %v4679_v50 = vld [vmem:[%s7178_s3 + $0x50] sm:$0xf] }
 0x1d3   : > { %3180 = vmatpush.bf16.msra.mxu2 %v4824_v39  ;;  %v4879_v47 = vld [vmem:[%s7178_s3 + $0x1e0] sm:$0xf]  ;;  %v4816_v48 = vor.u32 %v5518_v46, %v4815_v45  ;;  %v5534_v49 = vld [vmem:[%s7178_s3 + $0x1e4] sm:$0xf0]  ;;  %v5484_v51 = vld [vmem:[%s7178_s3 + $0x54] sm:$0xf0] }
 0x1d4   : > { %3193 = vmatpush.bf16.msra.mxu3 %v4888_v42  ;;  %v4880_v52 = vor.u32 %v5534_v49, %v4879_v47  ;;  %v4743_v53 = vld [vmem:[%s7178_s3 + $0xd0] sm:$0xf]  ;;  %v5500_v54 = vld [vmem:[%s7178_s3 + $0xd4] sm:$0xf0]  ;;  %v4680_v56 = vor.u32 %v5484_v51, %v4679_v50  ;;  %v4671_v62 = vld [vmem:[%s7178_s3 + $0x40] sm:$0xf] }
 0x1d5   : > { %v4807_v55 = vld [vmem:[%s7178_s3 + $0x150] sm:$0xf]  ;;  %3155 = vmatpush.bf16.msra.mxu0 %v4688_v44  ;;  %v5516_v57 = vld [vmem:[%s7178_s3 + $0x154] sm:$0xf0]  ;;  %v4744_v60 = vor.u32 %v5500_v54, %v4743_v53  ;;  %v5482_v63 = vld [vmem:[%s7178_s3 + $0x44] sm:$0xf0] }
 0x1d6   : > { %v4871_v58 = vld [vmem:[%s7178_s3 + $0x1d0] sm:$0xf]  ;;  %v5532_v59 = vld [vmem:[%s7178_s3 + $0x1d4] sm:$0xf0]  ;;  %3168 = vmatpush.bf16.msra.mxu1 %v4752_v17  ;;  %v4808_v61 = vor.u32 %v5516_v57, %v4807_v55  ;;  %v4735_v0 = vld [vmem:[%s7178_s3 + $0xc0] sm:$0xf]  ;;  %v4672_v7 = vor.u32 %v5482_v63, %v4671_v62 }
 0x1d7   : > { %3181 = vmatpush.bf16.msra.mxu2 %v4816_v48  ;;  %v4872_v1 = vor.u32 %v5532_v59, %v4871_v58  ;;  %v5498_v2 = vld [vmem:[%s7178_s3 + $0xc4] sm:$0xf0]  ;;  %v4799_v3 = vld [vmem:[%s7178_s3 + $0x140] sm:$0xf]  ;;  %v4663_v10 = vld [vmem:[%s7178_s3 + $0x30] sm:$0xf] }
 0x1d8   : > { %3194 = vmatpush.bf16.msra.mxu3 %v4880_v52  ;;  %v5514_v4 = vld [vmem:[%s7178_s3 + $0x144] sm:$0xf0]  ;;  %v4863_v5 = vld [vmem:[%s7178_s3 + $0x1c0] sm:$0xf]  ;;  %v4736_v8 = vor.u32 %v5498_v2, %v4735_v0  ;;  %v5480_v11 = vld [vmem:[%s7178_s3 + $0x34] sm:$0xf0] }
 0x1d9   : > { %v5530_v6 = vld [vmem:[%s7178_s3 + $0x1c4] sm:$0xf0]  ;;  %3156 = vmatpush.bf16.msra.mxu0 %v4680_v56  ;;  %v4800_v9 = vor.u32 %v5514_v4, %v4799_v3  ;;  %v4727_v12 = vld [vmem:[%s7178_s3 + $0xb0] sm:$0xf]  ;;  %v5496_v14 = vld [vmem:[%s7178_s3 + $0xb4] sm:$0xf0]  ;;  %v4664_v21 = vor.u32 %v5480_v11, %v4663_v10 }
 0x1da   : > { %3169 = vmatpush.bf16.msra.mxu1 %v4744_v60  ;;  %v4864_v13 = vor.u32 %v5530_v6, %v4863_v5  ;;  %v4791_v15 = vld [vmem:[%s7178_s3 + $0x130] sm:$0xf]  ;;  %v5512_v18 = vld [vmem:[%s7178_s3 + $0x134] sm:$0xf0]  ;;  %v4728_v22 = vor.u32 %v5496_v14, %v4727_v12  ;;  %v4655_v24 = vld [vmem:[%s7178_s3 + $0x20] sm:$0xf] }
 0x1db   : > { %3182 = vmatpush.bf16.msra.mxu2 %v4808_v61  ;;  %v4855_v19 = vld [vmem:[%s7178_s3 + $0x1b0] sm:$0xf]  ;;  %v5528_v20 = vld [vmem:[%s7178_s3 + $0x1b4] sm:$0xf0]  ;;  %v4792_v23 = vor.u32 %v5512_v18, %v4791_v15  ;;  %v5478_v25 = vld [vmem:[%s7178_s3 + $0x24] sm:$0xf0] }
 0x1dc   : > { %3195 = vmatpush.bf16.msra.mxu3 %v4872_v1  ;;  %v4719_v26 = vld [vmem:[%s7178_s3 + $0xa0] sm:$0xf]  ;;  %v4856_v27 = vor.u32 %v5528_v20, %v4855_v19  ;;  %v5494_v28 = vld [vmem:[%s7178_s3 + $0xa4] sm:$0xf0]  ;;  %v4656_v35 = vor.u32 %v5478_v25, %v4655_v24  ;;  %v4647_v38 = vld [vmem:[%s7178_s3 + $0x10] sm:$0xf] }
 0x1dd   : > { %3157 = vmatpush.bf16.msra.mxu0 %v4672_v7  ;;  %v4783_v29 = vld [vmem:[%s7178_s3 + $0x120] sm:$0xf]  ;;  %v5510_v30 = vld [vmem:[%s7178_s3 + $0x124] sm:$0xf0]  ;;  %v4720_v36 = vor.u32 %v5494_v28, %v4719_v26  ;;  %v5476_v39 = vld [vmem:[%s7178_s3 + $0x14] sm:$0xf0] }
 0x1de   : > { %3170 = vmatpush.bf16.msra.mxu1 %v4736_v8  ;;  %v4847_v33 = vld [vmem:[%s7178_s3 + $0x1a0] sm:$0xf]  ;;  %v5526_v34 = vld [vmem:[%s7178_s3 + $0x1a4] sm:$0xf0]  ;;  %v4784_v37 = vor.u32 %v5510_v30, %v4783_v29  ;;  %v4711_v40 = vld [vmem:[%s7178_s3 + $0x90] sm:$0xf]  ;;  %v4648_v44 = vor.u32 %v5476_v39, %v4647_v38 }
 0x1df   : > { %3183 = vmatpush.bf16.msra.mxu2 %v4800_v9  ;;  %v4848_v41 = vor.u32 %v5526_v34, %v4847_v33  ;;  %v5492_v31 = vld [vmem:[%s7178_s3 + $0x94] sm:$0xf0]  ;;  %v4775_v42 = vld [vmem:[%s7178_s3 + $0x110] sm:$0xf]  ;;  %v4639_v17 = vld [vmem:[%s7178_s3] sm:$0xf] }
 0x1e0   : > { %3196 = vmatpush.bf16.msra.mxu3 %v4864_v13  ;;  %v5508_v32 = vld [vmem:[%s7178_s3 + $0x114] sm:$0xf0]  ;;  %v4839_v43 = vld [vmem:[%s7178_s3 + $0x190] sm:$0xf]  ;;  %v5474_v45 = vld [vmem:[%s7178_s3 + $0x4] sm:$0xf0]  ;;  %v4712_v46 = vor.u32 %v5492_v31, %v4711_v40 }
 0x1e1   : > { %3158 = vmatpush.bf16.msra.mxu0 %v4664_v21  ;;  %v5524_v16 = vld [vmem:[%s7178_s3 + $0x194] sm:$0xf0]  ;;  %v4776_v47 = vor.u32 %v5508_v32, %v4775_v42  ;;  %v4703_v48 = vld [vmem:[%s7178_s3 + $0x80] sm:$0xf]  ;;  %v5490_v49 = vld [vmem:[%s7178_s3 + $0x84] sm:$0xf0]  ;;  %v4640_v58 = vor.u32 %v5474_v45, %v4639_v17 }
 0x1e2   : > { %3171 = vmatpush.bf16.msra.mxu1 %v4728_v22  ;;  %v4767_v50 = vld [vmem:[%s7178_s3 + $0x100] sm:$0xf]  ;;  %v4840_v51 = vor.u32 %v5524_v16, %v4839_v43  ;;  %v5506_v52 = vld [vmem:[%s7178_s3 + $0x104] sm:$0xf0]  ;;  %v4951_v55 = vld [vmem:[%s7178_s3 + $0x270] sm:$0xf]  ;;  %v4704_v62 = vor.u32 %v5490_v49, %v4703_v48 }
 0x1e3   : > { %3184 = vmatpush.bf16.msra.mxu2 %v4792_v23  ;;  %v4831_v53 = vld [vmem:[%s7178_s3 + $0x180] sm:$0xf]  ;;  %v5522_v54 = vld [vmem:[%s7178_s3 + $0x184] sm:$0xf0]  ;;  %v5552_v56 = vld [vmem:[%s7178_s3 + $0x274] sm:$0xf0]  ;;  %v4768_v63 = vor.u32 %v5506_v52, %v4767_v50 }
 0x1e4   : > { %3197 = vmatpush.bf16.msra.mxu3 %v4856_v27  ;;  %v5015_v57 = vld [vmem:[%s7178_s3 + $0x2f0] sm:$0xf]  ;;  %v5568_v59 = vld [vmem:[%s7178_s3 + $0x2f4] sm:$0xf0]  ;;  %v4832_v2 = vor.u32 %v5522_v54, %v4831_v53  ;;  %v4952_v3 = vor.u32 %v5552_v56, %v4951_v55  ;;  %v4943_v4 = vld [vmem:[%s7178_s3 + $0x260] sm:$0xf] }
 0x1e5   : > { %3159 = vmatpush.bf16.msra.mxu0 %v4656_v35  ;;  %v5079_v60 = vld [vmem:[%s7178_s3 + $0x370] sm:$0xf]  ;;  %v5584_v61 = vld [vmem:[%s7178_s3 + $0x374] sm:$0xf0]  ;;  %v5550_v5 = vld [vmem:[%s7178_s3 + $0x264] sm:$0xf0]  ;;  %v5016_v6 = vor.u32 %v5568_v59, %v5015_v57 }
 0x1e6   : > { %3172 = vmatpush.bf16.msra.mxu1 %v4720_v36  ;;  %v5143_v0 = vld [vmem:[%s7178_s3 + $0x3f0] sm:$0xf]  ;;  %v5600_v1 = vld [vmem:[%s7178_s3 + $0x3f4] sm:$0xf0]  ;;  %v5080_v7 = vor.u32 %v5584_v61, %v5079_v60  ;;  %v5007_v8 = vld [vmem:[%s7178_s3 + $0x2e0] sm:$0xf]  ;;  %v4944_v20 = vor.u32 %v5550_v5, %v4943_v4 }
 0x1e7   : > { %3185 = vmatpush.bf16.msra.mxu2 %v4784_v37  ;;  %v5566_v9 = vld [vmem:[%s7178_s3 + $0x2e4] sm:$0xf0]  ;;  %v5071_v10 = vld [vmem:[%s7178_s3 + $0x360] sm:$0xf]  ;;  %v5144_v11 = vor.u32 %v5600_v1, %v5143_v0  ;;  %v4935_v15 = vld [vmem:[%s7178_s3 + $0x250] sm:$0xf] }
 0x1e8   : > { %3198 = vmatpush.bf16.msra.mxu3 %v4848_v41  ;;  %v5582_v12 = vld [vmem:[%s7178_s3 + $0x364] sm:$0xf0]  ;;  %v5135_v13 = vld [vmem:[%s7178_s3 + $0x3e0] sm:$0xf]  ;;  %v2340_v18 = vld [vmem:[#allocation2 + $0x18] sm:$0xff]  ;;  %v5008_v24 = vor.u32 %v5566_v9, %v5007_v8 }
 0x1e9   : > { %3160 = vmatpush.bf16.msra.mxu0 %v4648_v44  ;;  %v5598_v14 = vld [vmem:[%s7178_s3 + $0x3e4] sm:$0xf0]  ;;  %v6542_v19 = vld [vmem:[%s7177_s2] sm:$0xff]  ;;  %v5548_v21 = vld [vmem:[%s7178_s3 + $0x254] sm:$0xf0]  ;;  %v5072_v25 = vor.u32 %v5582_v12, %v5071_v10 }
 0x1ea   : > { %3173 = vmatpush.bf16.msra.mxu1 %v4712_v46  ;;  %v4999_v22 = vld [vmem:[%s7178_s3 + $0x2d0] sm:$0xf]  ;;  %v2350_v23 = vperm.slane %v6542_v19, 2  ;;  %v5564_v26 = vld [vmem:[%s7178_s3 + $0x2d4] sm:$0xf0]  ;;  %v5136_v29 = vor.u32 %v5598_v14, %v5135_v13  ;;  %v2348_v35 = vperm.slane %v6542_v19, 0  ;;  %v4936_v41 = vor.u32 %v5548_v21, %v4935_v15 }
 0x1eb   : > { %3186 = vmatpush.bf16.msra.mxu2 %v4776_v47  ;;  %v5063_v27 = vld [vmem:[%s7178_s3 + $0x350] sm:$0xf]  ;;  %v5580_v30 = vld [vmem:[%s7178_s3 + $0x354] sm:$0xf0]  ;;  %v2351_v38 = vperm.slane %v6542_v19, 3  ;;  %v2339_v39 = vld [vmem:[#allocation2] sm:$0xff]  ;;  %v5000_v31 = vor.u32 %v5564_v26, %v4999_v22 }
 0x1ec   : > { %3199 = vmatpush.bf16.msra.mxu3 %v4840_v51  ;;  %v2338_v28 = vld [vmem:[#allocation2 + $0x30] sm:$0xff]  ;;  %v2366_v34 = vadd.f32 %v2350_v23, %v2340_v18  ;;  %v5596_v37 = vld [vmem:[%s7178_s3 + $0x3d4] sm:$0xf0]  ;;  %v2349_v40 = vperm.slane %v6542_v19, 1  ;;  %v5064_v43 = vor.u32 %v5580_v30, %v5063_v27  ;;  %v4927_v16 = vld [vmem:[%s7178_s3 + $0x240] sm:$0xf] }
 0x1ed   : > { %3161 = vmatpush.bf16.msra.mxu0 %v4640_v58  ;;  %v5127_v33 = vld [vmem:[%s7178_s3 + $0x3d0] sm:$0xf]  ;;  %v2364_v32 = vadd.f32 %v2348_v35, %v2338_v28  ;;  %v5546_v44 = vld [vmem:[%s7178_s3 + $0x244] sm:$0xf0]  ;;  %v4991_v17 = vld [vmem:[%s7178_s3 + $0x2c0] sm:$0xf] }
 0x1ee   : > { %3174 = vmatpush.bf16.msra.mxu1 %v4704_v62  ;;  %v2341_v36 = vld [vmem:[#allocation2 + $0x10] sm:$0xff]  ;;  %v6569_v42 = vpack.c.bf16 %v2366_v34, %v2366_v34  ;;  %v2365_v46 = vadd.f32 %v2349_v40, %v2339_v39  ;;  %v5128_v47 = vor.u32 %v5596_v37, %v5127_v33  ;;  %v5562_v48 = vld [vmem:[%s7178_s3 + $0x2c4] sm:$0xf0]  ;;  %v5055_v49 = vld [vmem:[%s7178_s3 + $0x340] sm:$0xf]  ;;  %v4928_v56 = vor.u32 %v5546_v44, %v4927_v16 }
 0x1ef   : > { %3187 = vmatpush.bf16.msra.mxu2 %v4768_v63  ;;  %v2367_v45 = vadd.f32 %v2351_v38, %v2341_v36  ;;  %v5578_v50 = vld [vmem:[%s7178_s3 + $0x344] sm:$0xf0]  ;;  %v6590_v51 = vpack.c.bf16 %v2364_v32, %v2364_v32  ;;  %v5119_v52 = vld [vmem:[%s7178_s3 + $0x3c0] sm:$0xf]  ;;  %v4992_v57 = vor.u32 %v5562_v48, %v4991_v17  ;;  %v4919_v59 = vld [vmem:[%s7178_s3 + $0x230] sm:$0xf] }
 0x1f0   : > { %3200 = vmatpush.bf16.msra.mxu3 %v4832_v2  ;;  %v5594_v53 = vld [vmem:[%s7178_s3 + $0x3c4] sm:$0xf0]  ;;  %v6600_v55 = vpack.c.bf16 %v2365_v46, %v2365_v46  ;;  %v5056_v58 = vor.u32 %v5578_v50, %v5055_v49  ;;  %v5544_v60 = vld [vmem:[%s7178_s3 + $0x234] sm:$0xf0]  ;;  %v4983_v61 = vld [vmem:[%s7178_s3 + $0x2b0] sm:$0xf] }
 0x1f1   : > { %3206 = vmatpush.bf16.msrb.mxu0 %v4952_v3  ;;  %v6598_v54 = vpack.c.bf16 %v2367_v45, %v2367_v45  ;;  %v5120_v62 = vor.u32 %v5594_v53, %v5119_v52  ;;  %v5560_v63 = vld [vmem:[%s7178_s3 + $0x2b4] sm:$0xf0]  ;;  %v5047_v0 = vld [vmem:[%s7178_s3 + $0x330] sm:$0xf]  ;;  %v4920_v4 = vor.u32 %v5544_v60, %v4919_v59  ;;  %v5542_v8 = vld [vmem:[%s7178_s3 + $0x224] sm:$0xf0] }
 0x1f2   : > { %3219 = vmatpush.bf16.msrb.mxu1 %v5016_v6  ;;  %3188 = vmatmul.bf16.vlgmr.msra.gmra.mxu2 %v6569_v42  ;;  %v5576_v1 = vld [vmem:[%s7178_s3 + $0x334] sm:$0xf0]  ;;  %v5111_v2 = vld [vmem:[%s7178_s3 + $0x3b0] sm:$0xf]  ;;  %v4984_v5 = vor.u32 %v5560_v63, %v4983_v61  ;;  %v4975_v9 = vld [vmem:[%s7178_s3 + $0x2a0] sm:$0xf] }
 0x1f3   : > { %3232 = vmatpush.bf16.msrb.mxu2 %v5080_v7  ;;  %3162 = vmatmul.bf16.vlgmr.msra.gmra.mxu0 %v6590_v51  ;;  %v5592_v3 = vld [vmem:[%s7178_s3 + $0x3b4] sm:$0xf0]  ;;  %v5048_v6 = vor.u32 %v5576_v1, %v5047_v0  ;;  %v4911_v7 = vld [vmem:[%s7178_s3 + $0x220] sm:$0xf]  ;;  %v5574_v13 = vld [vmem:[%s7178_s3 + $0x324] sm:$0xf0] }
 0x1f4   : > { %3245 = vmatpush.bf16.msrb.mxu3 %v5144_v11  ;;  %3175 = vmatmul.bf16.vlgmr.msra.gmra.mxu1 %v6600_v55  ;;  %v5112_v10 = vor.u32 %v5592_v3, %v5111_v2  ;;  %v5558_v11 = vld [vmem:[%s7178_s3 + $0x2a4] sm:$0xf0]  ;;  %v5039_v12 = vld [vmem:[%s7178_s3 + $0x320] sm:$0xf]  ;;  %v4912_v18 = vor.u32 %v5542_v8, %v4911_v7  ;;  %v5540_v21 = vld [vmem:[%s7178_s3 + $0x214] sm:$0xf0] }
 0x1f5   : > { %3207 = vmatpush.bf16.msrb.mxu0 %v4944_v20  ;;  %3201 = vmatmul.bf16.vlgmr.msra.gmra.mxu3 %v6598_v54  ;;  %v5103_v14 = vld [vmem:[%s7178_s3 + $0x3a0] sm:$0xf]  ;;  %v5590_v15 = vld [vmem:[%s7178_s3 + $0x3a4] sm:$0xf0]  ;;  %v4903_v20 = vld [vmem:[%s7178_s3 + $0x210] sm:$0xf]  ;;  %v4976_v22 = vor.u32 %v5558_v11, %v4975_v9  ;;  %v5040_v23 = vor.u32 %v5574_v13, %v5039_v12 }
 0x1f6   : > { %3220 = vmatpush.bf16.msrb.mxu1 %v5008_v24  ;;  %v4967_v24 = vld [vmem:[%s7178_s3 + $0x290] sm:$0xf]  ;;  %v5104_v27 = vor.u32 %v5590_v15, %v5103_v14  ;;  %v5572_v28 = vld [vmem:[%s7178_s3 + $0x314] sm:$0xf0]  ;;  %v4895_v33 = vld [vmem:[%s7178_s3 + $0x200] sm:$0xf]  ;;  %v4904_v37 = vor.u32 %v5540_v21, %v4903_v20 }
 0x1f7   : > { %3233 = vmatpush.bf16.msrb.mxu2 %v5072_v25  ;;  %v5556_v25 = vld [vmem:[%s7178_s3 + $0x294] sm:$0xf0]  ;;  %v5031_v26 = vld [vmem:[%s7178_s3 + $0x310] sm:$0xf]  ;;  %v5538_v34 = vld [vmem:[%s7178_s3 + $0x204] sm:$0xf0] }
 0x1f8   : > { %3246 = vmatpush.bf16.msrb.mxu3 %v5136_v29  ;;  %v5095_v29 = vld [vmem:[%s7178_s3 + $0x390] sm:$0xf]  ;;  %v5588_v30 = vld [vmem:[%s7178_s3 + $0x394] sm:$0xf0]  ;;  %v4959_v35 = vld [vmem:[%s7178_s3 + $0x280] sm:$0xf]  ;;  %v5032_v32 = vor.u32 %v5572_v28, %v5031_v26 }
 0x1f9   : > { %3208 = vmatpush.bf16.msrb.mxu0 %v4936_v41  ;;  %v5554_v36 = vld [vmem:[%s7178_s3 + $0x284] sm:$0xf0]  ;;  %v5023_v38 = vld [vmem:[%s7178_s3 + $0x300] sm:$0xf]  ;;  %v2354_v41 = vperm.slane %v6542_v19, 6  ;;  %v2352_v44 = vperm.slane %v6542_v19, 4  ;;  %v5096_v45 = vor.u32 %v5588_v30, %v5095_v29 }
 0x1fa   : > { %3221 = vmatpush.bf16.msrb.mxu1 %v5000_v31  ;;  %v5570_v39 = vld [vmem:[%s7178_s3 + $0x304] sm:$0xf0]  ;;  %v4968_v31 = vor.u32 %v5556_v25, %v4967_v24  ;;  %v2355_v17 = vperm.slane %v6542_v19, 7  ;;  %v5487_v46 = vld [vmem:[%s7178_s3 + $0x74] sm:$0xf]  ;;  %v2345_v48 = vld [vmem:[#allocation2 + $0x38] sm:$0xff] }
 0x1fb   : > { %3234 = vmatpush.bf16.msrb.mxu2 %v5064_v43  ;;  %v2344_v40 = vld [vmem:[#allocation2 + $0x28] sm:$0xff]  ;;  %v5087_v43 = vld [vmem:[%s7178_s3 + $0x380] sm:$0xf]  ;;  %v2353_v49 = vperm.slane %v6542_v19, 5  ;;  %v4697_v50 = vld [vmem:[%s7178_s3 + $0x78] sm:$0xf0]  ;;  %v5024_v61 = vor.u32 %v5570_v39, %v5023_v38 }
 0x1fc   : > { %3247 = vmatpush.bf16.msrb.mxu3 %v5128_v47  ;;  %v5586_v16 = vld [vmem:[%s7178_s3 + $0x384] sm:$0xf0]  ;;  %v5503_v52 = vld [vmem:[%s7178_s3 + $0xf4] sm:$0xf]  ;;  %v2343_v53 = vld [vmem:[#allocation2 + $0x20] sm:$0xff]  ;;  %v2370_v60 = vadd.f32 %v2354_v41, %v2344_v40  ;;  %v2371_v1 = vadd.f32 %v2355_v17, %v2345_v48  ;;  %v4700_v3 = vor.u32 %v5487_v46, %v4697_v50 }
 0x1fd   : > { %3209 = vmatpush.bf16.msrb.mxu0 %v4928_v56  ;;  %v2342_v47 = vld [vmem:[#allocation2 + $0x8] sm:$0xff]  ;;  %v4896_v56 = vor.u32 %v5538_v34, %v4895_v33  ;;  %v5519_v19 = vld [vmem:[%s7178_s3 + $0x174] sm:$0xf]  ;;  %v4825_v59 = vld [vmem:[%s7178_s3 + $0x178] sm:$0xf0]  ;;  %v5088_v2 = vor.u32 %v5586_v16, %v5087_v43 }
 0x1fe   : > { %3222 = vmatpush.bf16.msrb.mxu1 %v4992_v57  ;;  %v4960_v57 = vor.u32 %v5554_v36, %v4959_v35  ;;  %v4889_v63 = vld [vmem:[%s7178_s3 + $0x1f8] sm:$0xf0]  ;;  %v2368_v0 = vadd.f32 %v2352_v44, %v2342_v47  ;;  %v5485_v7 = vld [vmem:[%s7178_s3 + $0x64] sm:$0xf]  ;;  %v4689_v8 = vld [vmem:[%s7178_s3 + $0x68] sm:$0xf0]  ;;  %v6738_v11 = vpack.c.bf16 %v2370_v60, %v2370_v60 }
 0x1ff   : > { %3235 = vmatpush.bf16.msrb.mxu2 %v5056_v58  ;;  %v4761_v58 = vld [vmem:[%s7178_s3 + $0xf8] sm:$0xf0]  ;;  %v5501_v9 = vld [vmem:[%s7178_s3 + $0xe4] sm:$0xf]  ;;  %v4753_v12 = vld [vmem:[%s7178_s3 + $0xe8] sm:$0xf0] }
 0x200   : > { %3248 = vmatpush.bf16.msrb.mxu3 %v5120_v62  ;;  %v5535_v62 = vld [vmem:[%s7178_s3 + $0x1f4] sm:$0xf]  ;;  %v5517_v13 = vld [vmem:[%s7178_s3 + $0x164] sm:$0xf]  ;;  %v4817_v14 = vld [vmem:[%s7178_s3 + $0x168] sm:$0xf0]  ;;  %v6749_v15 = vpack.c.bf16 %v2368_v0, %v2368_v0  ;;  %v4756_v24 = vor.u32 %v5501_v9, %v4753_v12 }
 0x201   : > { %3210 = vmatpush.bf16.msrb.mxu0 %v4920_v4  ;;  %v2369_v4 = vadd.f32 %v2353_v49, %v2343_v53  ;;  %v5533_v20 = vld [vmem:[%s7178_s3 + $0x1e4] sm:$0xf]  ;;  %v4881_v21 = vld [vmem:[%s7178_s3 + $0x1e8] sm:$0xf0]  ;;  %v4820_v25 = vor.u32 %v5517_v13, %v4817_v14  ;;  %v5483_v26 = vld [vmem:[%s7178_s3 + $0x54] sm:$0xf] }
 0x202   : > { %3223 = vmatpush.bf16.msrb.mxu1 %v4984_v5  ;;  %v4764_v5 = vor.u32 %v5503_v52, %v4761_v58  ;;  %v5499_v28 = vld [vmem:[%s7178_s3 + $0xd4] sm:$0xf]  ;;  %v4884_v29 = vor.u32 %v5533_v20, %v4881_v21  ;;  %v4745_v30 = vld [vmem:[%s7178_s3 + $0xd8] sm:$0xf0]  ;;  %v5481_v40 = vld [vmem:[%s7178_s3 + $0x44] sm:$0xf] }
 0x203   : > { %3236 = vmatpush.bf16.msrb.mxu2 %v5048_v6  ;;  %v4828_v6 = vor.u32 %v5519_v19, %v4825_v59  ;;  %v5515_v33 = vld [vmem:[%s7178_s3 + $0x154] sm:$0xf]  ;;  %v4809_v34 = vld [vmem:[%s7178_s3 + $0x158] sm:$0xf0]  ;;  %v4748_v38 = vor.u32 %v5499_v28, %v4745_v30  ;;  %v4673_v41 = vld [vmem:[%s7178_s3 + $0x48] sm:$0xf0] }
 0x204   : > { %3249 = vmatpush.bf16.msrb.mxu3 %v5112_v10  ;;  %v4892_v10 = vor.u32 %v5535_v62, %v4889_v63  ;;  %v5531_v35 = vld [vmem:[%s7178_s3 + $0x1d4] sm:$0xf]  ;;  %v4873_v36 = vld [vmem:[%s7178_s3 + $0x1d8] sm:$0xf0]  ;;  %v4812_v39 = vor.u32 %v5515_v33, %v4809_v34  ;;  %v4737_v43 = vld [vmem:[%s7178_s3 + $0xc8] sm:$0xf0]  ;;  %v4676_v46 = vor.u32 %v5481_v40, %v4673_v41 }
 0x205   : > { %3211 = vmatpush.bf16.msrb.mxu0 %v4912_v18  ;;  %v6751_v18 = vpack.c.bf16 %v2371_v1, %v2371_v1  ;;  %v5513_v16 = vld [vmem:[%s7178_s3 + $0x144] sm:$0xf]  ;;  %v4801_v44 = vld [vmem:[%s7178_s3 + $0x148] sm:$0xf0]  ;;  %v5479_v49 = vld [vmem:[%s7178_s3 + $0x34] sm:$0xf] }
 0x206   : > { %3224 = vmatpush.bf16.msrb.mxu1 %v4976_v22  ;;  %v4692_v22 = vor.u32 %v5485_v7, %v4689_v8  ;;  %v5529_v17 = vld [vmem:[%s7178_s3 + $0x1c4] sm:$0xf]  ;;  %v4804_v48 = vor.u32 %v5513_v16, %v4801_v44  ;;  %v4665_v50 = vld [vmem:[%s7178_s3 + $0x38] sm:$0xf0]  ;;  %v5495_v52 = vld [vmem:[%s7178_s3 + $0xb4] sm:$0xf] }
 0x207   : > { %3237 = vmatpush.bf16.msrb.mxu2 %v5040_v23  ;;  %v6759_v23 = vpack.c.bf16 %v2369_v4, %v2369_v4  ;;  %v4793_v58 = vld [vmem:[%s7178_s3 + $0x138] sm:$0xf0]  ;;  %v5527_v19 = vld [vmem:[%s7178_s3 + $0x1b4] sm:$0xf]  ;;  %v4668_v60 = vor.u32 %v5479_v49, %v4665_v50  ;;  %v5477_v63 = vld [vmem:[%s7178_s3 + $0x24] sm:$0xf] }
 0x208   : > { %3250 = vmatpush.bf16.msrb.mxu3 %v5104_v27  ;;  %v4681_v27 = vld [vmem:[%s7178_s3 + $0x58] sm:$0xf0]  ;;  %v4657_v0 = vld [vmem:[%s7178_s3 + $0x28] sm:$0xf0]  ;;  %v5493_v1 = vld [vmem:[%s7178_s3 + $0xa4] sm:$0xf] }
 0x209   : > { %3212 = vmatpush.bf16.msrb.mxu0 %v4904_v37  ;;  %v4684_v37 = vor.u32 %v5483_v26, %v4681_v27  ;;  %v4857_v59 = vld [vmem:[%s7178_s3 + $0x1b8] sm:$0xf0]  ;;  %v5509_v4 = vld [vmem:[%s7178_s3 + $0x124] sm:$0xf]  ;;  %v4849_v7 = vld [vmem:[%s7178_s3 + $0x1a8] sm:$0xf0]  ;;  %v4660_v8 = vor.u32 %v5477_v63, %v4657_v0 }
 0x20a   : > { %3225 = vmatpush.bf16.msrb.mxu1 %v4968_v31  ;;  %v5497_v31 = vld [vmem:[%s7178_s3 + $0xc4] sm:$0xf]  ;;  %v5475_v12 = vld [vmem:[%s7178_s3 + $0x14] sm:$0xf]  ;;  %v4649_v13 = vld [vmem:[%s7178_s3 + $0x18] sm:$0xf0] }
 0x20b   : > { %3238 = vmatpush.bf16.msrb.mxu2 %v5032_v32  ;;  %v4876_v32 = vor.u32 %v5531_v35, %v4873_v36  ;;  %v4740_v47 = vor.u32 %v5497_v31, %v4737_v43  ;;  %v5491_v14 = vld [vmem:[%s7178_s3 + $0x94] sm:$0xf]  ;;  %v4713_v21 = vld [vmem:[%s7178_s3 + $0x98] sm:$0xf0]  ;;  %v4652_v27 = vor.u32 %v5475_v12, %v4649_v13  ;;  %v5473_v28 = vld [vmem:[%s7178_s3 + $0x4] sm:$0xf] }
 0x20c   : > { %3251 = vmatpush.bf16.msrb.mxu3 %v5096_v45  ;;  %v4865_v45 = vld [vmem:[%s7178_s3 + $0x1c8] sm:$0xf0]  ;;  %v4841_v26 = vld [vmem:[%s7178_s3 + $0x198] sm:$0xf0]  ;;  %v5489_v30 = vld [vmem:[%s7178_s3 + $0x84] sm:$0xf]  ;;  %v4716_v33 = vor.u32 %v5491_v14, %v4713_v21 }
 0x20d   : > { %3213 = vmatpush.bf16.msrb.mxu0 %v4896_v56  ;;  %v4868_v53 = vor.u32 %v5529_v17, %v4865_v45  ;;  %v4729_v56 = vld [vmem:[%s7178_s3 + $0xb8] sm:$0xf0]  ;;  %v4705_v35 = vld [vmem:[%s7178_s3 + $0x88] sm:$0xf0]  ;;  %v5505_v36 = vld [vmem:[%s7178_s3 + $0x104] sm:$0xf] }
 0x20e   : > { %3226 = vmatpush.bf16.msrb.mxu1 %v4960_v57  ;;  %v5511_v57 = vld [vmem:[%s7178_s3 + $0x134] sm:$0xf]  ;;  %v4833_v40 = vld [vmem:[%s7178_s3 + $0x188] sm:$0xf0]  ;;  %v4953_v31 = vld [vmem:[%s7178_s3 + $0x278] sm:$0xf0]  ;;  %v4708_v45 = vor.u32 %v5489_v30, %v4705_v35 }
 0x20f   : > { %3239 = vmatpush.bf16.msrb.mxu2 %v5024_v61  ;;  %v4732_v61 = vor.u32 %v5495_v52, %v4729_v56  ;;  %v4796_v62 = vor.u32 %v5511_v57, %v4793_v58  ;;  %v5551_v41 = vld [vmem:[%s7178_s3 + $0x274] sm:$0xf]  ;;  %v5017_v16 = vld [vmem:[%s7178_s3 + $0x2f8] sm:$0xf0]  ;;  %v5549_v56 = vld [vmem:[%s7178_s3 + $0x264] sm:$0xf] }
 0x210   : > { %3252 = vmatpush.bf16.msrb.mxu3 %v5088_v2  ;;  %3214 = vmatmul.bf16.vlgmr.msrb.gmra.mxu0 %v6749_v15  ;;  %v4860_v2 = vor.u32 %v5527_v19, %v4857_v59  ;;  %v5583_v44 = vld [vmem:[%s7178_s3 + $0x374] sm:$0xf]  ;;  %v5081_v17 = vld [vmem:[%s7178_s3 + $0x378] sm:$0xf0]  ;;  %v4956_v50 = vor.u32 %v5551_v41, %v4953_v31  ;;  %v4945_v57 = vld [vmem:[%s7178_s3 + $0x268] sm:$0xf0] }
 0x211   : > { %3258 = vmatpush.bf16.msra.mxu0 %v4700_v3  ;;  %3227 = vmatmul.bf16.vlgmr.msrb.gmra.mxu1 %v6759_v23  ;;  %v4721_v3 = vld [vmem:[%s7178_s3 + $0xa8] sm:$0xf0]  ;;  %v5565_v58 = vld [vmem:[%s7178_s3 + $0x2e4] sm:$0xf]  ;;  %v4948_v0 = vor.u32 %v5549_v56, %v4945_v57  ;;  %v5543_v30 = vld [vmem:[%s7178_s3 + $0x234] sm:$0xf] }
 0x212   : > { %3271 = vmatpush.bf16.msra.mxu1 %v4764_v5  ;;  %3240 = vmatmul.bf16.vlgmr.msrb.gmra.mxu2 %v6738_v11  ;;  %v4785_v5 = vld [vmem:[%s7178_s3 + $0x128] sm:$0xf0]  ;;  %v4724_v9 = vor.u32 %v5493_v1, %v4721_v3  ;;  %v5547_v3 = vld [vmem:[%s7178_s3 + $0x254] sm:$0xf]  ;;  %v4905_v57 = vld [vmem:[%s7178_s3 + $0x218] sm:$0xf0] }
 0x213   : > { %3284 = vmatpush.bf16.msra.mxu2 %v4828_v6  ;;  %3253 = vmatmul.bf16.vlgmr.msrb.gmra.mxu3 %v6751_v18  ;;  %v5525_v6 = vld [vmem:[%s7178_s3 + $0x1a4] sm:$0xf]  ;;  %v5009_v59 = vld [vmem:[%s7178_s3 + $0x2e8] sm:$0xf0]  ;;  %v5539_v56 = vld [vmem:[%s7178_s3 + $0x214] sm:$0xf] }
 0x214   : > { %3297 = vmatpush.bf16.msra.mxu3 %v4892_v10  ;;  %v4788_v10 = vor.u32 %v5509_v4, %v4785_v5  ;;  %v4852_v20 = vor.u32 %v5525_v6, %v4849_v7  ;;  %v5137_v63 = vld [vmem:[%s7178_s3 + $0x3e8] sm:$0xf0]  ;;  %v5012_v1 = vor.u32 %v5565_v58, %v5009_v59  ;;  %v4937_v4 = vld [vmem:[%s7178_s3 + $0x258] sm:$0xf0]  ;;  %v5563_v5 = vld [vmem:[%s7178_s3 + $0x2d4] sm:$0xf] }
 0x215   : > { %3259 = vmatpush.bf16.msra.mxu0 %v4692_v22  ;;  %v5507_v22 = vld [vmem:[%s7178_s3 + $0x114] sm:$0xf]  ;;  %v5001_v7 = vld [vmem:[%s7178_s3 + $0x2d8] sm:$0xf0]  ;;  %v4940_v12 = vor.u32 %v5547_v3, %v4937_v4  ;;  %v4929_v21 = vld [vmem:[%s7178_s3 + $0x248] sm:$0xf0] }
 0x216   : > { %3272 = vmatpush.bf16.msra.mxu1 %v4756_v24  ;;  %v4777_v24 = vld [vmem:[%s7178_s3 + $0x118] sm:$0xf0]  ;;  %v5004_v13 = vor.u32 %v5563_v5, %v5001_v7  ;;  %v5555_v58 = vld [vmem:[%s7178_s3 + $0x294] sm:$0xf]  ;;  %v5537_v3 = vld [vmem:[%s7178_s3 + $0x204] sm:$0xf] }
 0x217   : > { %3285 = vmatpush.bf16.msra.mxu2 %v4820_v25  ;;  %v5523_v25 = vld [vmem:[%s7178_s3 + $0x194] sm:$0xf]  ;;  %v4780_v34 = vor.u32 %v5507_v22, %v4777_v24  ;;  %v5577_v22 = vld [vmem:[%s7178_s3 + $0x344] sm:$0xf]  ;;  %v5057_v24 = vld [vmem:[%s7178_s3 + $0x348] sm:$0xf0] }
 0x218   : > { %3298 = vmatpush.bf16.msra.mxu3 %v4884_v29  ;;  %v4641_v29 = vld [vmem:[%s7178_s3 + $0x8] sm:$0xf0]  ;;  %v4969_v59 = vld [vmem:[%s7178_s3 + $0x298] sm:$0xf0]  ;;  %v5553_v5 = vld [vmem:[%s7178_s3 + $0x284] sm:$0xf] }
 0x219   : > { %3260 = vmatpush.bf16.msra.mxu0 %v4684_v37  ;;  %v4769_v37 = vld [vmem:[%s7178_s3 + $0x108] sm:$0xf0]  ;;  %v4644_v43 = vor.u32 %v5473_v28, %v4641_v29  ;;  %v5060_v29 = vor.u32 %v5577_v22, %v5057_v24  ;;  %v2508_v22 = vld [vmem:[%s7179_s4] sm:$0x3] }
 0x21a   : > { %3273 = vmatpush.bf16.msra.mxu1 %v4748_v38  ;;  %v4844_v38 = vor.u32 %v5523_v25, %v4841_v26  ;;  %v5593_v25 = vld [vmem:[%s7178_s3 + $0x3c4] sm:$0xf]  ;;  %v5121_v26 = vld [vmem:[%s7178_s3 + $0x3c8] sm:$0xf0] }
 0x21b   : > { %3286 = vmatpush.bf16.msra.mxu2 %v4812_v39  ;;  %v5521_v39 = vld [vmem:[%s7178_s3 + $0x184] sm:$0xf]  ;;  %v5124_v35 = vor.u32 %v5593_v25, %v5121_v26  ;;  %v4897_v4 = vld [vmem:[%s7178_s3 + $0x208] sm:$0xf0] }
 0x21c   : > { %3299 = vmatpush.bf16.msra.mxu3 %v4876_v32  ;;  %v5567_v32 = vld [vmem:[%s7178_s3 + $0x2f4] sm:$0xf]  ;;  %v4836_v49 = vor.u32 %v5521_v39, %v4833_v40  ;;  %v5113_v40 = vld [vmem:[%s7178_s3 + $0x3b8] sm:$0xf0]  ;;  %v4961_v7 = vld [vmem:[%s7178_s3 + $0x288] sm:$0xf0] }
 0x21d   : > { %3261 = vmatpush.bf16.msra.mxu0 %v4676_v46  ;;  %v4772_v46 = vor.u32 %v5505_v36, %v4769_v37  ;;  %v5020_v52 = vor.u32 %v5567_v32, %v5017_v16  ;;  %v4985_v36 = vld [vmem:[%s7178_s3 + $0x2b8] sm:$0xf0]  ;;  %v5575_v37 = vld [vmem:[%s7178_s3 + $0x334] sm:$0xf]  ;;  %v4913_v16 = vld [vmem:[%s7178_s3 + $0x228] sm:$0xf0] }
 0x21e   : > { %3274 = vmatpush.bf16.msra.mxu1 %v4740_v47  ;;  %v5599_v47 = vld [vmem:[%s7178_s3 + $0x3f4] sm:$0xf]  ;;  %v5601_v26 = vld [vmem:[%s7180_s5] sm:$0xff] }
 0x21f   : > { %3287 = vmatpush.bf16.msra.mxu2 %v4804_v48  ;;  %v5145_v48 = vld [vmem:[%s7178_s3 + $0x3f8] sm:$0xf0]  ;;  %v5591_v39 = vld [vmem:[%s7178_s3 + $0x3b4] sm:$0xf] }
 0x220   : > { %3300 = vmatpush.bf16.msra.mxu3 %v4868_v53  ;;  %v5084_v53 = vor.u32 %v5583_v44, %v5081_v17  ;;  %v5148_v19 = vor.u32 %v5599_v47, %v5145_v48  ;;  %v5557_v44 = vld [vmem:[%s7178_s3 + $0x2a4] sm:$0xf]  ;;  %v5116_v17 = vor.u32 %v5591_v39, %v5113_v40  ;;  %v5041_v47 = vld [vmem:[%s7178_s3 + $0x328] sm:$0xf0] }
 0x221   : > { %3262 = vmatpush.bf16.msra.mxu0 %v4668_v60  ;;  %v5581_v60 = vld [vmem:[%s7178_s3 + $0x364] sm:$0xf] }
 0x222   : > { %3275 = vmatpush.bf16.msra.mxu1 %v4732_v61  ;;  %v5073_v61 = vld [vmem:[%s7178_s3 + $0x368] sm:$0xf0]  ;;  %v5589_v48 = vld [vmem:[%s7178_s3 + $0x3a4] sm:$0xf] }
 0x223   : > { %3288 = vmatpush.bf16.msra.mxu2 %v4796_v62  ;;  %v5597_v62 = vld [vmem:[%s7178_s3 + $0x3e4] sm:$0xf] }
 0x224   : > { %3301 = vmatpush.bf16.msra.mxu3 %v4860_v2  ;;  %v5076_v2 = vor.u32 %v5581_v60, %v5073_v61  ;;  %v5140_v6 = vor.u32 %v5597_v62, %v5137_v63  ;;  %v5571_v60 = vld [vmem:[%s7178_s3 + $0x314] sm:$0xf]  ;;  %v5033_v61 = vld [vmem:[%s7178_s3 + $0x318] sm:$0xf0] }
 0x225   : > { %3263 = vmatpush.bf16.msra.mxu0 %v4660_v8  ;;  %v5579_v8 = vld [vmem:[%s7178_s3 + $0x354] sm:$0xf]  ;;  %v5097_v63 = vld [vmem:[%s7178_s3 + $0x398] sm:$0xf0] }
 0x226   : > { %3276 = vmatpush.bf16.msra.mxu1 %v4724_v9  ;;  %v5065_v9 = vld [vmem:[%s7178_s3 + $0x358] sm:$0xf0]  ;;  %v5587_v62 = vld [vmem:[%s7178_s3 + $0x394] sm:$0xf] }
 0x227   : > { %3289 = vmatpush.bf16.msra.mxu2 %v4788_v10  ;;  %v5595_v10 = vld [vmem:[%s7178_s3 + $0x3d4] sm:$0xf]  ;;  %v5068_v14 = vor.u32 %v5579_v8, %v5065_v9  ;;  %v5569_v8 = vld [vmem:[%s7178_s3 + $0x304] sm:$0xf]  ;;  %v5025_v9 = vld [vmem:[%s7178_s3 + $0x308] sm:$0xf0] }
 0x228   : > { %3302 = vmatpush.bf16.msra.mxu3 %v4852_v20  ;;  %v5545_v20 = vld [vmem:[%s7178_s3 + $0x244] sm:$0xf] }
 0x229   : > { %3264 = vmatpush.bf16.msra.mxu0 %v4652_v27  ;;  %v4932_v27 = vor.u32 %v5545_v20, %v4929_v21  ;;  %v5608_v21 = vld [vmem:[%s7180_s5 + $0x38] sm:$0xff] }
 0x22a   : > { %3277 = vmatpush.bf16.msra.mxu1 %v4716_v33  ;;  %v4921_v33 = vld [vmem:[%s7178_s3 + $0x238] sm:$0xf0] }
 0x22b   : > { %3290 = vmatpush.bf16.msra.mxu2 %v4780_v34  ;;  %v5559_v34 = vld [vmem:[%s7178_s3 + $0x2b4] sm:$0xf]  ;;  %v4924_v41 = vor.u32 %v5543_v30, %v4921_v33 }
 0x22c   : > { %3303 = vmatpush.bf16.msra.mxu3 %v4844_v38  ;;  %v5049_v38 = vld [vmem:[%s7178_s3 + $0x338] sm:$0xf0]  ;;  %v4988_v31 = vor.u32 %v5559_v34, %v4985_v36 }
 0x22d   : > { %3265 = vmatpush.bf16.msra.mxu0 %v4644_v43  ;;  %v5052_v32 = vor.u32 %v5575_v37, %v5049_v38  ;;  %v5541_v43 = vld [vmem:[%s7178_s3 + $0x224] sm:$0xf] }
 0x22e   : > { %3278 = vmatpush.bf16.msra.mxu1 %v4708_v45  ;;  %v4977_v45 = vld [vmem:[%s7178_s3 + $0x2a8] sm:$0xf0] }
 0x22f   : > { %3291 = vmatpush.bf16.msra.mxu2 %v4772_v46  ;;  %v5573_v46 = vld [vmem:[%s7178_s3 + $0x324] sm:$0xf] }
 0x230   : > { %3304 = vmatpush.bf16.msra.mxu3 %v4836_v49  ;;  %3266 = vmatmul.bf16.vlgmr.msra.gmra.mxu0 %v6590_v51  ;;  %v5561_v51 = vld [vmem:[%s7178_s3 + $0x2c4] sm:$0xf]  ;;  %v5105_v49 = vld [vmem:[%s7178_s3 + $0x3a8] sm:$0xf0] }
 0x231   : > { %3310 = vmatpush.bf16.msrb.mxu0 %v4956_v50  ;;  %3279 = vmatmul.bf16.vlgmr.msra.gmra.mxu1 %v6600_v55  ;;  %v4993_v55 = vld [vmem:[%s7178_s3 + $0x2c8] sm:$0xf0]  ;;  %v4916_v50 = vor.u32 %v5541_v43, %v4913_v16 }
 0x232   : > { %3323 = vmatpush.bf16.msrb.mxu1 %v5020_v52  ;;  %3292 = vmatmul.bf16.vlgmr.msra.gmra.mxu2 %v6569_v42  ;;  %v5129_v42 = vld [vmem:[%s7178_s3 + $0x3d8] sm:$0xf0]  ;;  %v4996_v28 = vor.u32 %v5561_v51, %v4993_v55  ;;  %v4980_v52 = vor.u32 %v5557_v44, %v4977_v45  ;;  %v5607_v51 = vld [vmem:[%s7180_s5 + $0x30] sm:$0xff] }
 0x233   : > { %3336 = vmatpush.bf16.msrb.mxu2 %v5084_v53  ;;  %3305 = vmatmul.bf16.vlgmr.msra.gmra.mxu3 %v6598_v54  ;;  %v5132_v54 = vor.u32 %v5595_v10, %v5129_v42  ;;  %v5044_v53 = vor.u32 %v5573_v46, %v5041_v47  ;;  %v5585_v10 = vld [vmem:[%s7178_s3 + $0x384] sm:$0xf]  ;;  %v5089_v42 = vld [vmem:[%s7178_s3 + $0x388] sm:$0xf0]  ;;  %v5616_v44 = vld [vmem:[%s7180_s5 + $0x78] sm:$0xff] }
 0x234   : > { %3349 = vmatpush.bf16.msrb.mxu3 %v5148_v19  ;;  %v5108_v19 = vor.u32 %v5589_v48, %v5105_v49  ;;  %v5092_v20 = vor.u32 %v5585_v10, %v5089_v42  ;;  %v5615_v46 = vld [vmem:[%s7180_s5 + $0x70] sm:$0xff] }
 0x235   : > { %3311 = vmatpush.bf16.msrb.mxu0 %v4948_v0  ;;  %v4908_v0 = vor.u32 %v5539_v56, %v4905_v57  ;;  %v5613_v56 = vld [vmem:[%s7180_s5 + $0x60] sm:$0xff]  ;;  %v5612_v57 = vld [vmem:[%s7180_s5 + $0x58] sm:$0xff] }
 0x236   : > { %3324 = vmatpush.bf16.msrb.mxu1 %v5012_v1  ;;  %v4972_v1 = vor.u32 %v5555_v58, %v4969_v59  ;;  %v5611_v58 = vld [vmem:[%s7180_s5 + $0x50] sm:$0xff] }
 0x237   : > { %3337 = vmatpush.bf16.msrb.mxu2 %v5076_v2  ;;  %v5036_v2 = vor.u32 %v5571_v60, %v5033_v61  ;;  %v5610_v60 = vld [vmem:[%s7180_s5 + $0x48] sm:$0xff] }
 0x238   : > { %3350 = vmatpush.bf16.msrb.mxu3 %v5140_v6  ;;  %v5100_v6 = vor.u32 %v5587_v62, %v5097_v63 }
 0x239   : > { %3312 = vmatpush.bf16.msrb.mxu0 %v4940_v12  ;;  %v4900_v12 = vor.u32 %v5537_v3, %v4897_v4 }
 0x23a   : > { %3325 = vmatpush.bf16.msrb.mxu1 %v5004_v13  ;;  %v4964_v13 = vor.u32 %v5553_v5, %v4961_v7 }
 0x23b   : > { %3338 = vmatpush.bf16.msrb.mxu2 %v5068_v14  ;;  %v5028_v14 = vor.u32 %v5569_v8, %v5025_v9 }
 0x23c   : > { %3351 = vmatpush.bf16.msrb.mxu3 %v5132_v54  ;;  %v5606_v54 = vld [vmem:[%s7180_s5 + $0x28] sm:$0xff] }
 0x23d   : > { %3313 = vmatpush.bf16.msrb.mxu0 %v4932_v27  ;;  %v2510_v27 = vperm.slane %v2508_v22, 0 }
 0x23e   : > { %3326 = vmatpush.bf16.msrb.mxu1 %v4996_v28 }
 0x23f   : > { %3339 = vmatpush.bf16.msrb.mxu2 %v5060_v29 }
 0x240   : > { %3352 = vmatpush.bf16.msrb.mxu3 %v5124_v35 }
 0x241   : > { %3314 = vmatpush.bf16.msrb.mxu0 %v4924_v41 }
 0x242   : > { %3327 = vmatpush.bf16.msrb.mxu1 %v4988_v31 }
 0x243   : > { %3340 = vmatpush.bf16.msrb.mxu2 %v5052_v32 }
 0x244   : > { %3353 = vmatpush.bf16.msrb.mxu3 %v5116_v17 }
 0x245   : > { %3315 = vmatpush.bf16.msrb.mxu0 %v4916_v50  ;;  %v5614_v50 = vld [vmem:[%s7180_s5 + $0x68] sm:$0xff] }
 0x246   : > { %3328 = vmatpush.bf16.msrb.mxu1 %v4980_v52 }
 0x247   : > { %3341 = vmatpush.bf16.msrb.mxu2 %v5044_v53 }
 0x248   : > { %3354 = vmatpush.bf16.msrb.mxu3 %v5108_v19 }
 0x249   : > { %3316 = vmatpush.bf16.msrb.mxu0 %v4908_v0  ;;  %v5609_v0 = vld [vmem:[%s7180_s5 + $0x40] sm:$0xff] }
 0x24a   : > { %3329 = vmatpush.bf16.msrb.mxu1 %v4972_v1 }
 0x24b   : > { %3342 = vmatpush.bf16.msrb.mxu2 %v5036_v2  ;;  %v2511_v2 = vperm.slane %v2508_v22, 1 }
 0x24c   : > { %3355 = vmatpush.bf16.msrb.mxu3 %v5100_v6 }
 0x24d   : > { %3317 = vmatpush.bf16.msrb.mxu0 %v4900_v12 }
 0x24e   : > { %3330 = vmatpush.bf16.msrb.mxu1 %v4964_v13 }
 0x24f   : > { %3343 = vmatpush.bf16.msrb.mxu2 %v5028_v14 }
 0x250   : > { %3356 = vmatpush.bf16.msrb.mxu3 %v5092_v20  ;;  %3318 = vmatmul.bf16.vlgmr.msrb.gmra.mxu0 %v6749_v15  ;;  %v5605_v15 = vld [vmem:[%s7180_s5 + $0x20] sm:$0xff] }
 0x251   : > { %3498 = vmatpush.bf16.msra.mxu0 %v5608_v21  ;;  %3331 = vmatmul.bf16.vlgmr.msrb.gmra.mxu1 %v6759_v23  ;;  %v5602_v23 = vld [vmem:[%s7180_s5 + $0x8] sm:$0xff] }
 0x252   : > { %3344 = vmatmul.bf16.vlgmr.msrb.gmra.mxu2 %v6738_v11  ;;  %v5604_v11 = vld [vmem:[%s7180_s5 + $0x18] sm:$0xff]  ;;  %3511 = vmatpush.bf16.msra.mxu1 %v5616_v44 }
 0x253   : > { %3357 = vmatmul.bf16.vlgmr.msrb.gmra.mxu3 %v6751_v18  ;;  %v5603_v18 = vld [vmem:[%s7180_s5 + $0x10] sm:$0xff] }
 0x255   : > { %3499 = vmatpush.bf16.msra.mxu0 %v5607_v51 }
 0x256   : > { %3512 = vmatpush.bf16.msra.mxu1 %v5615_v46 }
 0x259   : > { %3500 = vmatpush.bf16.msra.mxu0 %v5606_v54 }
 0x25a   : > { %3513 = vmatpush.bf16.msra.mxu1 %v5614_v50 }
 0x25d   : > { %3501 = vmatpush.bf16.msra.mxu0 %v5605_v15 }
 0x25e   : > { %3514 = vmatpush.bf16.msra.mxu1 %v5613_v56 }
 0x261   : > { %3502 = vmatpush.bf16.msra.mxu0 %v5604_v11 }
 0x262   : > { %3515 = vmatpush.bf16.msra.mxu1 %v5612_v57 }
 0x265   : > { %3503 = vmatpush.bf16.msra.mxu0 %v5603_v18 }
 0x266   : > { %3516 = vmatpush.bf16.msra.mxu1 %v5611_v58 }
 0x269   : > { %3504 = vmatpush.bf16.msra.mxu0 %v5602_v23 }
 0x26a   : > { %3517 = vmatpush.bf16.msra.mxu1 %v5610_v60 }
 0x26d   : > { %3505 = vmatpush.bf16.msra.mxu0 %v5601_v26 }
 0x26e   : > { %3518 = vmatpush.bf16.msra.mxu1 %v5609_v0 }
 0x270   : > { %v3163_v55 = vpop.f32.mrf.mxu0 }
 0x271   : > { %v3176_v24 = vpop.f32.mrf.mxu1  ;;  %v3164_v29 = vadd.f32 %v3163_v55, %v2510_v27 }
 0x273   : > { %v3177_v35 = vadd.f32 %v3176_v24, %v3164_v29  ;;  %v5642_v24 = vld [vmem:[%s7181_s6] ss:$0 sm:$0xff] }
 0x275   : > { %v3189_v25 = vpop.f32.mrf.mxu2 }
 0x276   : > { %v3190_v37 = vadd.f32 %v3189_v25, %v3177_v35 }
 0x278   : > { %v3202_v28 = vpop.f32.mrf.mxu3  ;;  %v3165_v30 = vpop.f32.mrf.mxu0 }
 0x279   : > { %v3178_v33 = vpop.f32.mrf.mxu1  ;;  %v3203_v38 = vadd.f32 %v3202_v28, %v3190_v37 }
 0x27d   : > { %v3191_v34 = vpop.f32.mrf.mxu2 }
 0x280   : > { %v3204_v36 = vpop.f32.mrf.mxu3 }
 0x28d   : > { %v3215_v39 = vpop.f32.mrf.mxu0 }
 0x28e   : > { %v3216_v40 = vadd.f32 %v3215_v39, %v3203_v38  ;;  %v3228_v41 = vpop.f32.mrf.mxu1 }
 0x290   : > { %v3229_v31 = vadd.f32 %v3228_v41, %v3216_v40 }
 0x295   : > { %v3241_v32 = vpop.f32.mrf.mxu2  ;;  %v3217_v45 = vpop.f32.mrf.mxu0 }
 0x296   : > { %v3242_v43 = vadd.f32 %v3241_v32, %v3229_v31  ;;  %v3254_v16 = vpop.f32.mrf.mxu3  ;;  %v3230_v47 = vpop.f32.mrf.mxu1 }
 0x298   : > { %v3255_v17 = vadd.f32 %v3254_v16, %v3242_v43 }
 0x29a   : > { %v3362_v48 = vmax.f32 %v3255_v17, 0.0 }
 0x29c   : > { %v3364_v49 = vpack.c.bf16 %v3362_v48, %v3362_v48 }
 0x29d   : > { %v3243_v52 = vpop.f32.mrf.mxu2 }
 0x29e   : > { %3506 = vmatmul.bf16.vlgmr.msra.gmra.mxu0 %v3364_v49  ;;  %v3256_v53 = vpop.f32.mrf.mxu3 }
 0x2ad   : > { %v3267_v19 = vpop.f32.mrf.mxu0 }
 0x2ae   : > { %v3280_v59 = vpop.f32.mrf.mxu1  ;;  %v3268_v5 = vadd.f32 %v3267_v19, %v2511_v2 }
 0x2b0   : > { %v3281_v6 = vadd.f32 %v3280_v59, %v3268_v5 }
 0x2b5   : > { %v3293_v61 = vpop.f32.mrf.mxu2  ;;  %v3269_v63 = vpop.f32.mrf.mxu0 }
 0x2b6   : > { %v3306_v62 = vpop.f32.mrf.mxu3  ;;  %v3282_v1 = vpop.f32.mrf.mxu1  ;;  %v3294_v7 = vadd.f32 %v3293_v61, %v3281_v6 }
 0x2b8   : > { %v3307_v8 = vadd.f32 %v3306_v62, %v3294_v7 }
 0x2bd   : > { %v3295_v3 = vpop.f32.mrf.mxu2 }
 0x2be   : > { %v3308_v4 = vpop.f32.mrf.mxu3 }
 0x2cd   : > { %v3319_v9 = vpop.f32.mrf.mxu0 }
 0x2ce   : > { %v3332_v10 = vpop.f32.mrf.mxu1  ;;  %v3320_v42 = vadd.f32 %v3319_v9, %v3307_v8 }
 0x2d0   : > { %v3333_v12 = vadd.f32 %v3332_v10, %v3320_v42 }
 0x2d5   : > { %v3345_v13 = vpop.f32.mrf.mxu2  ;;  %v3321_v21 = vpop.f32.mrf.mxu0 }
 0x2d6   : > { %v3346_v14 = vadd.f32 %v3345_v13, %v3333_v12  ;;  %v3358_v20 = vpop.f32.mrf.mxu3  ;;  %v3334_v51 = vpop.f32.mrf.mxu1 }
 0x2d8   : > { %v3359_v54 = vadd.f32 %v3358_v20, %v3346_v14 }
 0x2da   : > { %v3363_v15 = vmax.f32 %v3359_v54, 0.0 }
 0x2dc   : > { %v3365_v11 = vpack.c.bf16 %v3363_v15, %v3363_v15 }
 0x2dd   : > { %v3347_v18 = vpop.f32.mrf.mxu2 }
 0x2de   : > { %v3360_v23 = vpop.f32.mrf.mxu3  ;;  %3519 = vmatmul.bf16.vlgmr.msra.gmra.mxu1 %v3365_v11 }
 0x31b   : > { %v3507_v55 = vpop.f32.mrf.mxu0 }
 0x31c   : > { %v3508_v25 = vadd.f32 %v5642_v24, %v3507_v55 }
 0x323   : > { %v3509_v22 = vpop.f32.mrf.mxu0 }
 0x35b   : > { %v3520_v26 = vpop.f32.mrf.mxu1 }
 0x35c   : > { %v3521_v27 = vadd.f32 %v3520_v26, %v3508_v25 }
 0x35e   : > { %3524 = vst [vmem:[%s7182_s7] sm:$0xff] %v3521_v27 }
 0x363   : > { %v3522_v28 = vpop.f32.mrf.mxu1 }
 0x364 PF: > { %s17_s26 = sadd.s32 1, %s5665_s26   ;;  %s7183_s24 = smov %s5661_s25 }
 0x365   : > { %p14_p8 = scmp.ge.s32.totalorder %s17_s26, 4   ;;  %s7184_s25 = smov %s7186_s27 }
 0x367   :  { %16 = sbr.rel (!%p14_p8) target bundleno = 2 (0x2), region = 89 }

</bundles_post_ra>
